<compile_context>
chip_gen: v7x
topology: tpu7x:2x2x1
jax: 0.10.0
libtpu: 0.0.40
codegen_flags: <defaults>
</compile_context>

<pallas_src>
import numpy as np

import jax
import jax.numpy as jnp
from jax.experimental import pallas as pl
from jax.experimental.pallas import tpu as pltpu

EPS = 1e-5
LANE = 128                      # channel padding target (lane width)
PASS_B_TILE_CAP = 256           # rows per pass-B tile (raise to 512-1024 at real sizes)
MXU_DTYPE = jnp.bfloat16        # MXU input / intermediate dtype (f32 accum + BN math)
VMEM_LIMIT = 32 * 1024 * 1024   # explicit scoped-VMEM budget; safe on v5e/v6e/v7x


def _round_up(x, m):
    return ((x + m - 1) // m) * m


def _choose_tile_m(m, cap=PASS_B_TILE_CAP):
    """Largest row-tile <= cap that divides m and is a multiple of 8."""
    for t in range(min(m, cap), 7, -1):
        if m % t == 0 and t % 8 == 0:
            return t
    return m


# ---------------------------------------------------------------------------
# Pass A: 3x3 conv (+ optional fused 1x1 shortcut conv) + per-channel BN stats
# ---------------------------------------------------------------------------
def conv3x3_stats_pallas(xp, w9, ws=None, *, h, w):
    """xp: (N, h+2, w+2, C) MXU_DTYPE  (spatially padded, channels padded to LANE mult)
       w9: (9, C, C) MXU_DTYPE         (3x3 weights, index = dy*3+dx, [cin, cout])
       ws: (C, C) MXU_DTYPE or None    (fused 1x1 shortcut weights)
    Returns raw conv output(s) (N, h*w, C) in MXU_DTYPE and per-image stats
    (N, 2, C) f32 with rows [sum, sum_of_squares] (computed on the f32 accumulator)."""
    n, hp2, wp2, c = xp.shape
    assert hp2 == h + 2 and wp2 == w + 2
    hw = h * w
    has_ws = ws is not None
    offsets = [(dy, dx) for dy in range(3) for dx in range(3)]

    def kernel(*refs):
        if has_ws:
            xp_ref, w_ref, ws_ref, y_ref, st_ref, ys_ref, sst_ref = refs
        else:
            xp_ref, w_ref, y_ref, st_ref = refs
        xpt = xp_ref[0]                                  # (h+2, w+2, C) bf16
        acc = None
        center = None
        # 3x3 conv = 9 shifted MXU dots accumulated in f32 (K = C = 128-lane dense).
        for idx, (dy, dx) in enumerate(offsets):
            patch = xpt[dy:dy + h, dx:dx + w, :].reshape(hw, c)
            if (dy, dx) == (1, 1):
                center = patch                           # the un-padded pixels
            d = jnp.dot(patch, w_ref[idx], preferred_element_type=jnp.float32)
            acc = d if acc is None else acc + d
        y_ref[0] = acc.astype(y_ref.dtype)
        # Per-tile partial BN stats (single pass: sum & sum-of-squares in f32).
        s = jnp.sum(acc, axis=0, keepdims=True)
        ss = jnp.sum(acc * acc, axis=0, keepdims=True)
        st_ref[0] = jnp.concatenate([s, ss], axis=0)
        if has_ws:
            # Fused 1x1 shortcut conv: reuses the already-resident input tile.
            acc_s = jnp.dot(center, ws_ref[...], preferred_element_type=jnp.float32)
            ys_ref[0] = acc_s.astype(ys_ref.dtype)
            s2 = jnp.sum(acc_s, axis=0, keepdims=True)
            ss2 = jnp.sum(acc_s * acc_s, axis=0, keepdims=True)
            sst_ref[0] = jnp.concatenate([s2, ss2], axis=0)

    in_specs = [pl.BlockSpec((1, h + 2, w + 2, c), lambda i: (i, 0, 0, 0)),
                pl.BlockSpec((9, c, c), lambda i: (0, 0, 0))]   # resident weights
    inputs = [xp, w9]
    out_shape = [jax.ShapeDtypeStruct((n, hw, c), MXU_DTYPE),
                 jax.ShapeDtypeStruct((n, 2, c), jnp.float32)]
    out_specs = [pl.BlockSpec((1, hw, c), lambda i: (i, 0, 0)),
                 pl.BlockSpec((1, 2, c), lambda i: (i, 0, 0))]
    if has_ws:
        in_specs.append(pl.BlockSpec((c, c), lambda i: (0, 0)))
        inputs.append(ws)
        out_shape += [jax.ShapeDtypeStruct((n, hw, c), MXU_DTYPE),
                      jax.ShapeDtypeStruct((n, 2, c), jnp.float32)]
        out_specs += [pl.BlockSpec((1, hw, c), lambda i: (i, 0, 0)),
                      pl.BlockSpec((1, 2, c), lambda i: (i, 0, 0))]

    taps = 10 if has_ws else 9
    flops = 2 * n * hw * c * c * taps
    bytes_accessed = (n * (h + 2) * (w + 2) * c * 2 + 9 * c * c * 2
                      + (c * c * 2 if has_ws else 0)
                      + (2 if has_ws else 1) * (n * hw * c * 2 + n * 2 * c * 4))

    return pl.pallas_call(
        kernel,
        grid=(n,),
        in_specs=in_specs,
        out_specs=tuple(out_specs),
        out_shape=tuple(out_shape),
        compiler_params=pltpu.CompilerParams(
            dimension_semantics=("parallel",),      # independent per-image tiles
            vmem_limit_bytes=VMEM_LIMIT),
        cost_estimate=pl.CostEstimate(flops=flops, transcendentals=0,
                                      bytes_accessed=bytes_accessed),
    )(*inputs)


# ---------------------------------------------------------------------------
# Pass B: fold-applied BatchNorm (+ optional shortcut) (+ ReLU), row-tiled
# ---------------------------------------------------------------------------
def bn_add_relu_pallas(y_raw, scale, shift, sc=None, sc_scale=None,
                       sc_shift=None, *, relu=True):
    """out = [relu]( y_raw*scale + shift  [+ sc*sc_scale + sc_shift] )
    y_raw/sc: (M, C) MXU_DTYPE; scale/shift: (1, C) f32.  f32 elementwise math."""
    m, c = y_raw.shape
    tile = _choose_tile_m(m)
    has_sc = sc is not None

    def kernel(*refs):
        if has_sc:
            y_ref, a_ref, b_ref, s_ref, sa_ref, sb_ref, o_ref = refs
        else:
            y_ref, a_ref, b_ref, o_ref = refs
        y = y_ref[...].astype(jnp.float32) * a_ref[...] + b_ref[...]
        if has_sc:
            y = y + s_ref[...].astype(jnp.float32) * sa_ref[...] + sb_ref[...]
        if relu:
            y = jnp.maximum(y, 0.0)
        o_ref[...] = y.astype(o_ref.dtype)

    row_spec = pl.BlockSpec((tile, c), lambda i: (i, 0))
    vec_spec = pl.BlockSpec((1, c), lambda i: (0, 0))   # constant block: no re-DMA per step
    in_specs = [row_spec, vec_spec, vec_spec]
    inputs = [y_raw, scale, shift]
    if has_sc:
        in_specs += [row_spec, vec_spec, vec_spec]
        inputs += [sc, sc_scale, sc_shift]

    return pl.pallas_call(
        kernel,
        grid=(m // tile,),
        in_specs=in_specs,
        out_specs=row_spec,
        out_shape=jax.ShapeDtypeStruct((m, c), MXU_DTYPE),
        compiler_params=pltpu.CompilerParams(
            dimension_semantics=("parallel",),
            vmem_limit_bytes=VMEM_LIMIT),
    )(*inputs)


# ---------------------------------------------------------------------------
# Plain-JAX glue: fold batch stats into per-channel scale/shift (tiny)
# ---------------------------------------------------------------------------
def _fold_bn(stats, m, gamma, beta):
    """Training-mode BN (batch stats, biased variance, eps=1e-5) -> scale/shift.
    stats: (N, 2, C) f32 partial [sum, sumsq]; gamma/beta: (C,) f32 (padded ch -> 0)."""
    s = jnp.sum(stats[:, 0, :], axis=0)
    ss = jnp.sum(stats[:, 1, :], axis=0)
    mu = s / m
    var = jnp.maximum(ss / m - mu * mu, 0.0)     # f32 accumulation; clamp tiny negatives
    scale = gamma * jax.lax.rsqrt(var + EPS)
    shift = beta - mu * scale
    return scale.reshape(1, -1), shift.reshape(1, -1)


# ---------------------------------------------------------------------------
# ResBlock / DoubleConv forward (Pallas path)
# ---------------------------------------------------------------------------
def _spatial_pad(a):
    return jnp.pad(a, ((0, 0), (1, 1), (1, 1), (0, 0)))


def res_block_pallas(a, p, *, h, w):
    """a: (N, h, w, C) MXU_DTYPE channel-padded activations."""
    n, _, _, c = a.shape
    m = n * h * w
    has_proj = "ws" in p

    # conv1 (+ fused 1x1 projection shortcut when in_channels != out_channels)
    xp = _spatial_pad(a)
    if has_proj:
        y1, st1, sc_raw, st_s = conv3x3_stats_pallas(xp, p["w1"], p["ws"], h=h, w=w)
    else:
        y1, st1 = conv3x3_stats_pallas(xp, p["w1"], None, h=h, w=w)

    scale1, shift1 = _fold_bn(st1, m, p["g1"], p["be1"])
    hact = bn_add_relu_pallas(y1.reshape(m, c), scale1, shift1)        # bn1 + relu1

    # conv2
    hp = _spatial_pad(hact.reshape(n, h, w, c))
    y2, st2 = conv3x3_stats_pallas(hp, p["w2"], None, h=h, w=w)
    scale2, shift2 = _fold_bn(st2, m, p["g2"], p["be2"])

    # shortcut: BN-folded projection, or identity (scale=1, shift=0)
    if has_proj:
        sc_scale, sc_shift = _fold_bn(st_s, m, p["gs"], p["bes"])
        sc_flat = sc_raw.reshape(m, c)
    else:
        sc_scale = jnp.ones((1, c), jnp.float32)
        sc_shift = jnp.zeros((1, c), jnp.float32)
        sc_flat = a.reshape(m, c)

    out = bn_add_relu_pallas(y2.reshape(m, c), scale2, shift2,
                             sc_flat, sc_scale, sc_shift)              # bn2 + add + relu2
    return out.reshape(n, h, w, c)


def _prep_conv_w(wt, c):
    k, _, cin, cout = wt.shape
    wp = jnp.zeros((k, k, c, c), jnp.float32).at[:, :, :cin, :cout].set(wt)
    return wp.reshape(k * k, c, c).astype(MXU_DTYPE)


def _prep_vec(v, c):
    return jnp.zeros((c,), jnp.float32).at[:v.shape[0]].set(v)


def _prep_resblock(p, c):
    # Conv biases b1/b2/bs are intentionally dropped here: a per-channel constant
    # added before training-mode BN is cancelled exactly by the mean subtraction.
    q = {"w1": _prep_conv_w(p["w1"], c), "g1": _prep_vec(p["g1"], c),
         "be1": _prep_vec(p["be1"], c),
         "w2": _prep_conv_w(p["w2"], c), "g2": _prep_vec(p["g2"], c),
         "be2": _prep_vec(p["be2"], c)}
    if "ws" in p:
        q["ws"] = _prep_conv_w(p["ws"], c)[0]
        q["gs"] = _prep_vec(p["gs"], c)
        q["bes"] = _prep_vec(p["bes"], c)
    return q


def double_conv_pallas(x_nchw, params):
    n, cin, h, w = x_nchw.shape
    cout = params["res1"]["w2"].shape[-1]
    c = _round_up(max(cin, cout), LANE)            # lane-dense channel padding

    pp1 = _prep_resblock(params["res1"], c)
    pp2 = _prep_resblock(params["res2"], c)

    a = jnp.transpose(x_nchw, (0, 2, 3, 1))        # NCHW -> NHWC
    a = jnp.pad(a, ((0, 0), (0, 0), (0, 0), (0, c - cin))).astype(MXU_DTYPE)
    a = res_block_pallas(a, pp1, h=h, w=w)
    a = res_block_pallas(a, pp2, h=h, w=w)
    out = a[..., :cout].astype(jnp.float32)
    return jnp.transpose(out, (0, 3, 1, 2))        # NHWC -> NCHW


# ---------------------------------------------------------------------------
# Pure-JAX f32 reference (independent path) for verification
# ---------------------------------------------------------------------------
def conv_bn_ref(x, wt, b, gamma, beta, *, relu, shortcut=None):
    y = jax.lax.conv_general_dilated(
        x, wt, (1, 1), "SAME",
        dimension_numbers=("NHWC", "HWIO", "NHWC")) + b
    mu = jnp.mean(y, axis=(0, 1, 2), keepdims=True)
    var = jnp.mean((y - mu) ** 2, axis=(0, 1, 2), keepdims=True)
    y = (y - mu) * jax.lax.rsqrt(var + EPS) * gamma + beta
    if shortcut is not None:
        y = y + shortcut
    if relu:
        y = jnp.maximum(y, 0.0)
    return y


def res_block_ref(x, p):
    hact = conv_bn_ref(x, p["w1"], p["b1"], p["g1"], p["be1"], relu=True)
    if "ws" in p:
        sc = conv_bn_ref(x, p["ws"], p["bs"], p["gs"], p["bes"], relu=False)
    else:
        sc = x
    return conv_bn_ref(hact, p["w2"], p["b2"], p["g2"], p["be2"], relu=True,
                       shortcut=sc)


def double_conv_ref(x_nchw, params):
    x = jnp.transpose(x_nchw, (0, 2, 3, 1))
    x = res_block_ref(x, params["res1"])
    x = res_block_ref(x, params["res2"])
    return jnp.transpose(x, (0, 3, 1, 2))


# ---------------------------------------------------------------------------
# deterministic parameter init (synthetic; shapes match nn.Conv2d/BatchNorm2d)
# ---------------------------------------------------------------------------
def _init_conv_bn(key, k, cin, cout):
    kw, kb, kg, kbe = jax.random.split(key, 4)
    wt = 0.1 * jax.random.normal(kw, (k, k, cin, cout), jnp.float32)   # HWIO
    b = 0.1 * jax.random.normal(kb, (cout,), jnp.float32)
    g = 1.0 + 0.1 * jax.random.normal(kg, (cout,), jnp.float32)
    be = 0.1 * jax.random.normal(kbe, (cout,), jnp.float32)
    return wt, b, g, be


def init_resblock(key, cin, cout):
    k1, k2, k3 = jax.random.split(key, 3)
    p = {}
    p["w1"], p["b1"], p["g1"], p["be1"] = _init_conv_bn(k1, 3, cin, cout)
    p["w2"], p["b2"], p["g2"], p["be2"] = _init_conv_bn(k2, 3, cout, cout)
    if cin != cout:
        p["ws"], p["bs"], p["gs"], p["bes"] = _init_conv_bn(k3, 1, cin, cout)
    return p


def init_double_conv(key, cin, cout):
    k1, k2 = jax.random.split(key)
    return {"res1": init_resblock(k1, cin, cout),
            "res2": init_resblock(k2, cout, cout)}


# ---------------------------------------------------------------------------
if __name__ == "__main__":
    key = jax.random.PRNGKey(0)
    k_x, k_p = jax.random.split(key)

    N, C_IN, C_OUT, H, W = 2, 4, 8, 16, 16
    x = jax.random.normal(k_x, (N, C_IN, H, W), jnp.float32)   # NCHW like torch
    params = init_double_conv(k_p, C_IN, C_OUT)

    run_pallas = jax.jit(double_conv_pallas)
    run_ref = jax.jit(double_conv_ref)

    out = jax.block_until_ready(run_pallas(x, params))
    ref = jax.block_until_ready(run_ref(x, params))

    assert out.shape == (N, C_OUT, H, W), out.shape
    # Tolerance sized for bf16 MXU inputs / bf16 intermediates accumulated over
    # six stacked conv+BN layers (~2^-9 relative per matmul).  Structural bugs
    # (wrong tap offset, wrong stats, wrong shortcut) produce O(1) errors.
    np.testing.assert_allclose(np.asarray(out), np.asarray(ref),
                               rtol=1e-1, atol=1e-1)
    print("KERNEL_OK")
</pallas_src>

<mosaic_0001>
module attributes {stable_mosaic.version = 11 : i64} {
  func.func @kernel(%arg0: i32, %arg1: memref<256x128xbf16, #tpu.memory_space<vmem>>, %arg2: memref<1x128xf32, #tpu.memory_space<vmem>>, %arg3: memref<1x128xf32, #tpu.memory_space<vmem>>, %arg4: memref<256x128xbf16, #tpu.memory_space<vmem>>) attributes {dimension_semantics = [#tpu.dimension_semantics<parallel>], iteration_bounds = array<i64: 2>, scalar_prefetch = 0 : i64, scratch_operands = 0 : i64, tpu.core_type = #tpu.core_type<tc>, window_params = [{transform_indices = @transform_0, window_bounds = array<i64: 256, 128>}, {pipeline_mode = #tpu.pipeline_mode<synchronous>, transform_indices = @transform_1, window_bounds = array<i64: 1, 128>}, {pipeline_mode = #tpu.pipeline_mode<synchronous>, transform_indices = @transform_2, window_bounds = array<i64: 1, 128>}, {transform_indices = @transform_3, window_bounds = array<i64: 256, 128>}]} {
    %c0 = arith.constant 0 : index
    %c0_0 = arith.constant 0 : index
    %0 = vector.load %arg1[%c0, %c0_0] : memref<256x128xbf16, #tpu.memory_space<vmem>>, vector<256x128xbf16>
    %1 = arith.extf %0 : vector<256x128xbf16> to vector<256x128xf32>
    %c0_1 = arith.constant 0 : index
    %c0_2 = arith.constant 0 : index
    %2 = vector.load %arg2[%c0_1, %c0_2] : memref<1x128xf32, #tpu.memory_space<vmem>>, vector<1x128xf32>
    %3 = vector.broadcast %2 : vector<1x128xf32> to vector<256x128xf32>
    %4 = arith.mulf %1, %3 : vector<256x128xf32>
    %c0_3 = arith.constant 0 : index
    %c0_4 = arith.constant 0 : index
    %5 = vector.load %arg3[%c0_3, %c0_4] : memref<1x128xf32, #tpu.memory_space<vmem>>, vector<1x128xf32>
    %6 = vector.broadcast %5 : vector<1x128xf32> to vector<256x128xf32>
    %7 = arith.addf %4, %6 : vector<256x128xf32>
    %cst = arith.constant 0.000000e+00 : f32
    %8 = vector.broadcast %cst : f32 to vector<256x128xf32>
    %9 = arith.maximumf %7, %8 : vector<256x128xf32>
    %10 = arith.truncf %9 : vector<256x128xf32> to vector<256x128xbf16>
    %c0_5 = arith.constant 0 : index
    %c0_6 = arith.constant 0 : index
    %11 = vector.load %arg4[%c0_5, %c0_6] : memref<256x128xbf16, #tpu.memory_space<vmem>>, vector<256x128xbf16>
    tpu.vector_store %arg4[%c0_5, %c0_6], %10 {strides = array<i32>} : memref<256x128xbf16, #tpu.memory_space<vmem>>, vector<256x128xbf16>,
    return
  }
  func.func @transform_0(%arg0: i32) -> (i32, i32) {
    %c0_i32 = arith.constant 0 : i32
    %c0_i32_0 = arith.constant 0 : i32
    return %arg0, %c0_i32 : i32, i32
  }
  func.func @transform_1(%arg0: i32) -> (i32, i32) {
    %c0_i32 = arith.constant 0 : i32
    %c0_i32_0 = arith.constant 0 : i32
    %c0_i32_1 = arith.constant 0 : i32
    return %c0_i32, %c0_i32_0 : i32, i32
  }
  func.func @transform_2(%arg0: i32) -> (i32, i32) {
    %c0_i32 = arith.constant 0 : i32
    %c0_i32_0 = arith.constant 0 : i32
    %c0_i32_1 = arith.constant 0 : i32
    return %c0_i32, %c0_i32_0 : i32, i32
  }
  func.func @transform_3(%arg0: i32) -> (i32, i32) {
    %c0_i32 = arith.constant 0 : i32
    %c0_i32_0 = arith.constant 0 : i32
    return %arg0, %c0_i32 : i32, i32
  }
}

module attributes {stable_mosaic.version = 11 : i64} {
  func.func @kernel(%arg0: i32, %arg1: memref<1x18x18x128xbf16, #tpu.memory_space<vmem>>, %arg2: memref<9x128x128xbf16, #tpu.memory_space<vmem>>, %arg3: memref<128x128xbf16, #tpu.memory_space<vmem>>, %arg4: memref<1x256x128xbf16, #tpu.memory_space<vmem>>, %arg5: memref<1x2x128xf32, #tpu.memory_space<vmem>>, %arg6: memref<1x256x128xbf16, #tpu.memory_space<vmem>>, %arg7: memref<1x2x128xf32, #tpu.memory_space<vmem>>) attributes {dimension_semantics = [#tpu.dimension_semantics<parallel>], iteration_bounds = array<i64: 2>, scalar_prefetch = 0 : i64, scratch_operands = 0 : i64, tpu.core_type = #tpu.core_type<tc>, window_params = [{transform_indices = @transform_0, window_bounds = array<i64: 1, 18, 18, 128>}, {pipeline_mode = #tpu.pipeline_mode<synchronous>, transform_indices = @transform_1, window_bounds = array<i64: 9, 128, 128>}, {pipeline_mode = #tpu.pipeline_mode<synchronous>, transform_indices = @transform_2, window_bounds = array<i64: 128, 128>}, {transform_indices = @transform_3, window_bounds = array<i64: 1, 256, 128>}, {transform_indices = @transform_4, window_bounds = array<i64: 1, 2, 128>}, {transform_indices = @transform_5, window_bounds = array<i64: 1, 256, 128>}, {transform_indices = @transform_6, window_bounds = array<i64: 1, 2, 128>}]} {
    %c0 = arith.constant 0 : index
    %c0_0 = arith.constant 0 : index
    %c0_1 = arith.constant 0 : index
    %c0_2 = arith.constant 0 : index
    %0 = vector.load %arg1[%c0, %c0_0, %c0_1, %c0_2] : memref<1x18x18x128xbf16, #tpu.memory_space<vmem>>, vector<1x18x18x128xbf16>
    %1 = vector.shape_cast %0 : vector<1x18x18x128xbf16> to vector<18x18x128xbf16>
    %2 = vector.extract_strided_slice %1 {offsets = [0, 0, 0], sizes = [16, 16, 128], strides = [1, 1, 1]} : vector<18x18x128xbf16> to vector<16x16x128xbf16>
    %3 = vector.shape_cast %2 : vector<16x16x128xbf16> to vector<256x128xbf16>
    %c0_3 = arith.constant 0 : index
    %c0_4 = arith.constant 0 : index
    %c0_5 = arith.constant 0 : index
    %4 = vector.load %arg2[%c0_3, %c0_4, %c0_5] : memref<9x128x128xbf16, #tpu.memory_space<vmem>>, vector<1x128x128xbf16>
    %5 = vector.shape_cast %4 : vector<1x128x128xbf16> to vector<128x128xbf16>
    %cst = arith.constant dense<0.000000e+00> : vector<256x128xf32>
    %6 = tpu.matmul %3, %5, %cst {dimension_numbers = #tpu.dot_dimension_numbers<[1], [0], [0], [1], [0, 0, 1, 1], [], []>} : vector<256x128xbf16>, vector<128x128xbf16>, vector<256x128xf32> -> vector<256x128xf32>
    %7 = vector.extract_strided_slice %1 {offsets = [0, 1, 0], sizes = [16, 16, 128], strides = [1, 1, 1]} : vector<18x18x128xbf16> to vector<16x16x128xbf16>
    %8 = vector.shape_cast %7 : vector<16x16x128xbf16> to vector<256x128xbf16>
    %c1 = arith.constant 1 : index
    %c0_6 = arith.constant 0 : index
    %c0_7 = arith.constant 0 : index
    %9 = vector.load %arg2[%c1, %c0_6, %c0_7] : memref<9x128x128xbf16, #tpu.memory_space<vmem>>, vector<1x128x128xbf16>
    %10 = vector.shape_cast %9 : vector<1x128x128xbf16> to vector<128x128xbf16>
    %cst_8 = arith.constant dense<0.000000e+00> : vector<256x128xf32>
    %11 = tpu.matmul %8, %10, %cst_8 {dimension_numbers = #tpu.dot_dimension_numbers<[1], [0], [0], [1], [0, 0, 1, 1], [], []>} : vector<256x128xbf16>, vector<128x128xbf16>, vector<256x128xf32> -> vector<256x128xf32>
    %12 = arith.addf %6, %11 : vector<256x128xf32>
    %13 = vector.extract_strided_slice %1 {offsets = [0, 2, 0], sizes = [16, 16, 128], strides = [1, 1, 1]} : vector<18x18x128xbf16> to vector<16x16x128xbf16>
    %14 = vector.shape_cast %13 : vector<16x16x128xbf16> to vector<256x128xbf16>
    %c2 = arith.constant 2 : index
    %c0_9 = arith.constant 0 : index
    %c0_10 = arith.constant 0 : index
    %15 = vector.load %arg2[%c2, %c0_9, %c0_10] : memref<9x128x128xbf16, #tpu.memory_space<vmem>>, vector<1x128x128xbf16>
    %16 = vector.shape_cast %15 : vector<1x128x128xbf16> to vector<128x128xbf16>
    %cst_11 = arith.constant dense<0.000000e+00> : vector<256x128xf32>
    %17 = tpu.matmul %14, %16, %cst_11 {dimension_numbers = #tpu.dot_dimension_numbers<[1], [0], [0], [1], [0, 0, 1, 1], [], []>} : vector<256x128xbf16>, vector<128x128xbf16>, vector<256x128xf32> -> vector<256x128xf32>
    %18 = arith.addf %12, %17 : vector<256x128xf32>
    %19 = vector.extract_strided_slice %1 {offsets = [1, 0, 0], sizes = [16, 16, 128], strides = [1, 1, 1]} : vector<18x18x128xbf16> to vector<16x16x128xbf16>
    %20 = vector.shape_cast %19 : vector<16x16x128xbf16> to vector<256x128xbf16>
    %c3 = arith.constant 3 : index
    %c0_12 = arith.constant 0 : index
    %c0_13 = arith.constant 0 : index
    %21 = vector.load %arg2[%c3, %c0_12, %c0_13] : memref<9x128x128xbf16, #tpu.memory_space<vmem>>, vector<1x128x128xbf16>
    %22 = vector.shape_cast %21 : vector<1x128x128xbf16> to vector<128x128xbf16>
    %cst_14 = arith.constant dense<0.000000e+00> : vector<256x128xf32>
    %23 = tpu.matmul %20, %22, %cst_14 {dimension_numbers = #tpu.dot_dimension_numbers<[1], [0], [0], [1], [0, 0, 1, 1], [], []>} : vector<256x128xbf16>, vector<128x128xbf16>, vector<256x128xf32> -> vector<256x128xf32>
    %24 = arith.addf %18, %23 : vector<256x128xf32>
    %25 = vector.extract_strided_slice %1 {offsets = [1, 1, 0], sizes = [16, 16, 128], strides = [1, 1, 1]} : vector<18x18x128xbf16> to vector<16x16x128xbf16>
    %26 = vector.shape_cast %25 : vector<16x16x128xbf16> to vector<256x128xbf16>
    %c4 = arith.constant 4 : index
    %c0_15 = arith.constant 0 : index
    %c0_16 = arith.constant 0 : index
    %27 = vector.load %arg2[%c4, %c0_15, %c0_16] : memref<9x128x128xbf16, #tpu.memory_space<vmem>>, vector<1x128x128xbf16>
    %28 = vector.shape_cast %27 : vector<1x128x128xbf16> to vector<128x128xbf16>
    %cst_17 = arith.constant dense<0.000000e+00> : vector<256x128xf32>
    %29 = tpu.matmul %26, %28, %cst_17 {dimension_numbers = #tpu.dot_dimension_numbers<[1], [0], [0], [1], [0, 0, 1, 1], [], []>} : vector<256x128xbf16>, vector<128x128xbf16>, vector<256x128xf32> -> vector<256x128xf32>
    %30 = arith.addf %24, %29 : vector<256x128xf32>
    %31 = vector.extract_strided_slice %1 {offsets = [1, 2, 0], sizes = [16, 16, 128], strides = [1, 1, 1]} : vector<18x18x128xbf16> to vector<16x16x128xbf16>
    %32 = vector.shape_cast %31 : vector<16x16x128xbf16> to vector<256x128xbf16>
    %c5 = arith.constant 5 : index
    %c0_18 = arith.constant 0 : index
    %c0_19 = arith.constant 0 : index
    %33 = vector.load %arg2[%c5, %c0_18, %c0_19] : memref<9x128x128xbf16, #tpu.memory_space<vmem>>, vector<1x128x128xbf16>
    %34 = vector.shape_cast %33 : vector<1x128x128xbf16> to vector<128x128xbf16>
    %cst_20 = arith.constant dense<0.000000e+00> : vector<256x128xf32>
    %35 = tpu.matmul %32, %34, %cst_20 {dimension_numbers = #tpu.dot_dimension_numbers<[1], [0], [0], [1], [0, 0, 1, 1], [], []>} : vector<256x128xbf16>, vector<128x128xbf16>, vector<256x128xf32> -> vector<256x128xf32>
    %36 = arith.addf %30, %35 : vector<256x128xf32>
    %37 = vector.extract_strided_slice %1 {offsets = [2, 0, 0], sizes = [16, 16, 128], strides = [1, 1, 1]} : vector<18x18x128xbf16> to vector<16x16x128xbf16>
    %38 = vector.shape_cast %37 : vector<16x16x128xbf16> to vector<256x128xbf16>
    %c6 = arith.constant 6 : index
    %c0_21 = arith.constant 0 : index
    %c0_22 = arith.constant 0 : index
    %39 = vector.load %arg2[%c6, %c0_21, %c0_22] : memref<9x128x128xbf16, #tpu.memory_space<vmem>>, vector<1x128x128xbf16>
    %40 = vector.shape_cast %39 : vector<1x128x128xbf16> to vector<128x128xbf16>
    %cst_23 = arith.constant dense<0.000000e+00> : vector<256x128xf32>
    %41 = tpu.matmul %38, %40, %cst_23 {dimension_numbers = #tpu.dot_dimension_numbers<[1], [0], [0], [1], [0, 0, 1, 1], [], []>} : vector<256x128xbf16>, vector<128x128xbf16>, vector<256x128xf32> -> vector<256x128xf32>
    %42 = arith.addf %36, %41 : vector<256x128xf32>
    %43 = vector.extract_strided_slice %1 {offsets = [2, 1, 0], sizes = [16, 16, 128], strides = [1, 1, 1]} : vector<18x18x128xbf16> to vector<16x16x128xbf16>
    %44 = vector.shape_cast %43 : vector<16x16x128xbf16> to vector<256x128xbf16>
    %c7 = arith.constant 7 : index
    %c0_24 = arith.constant 0 : index
    %c0_25 = arith.constant 0 : index
    %45 = vector.load %arg2[%c7, %c0_24, %c0_25] : memref<9x128x128xbf16, #tpu.memory_space<vmem>>, vector<1x128x128xbf16>
    %46 = vector.shape_cast %45 : vector<1x128x128xbf16> to vector<128x128xbf16>
    %cst_26 = arith.constant dense<0.000000e+00> : vector<256x128xf32>
    %47 = tpu.matmul %44, %46, %cst_26 {dimension_numbers = #tpu.dot_dimension_numbers<[1], [0], [0], [1], [0, 0, 1, 1], [], []>} : vector<256x128xbf16>, vector<128x128xbf16>, vector<256x128xf32> -> vector<256x128xf32>
    %48 = arith.addf %42, %47 : vector<256x128xf32>
    %49 = vector.extract_strided_slice %1 {offsets = [2, 2, 0], sizes = [16, 16, 128], strides = [1, 1, 1]} : vector<18x18x128xbf16> to vector<16x16x128xbf16>
    %50 = vector.shape_cast %49 : vector<16x16x128xbf16> to vector<256x128xbf16>
    %c8 = arith.constant 8 : index
    %c0_27 = arith.constant 0 : index
    %c0_28 = arith.constant 0 : index
    %51 = vector.load %arg2[%c8, %c0_27, %c0_28] : memref<9x128x128xbf16, #tpu.memory_space<vmem>>, vector<1x128x128xbf16>
    %52 = vector.shape_cast %51 : vector<1x128x128xbf16> to vector<128x128xbf16>
    %cst_29 = arith.constant dense<0.000000e+00> : vector<256x128xf32>
    %53 = tpu.matmul %50, %52, %cst_29 {dimension_numbers = #tpu.dot_dimension_numbers<[1], [0], [0], [1], [0, 0, 1, 1], [], []>} : vector<256x128xbf16>, vector<128x128xbf16>, vector<256x128xf32> -> vector<256x128xf32>
    %54 = arith.addf %48, %53 : vector<256x128xf32>
    %55 = arith.truncf %54 : vector<256x128xf32> to vector<256x128xbf16>
    %c0_30 = arith.constant 0 : index
    %c0_31 = arith.constant 0 : index
    %c0_32 = arith.constant 0 : index
    %56 = vector.load %arg4[%c0_30, %c0_31, %c0_32] : memref<1x256x128xbf16, #tpu.memory_space<vmem>>, vector<1x256x128xbf16>
    %57 = vector.shape_cast %56 : vector<1x256x128xbf16> to vector<256x128xbf16>
    %58 = vector.shape_cast %55 : vector<256x128xbf16> to vector<1x256x128xbf16>
    tpu.vector_store %arg4[%c0_30, %c0_31, %c0_32], %58 {strides = array<i32>} : memref<1x256x128xbf16, #tpu.memory_space<vmem>>, vector<1x256x128xbf16>,
    %cst_33 = arith.constant dense<0.000000e+00> : vector<128xf32>
    %59 = vector.multi_reduction <add>, %54, %cst_33 [0] : vector<256x128xf32> to vector<128xf32>
    %60 = vector.shape_cast %59 : vector<128xf32> to vector<1x128xf32>
    %61 = arith.mulf %54, %54 : vector<256x128xf32>
    %cst_34 = arith.constant dense<0.000000e+00> : vector<128xf32>
    %62 = vector.multi_reduction <add>, %61, %cst_34 [0] : vector<256x128xf32> to vector<128xf32>
    %63 = vector.shape_cast %62 : vector<128xf32> to vector<1x128xf32>
    %64 = tpu.concatenate %60, %63 in 0 : vector<1x128xf32>, vector<1x128xf32> -> vector<2x128xf32>
    %c0_35 = arith.constant 0 : index
    %c0_36 = arith.constant 0 : index
    %c0_37 = arith.constant 0 : index
    %65 = vector.load %arg5[%c0_35, %c0_36, %c0_37] : memref<1x2x128xf32, #tpu.memory_space<vmem>>, vector<1x2x128xf32>
    %66 = vector.shape_cast %65 : vector<1x2x128xf32> to vector<2x128xf32>
    %67 = vector.shape_cast %64 : vector<2x128xf32> to vector<1x2x128xf32>
    tpu.vector_store %arg5[%c0_35, %c0_36, %c0_37], %67 {strides = array<i32>} : memref<1x2x128xf32, #tpu.memory_space<vmem>>, vector<1x2x128xf32>,
    %c0_38 = arith.constant 0 : index
    %c0_39 = arith.constant 0 : index
    %68 = vector.load %arg3[%c0_38, %c0_39] : memref<128x128xbf16, #tpu.memory_space<vmem>>, vector<128x128xbf16>
    %cst_40 = arith.constant dense<0.000000e+00> : vector<256x128xf32>
    %69 = tpu.matmul %26, %68, %cst_40 {dimension_numbers = #tpu.dot_dimension_numbers<[1], [0], [0], [1], [0, 0, 1, 1], [], []>} : vector<256x128xbf16>, vector<128x128xbf16>, vector<256x128xf32> -> vector<256x128xf32>
    %70 = arith.truncf %69 : vector<256x128xf32> to vector<256x128xbf16>
    %c0_41 = arith.constant 0 : index
    %c0_42 = arith.constant 0 : index
    %c0_43 = arith.constant 0 : index
    %71 = vector.load %arg6[%c0_41, %c0_42, %c0_43] : memref<1x256x128xbf16, #tpu.memory_space<vmem>>, vector<1x256x128xbf16>
    %72 = vector.shape_cast %71 : vector<1x256x128xbf16> to vector<256x128xbf16>
    %73 = vector.shape_cast %70 : vector<256x128xbf16> to vector<1x256x128xbf16>
    tpu.vector_store %arg6[%c0_41, %c0_42, %c0_43], %73 {strides = array<i32>} : memref<1x256x128xbf16, #tpu.memory_space<vmem>>, vector<1x256x128xbf16>,
    %cst_44 = arith.constant dense<0.000000e+00> : vector<128xf32>
    %74 = vector.multi_reduction <add>, %69, %cst_44 [0] : vector<256x128xf32> to vector<128xf32>
    %75 = vector.shape_cast %74 : vector<128xf32> to vector<1x128xf32>
    %76 = arith.mulf %69, %69 : vector<256x128xf32>
    %cst_45 = arith.constant dense<0.000000e+00> : vector<128xf32>
    %77 = vector.multi_reduction <add>, %76, %cst_45 [0] : vector<256x128xf32> to vector<128xf32>
    %78 = vector.shape_cast %77 : vector<128xf32> to vector<1x128xf32>
    %79 = tpu.concatenate %75, %78 in 0 : vector<1x128xf32>, vector<1x128xf32> -> vector<2x128xf32>
    %c0_46 = arith.constant 0 : index
    %c0_47 = arith.constant 0 : index
    %c0_48 = arith.constant 0 : index
    %80 = vector.load %arg7[%c0_46, %c0_47, %c0_48] : memref<1x2x128xf32, #tpu.memory_space<vmem>>, vector<1x2x128xf32>
    %81 = vector.shape_cast %80 : vector<1x2x128xf32> to vector<2x128xf32>
    %82 = vector.shape_cast %79 : vector<2x128xf32> to vector<1x2x128xf32>
    tpu.vector_store %arg7[%c0_46, %c0_47, %c0_48], %82 {strides = array<i32>} : memref<1x2x128xf32, #tpu.memory_space<vmem>>, vector<1x2x128xf32>,
    return
  }
  func.func @transform_0(%arg0: i32) -> (i32, i32, i32, i32) {
    %c0_i32 = arith.constant 0 : i32
    %c0_i32_0 = arith.constant 0 : i32
    %c0_i32_1 = arith.constant 0 : i32
    %c0_i32_2 = arith.constant 0 : i32
    return %arg0, %c0_i32, %c0_i32_0, %c0_i32_1 : i32, i32, i32, i32
  }
  func.func @transform_1(%arg0: i32) -> (i32, i32, i32) {
    %c0_i32 = arith.constant 0 : i32
    %c0_i32_0 = arith.constant 0 : i32
    %c0_i32_1 = arith.constant 0 : i32
    %c0_i32_2 = arith.constant 0 : i32
    return %c0_i32, %c0_i32_0, %c0_i32_1 : i32, i32, i32
  }
  func.func @transform_2(%arg0: i32) -> (i32, i32) {
    %c0_i32 = arith.constant 0 : i32
    %c0_i32_0 = arith.constant 0 : i32
    %c0_i32_1 = arith.constant 0 : i32
    return %c0_i32, %c0_i32_0 : i32, i32
  }
  func.func @transform_3(%arg0: i32) -> (i32, i32, i32) {
    %c0_i32 = arith.constant 0 : i32
    %c0_i32_0 = arith.constant 0 : i32
    %c0_i32_1 = arith.constant 0 : i32
    return %arg0, %c0_i32, %c0_i32_0 : i32, i32, i32
  }
  func.func @transform_4(%arg0: i32) -> (i32, i32, i32) {
    %c0_i32 = arith.constant 0 : i32
    %c0_i32_0 = arith.constant 0 : i32
    %c0_i32_1 = arith.constant 0 : i32
    return %arg0, %c0_i32, %c0_i32_0 : i32, i32, i32
  }
  func.func @transform_5(%arg0: i32) -> (i32, i32, i32) {
    %c0_i32 = arith.constant 0 : i32
    %c0_i32_0 = arith.constant 0 : i32
    %c0_i32_1 = arith.constant 0 : i32
    return %arg0, %c0_i32, %c0_i32_0 : i32, i32, i32
  }
  func.func @transform_6(%arg0: i32) -> (i32, i32, i32) {
    %c0_i32 = arith.constant 0 : i32
    %c0_i32_0 = arith.constant 0 : i32
    %c0_i32_1 = arith.constant 0 : i32
    return %arg0, %c0_i32, %c0_i32_0 : i32, i32, i32
  }
}

module attributes {stable_mosaic.version = 11 : i64} {
  func.func @kernel(%arg0: i32, %arg1: memref<1x18x18x128xbf16, #tpu.memory_space<vmem>>, %arg2: memref<9x128x128xbf16, #tpu.memory_space<vmem>>, %arg3: memref<1x256x128xbf16, #tpu.memory_space<vmem>>, %arg4: memref<1x2x128xf32, #tpu.memory_space<vmem>>) attributes {dimension_semantics = [#tpu.dimension_semantics<parallel>], iteration_bounds = array<i64: 2>, scalar_prefetch = 0 : i64, scratch_operands = 0 : i64, tpu.core_type = #tpu.core_type<tc>, window_params = [{transform_indices = @transform_0, window_bounds = array<i64: 1, 18, 18, 128>}, {pipeline_mode = #tpu.pipeline_mode<synchronous>, transform_indices = @transform_1, window_bounds = array<i64: 9, 128, 128>}, {transform_indices = @transform_2, window_bounds = array<i64: 1, 256, 128>}, {transform_indices = @transform_3, window_bounds = array<i64: 1, 2, 128>}]} {
    %c0 = arith.constant 0 : index
    %c0_0 = arith.constant 0 : index
    %c0_1 = arith.constant 0 : index
    %c0_2 = arith.constant 0 : index
    %0 = vector.load %arg1[%c0, %c0_0, %c0_1, %c0_2] : memref<1x18x18x128xbf16, #tpu.memory_space<vmem>>, vector<1x18x18x128xbf16>
    %1 = vector.shape_cast %0 : vector<1x18x18x128xbf16> to vector<18x18x128xbf16>
    %2 = vector.extract_strided_slice %1 {offsets = [0, 0, 0], sizes = [16, 16, 128], strides = [1, 1, 1]} : vector<18x18x128xbf16> to vector<16x16x128xbf16>
    %3 = vector.shape_cast %2 : vector<16x16x128xbf16> to vector<256x128xbf16>
    %c0_3 = arith.constant 0 : index
    %c0_4 = arith.constant 0 : index
    %c0_5 = arith.constant 0 : index
    %4 = vector.load %arg2[%c0_3, %c0_4, %c0_5] : memref<9x128x128xbf16, #tpu.memory_space<vmem>>, vector<1x128x128xbf16>
    %5 = vector.shape_cast %4 : vector<1x128x128xbf16> to vector<128x128xbf16>
    %cst = arith.constant dense<0.000000e+00> : vector<256x128xf32>
    %6 = tpu.matmul %3, %5, %cst {dimension_numbers = #tpu.dot_dimension_numbers<[1], [0], [0], [1], [0, 0, 1, 1], [], []>} : vector<256x128xbf16>, vector<128x128xbf16>, vector<256x128xf32> -> vector<256x128xf32>
    %7 = vector.extract_strided_slice %1 {offsets = [0, 1, 0], sizes = [16, 16, 128], strides = [1, 1, 1]} : vector<18x18x128xbf16> to vector<16x16x128xbf16>
    %8 = vector.shape_cast %7 : vector<16x16x128xbf16> to vector<256x128xbf16>
    %c1 = arith.constant 1 : index
    %c0_6 = arith.constant 0 : index
    %c0_7 = arith.constant 0 : index
    %9 = vector.load %arg2[%c1, %c0_6, %c0_7] : memref<9x128x128xbf16, #tpu.memory_space<vmem>>, vector<1x128x128xbf16>
    %10 = vector.shape_cast %9 : vector<1x128x128xbf16> to vector<128x128xbf16>
    %cst_8 = arith.constant dense<0.000000e+00> : vector<256x128xf32>
    %11 = tpu.matmul %8, %10, %cst_8 {dimension_numbers = #tpu.dot_dimension_numbers<[1], [0], [0], [1], [0, 0, 1, 1], [], []>} : vector<256x128xbf16>, vector<128x128xbf16>, vector<256x128xf32> -> vector<256x128xf32>
    %12 = arith.addf %6, %11 : vector<256x128xf32>
    %13 = vector.extract_strided_slice %1 {offsets = [0, 2, 0], sizes = [16, 16, 128], strides = [1, 1, 1]} : vector<18x18x128xbf16> to vector<16x16x128xbf16>
    %14 = vector.shape_cast %13 : vector<16x16x128xbf16> to vector<256x128xbf16>
    %c2 = arith.constant 2 : index
    %c0_9 = arith.constant 0 : index
    %c0_10 = arith.constant 0 : index
    %15 = vector.load %arg2[%c2, %c0_9, %c0_10] : memref<9x128x128xbf16, #tpu.memory_space<vmem>>, vector<1x128x128xbf16>
    %16 = vector.shape_cast %15 : vector<1x128x128xbf16> to vector<128x128xbf16>
    %cst_11 = arith.constant dense<0.000000e+00> : vector<256x128xf32>
    %17 = tpu.matmul %14, %16, %cst_11 {dimension_numbers = #tpu.dot_dimension_numbers<[1], [0], [0], [1], [0, 0, 1, 1], [], []>} : vector<256x128xbf16>, vector<128x128xbf16>, vector<256x128xf32> -> vector<256x128xf32>
    %18 = arith.addf %12, %17 : vector<256x128xf32>
    %19 = vector.extract_strided_slice %1 {offsets = [1, 0, 0], sizes = [16, 16, 128], strides = [1, 1, 1]} : vector<18x18x128xbf16> to vector<16x16x128xbf16>
    %20 = vector.shape_cast %19 : vector<16x16x128xbf16> to vector<256x128xbf16>
    %c3 = arith.constant 3 : index
    %c0_12 = arith.constant 0 : index
    %c0_13 = arith.constant 0 : index
    %21 = vector.load %arg2[%c3, %c0_12, %c0_13] : memref<9x128x128xbf16, #tpu.memory_space<vmem>>, vector<1x128x128xbf16>
    %22 = vector.shape_cast %21 : vector<1x128x128xbf16> to vector<128x128xbf16>
    %cst_14 = arith.constant dense<0.000000e+00> : vector<256x128xf32>
    %23 = tpu.matmul %20, %22, %cst_14 {dimension_numbers = #tpu.dot_dimension_numbers<[1], [0], [0], [1], [0, 0, 1, 1], [], []>} : vector<256x128xbf16>, vector<128x128xbf16>, vector<256x128xf32> -> vector<256x128xf32>
    %24 = arith.addf %18, %23 : vector<256x128xf32>
    %25 = vector.extract_strided_slice %1 {offsets = [1, 1, 0], sizes = [16, 16, 128], strides = [1, 1, 1]} : vector<18x18x128xbf16> to vector<16x16x128xbf16>
    %26 = vector.shape_cast %25 : vector<16x16x128xbf16> to vector<256x128xbf16>
    %c4 = arith.constant 4 : index
    %c0_15 = arith.constant 0 : index
    %c0_16 = arith.constant 0 : index
    %27 = vector.load %arg2[%c4, %c0_15, %c0_16] : memref<9x128x128xbf16, #tpu.memory_space<vmem>>, vector<1x128x128xbf16>
    %28 = vector.shape_cast %27 : vector<1x128x128xbf16> to vector<128x128xbf16>
    %cst_17 = arith.constant dense<0.000000e+00> : vector<256x128xf32>
    %29 = tpu.matmul %26, %28, %cst_17 {dimension_numbers = #tpu.dot_dimension_numbers<[1], [0], [0], [1], [0, 0, 1, 1], [], []>} : vector<256x128xbf16>, vector<128x128xbf16>, vector<256x128xf32> -> vector<256x128xf32>
    %30 = arith.addf %24, %29 : vector<256x128xf32>
    %31 = vector.extract_strided_slice %1 {offsets = [1, 2, 0], sizes = [16, 16, 128], strides = [1, 1, 1]} : vector<18x18x128xbf16> to vector<16x16x128xbf16>
    %32 = vector.shape_cast %31 : vector<16x16x128xbf16> to vector<256x128xbf16>
    %c5 = arith.constant 5 : index
    %c0_18 = arith.constant 0 : index
    %c0_19 = arith.constant 0 : index
    %33 = vector.load %arg2[%c5, %c0_18, %c0_19] : memref<9x128x128xbf16, #tpu.memory_space<vmem>>, vector<1x128x128xbf16>
    %34 = vector.shape_cast %33 : vector<1x128x128xbf16> to vector<128x128xbf16>
    %cst_20 = arith.constant dense<0.000000e+00> : vector<256x128xf32>
    %35 = tpu.matmul %32, %34, %cst_20 {dimension_numbers = #tpu.dot_dimension_numbers<[1], [0], [0], [1], [0, 0, 1, 1], [], []>} : vector<256x128xbf16>, vector<128x128xbf16>, vector<256x128xf32> -> vector<256x128xf32>
    %36 = arith.addf %30, %35 : vector<256x128xf32>
    %37 = vector.extract_strided_slice %1 {offsets = [2, 0, 0], sizes = [16, 16, 128], strides = [1, 1, 1]} : vector<18x18x128xbf16> to vector<16x16x128xbf16>
    %38 = vector.shape_cast %37 : vector<16x16x128xbf16> to vector<256x128xbf16>
    %c6 = arith.constant 6 : index
    %c0_21 = arith.constant 0 : index
    %c0_22 = arith.constant 0 : index
    %39 = vector.load %arg2[%c6, %c0_21, %c0_22] : memref<9x128x128xbf16, #tpu.memory_space<vmem>>, vector<1x128x128xbf16>
    %40 = vector.shape_cast %39 : vector<1x128x128xbf16> to vector<128x128xbf16>
    %cst_23 = arith.constant dense<0.000000e+00> : vector<256x128xf32>
    %41 = tpu.matmul %38, %40, %cst_23 {dimension_numbers = #tpu.dot_dimension_numbers<[1], [0], [0], [1], [0, 0, 1, 1], [], []>} : vector<256x128xbf16>, vector<128x128xbf16>, vector<256x128xf32> -> vector<256x128xf32>
    %42 = arith.addf %36, %41 : vector<256x128xf32>
    %43 = vector.extract_strided_slice %1 {offsets = [2, 1, 0], sizes = [16, 16, 128], strides = [1, 1, 1]} : vector<18x18x128xbf16> to vector<16x16x128xbf16>
    %44 = vector.shape_cast %43 : vector<16x16x128xbf16> to vector<256x128xbf16>
    %c7 = arith.constant 7 : index
    %c0_24 = arith.constant 0 : index
    %c0_25 = arith.constant 0 : index
    %45 = vector.load %arg2[%c7, %c0_24, %c0_25] : memref<9x128x128xbf16, #tpu.memory_space<vmem>>, vector<1x128x128xbf16>
    %46 = vector.shape_cast %45 : vector<1x128x128xbf16> to vector<128x128xbf16>
    %cst_26 = arith.constant dense<0.000000e+00> : vector<256x128xf32>
    %47 = tpu.matmul %44, %46, %cst_26 {dimension_numbers = #tpu.dot_dimension_numbers<[1], [0], [0], [1], [0, 0, 1, 1], [], []>} : vector<256x128xbf16>, vector<128x128xbf16>, vector<256x128xf32> -> vector<256x128xf32>
    %48 = arith.addf %42, %47 : vector<256x128xf32>
    %49 = vector.extract_strided_slice %1 {offsets = [2, 2, 0], sizes = [16, 16, 128], strides = [1, 1, 1]} : vector<18x18x128xbf16> to vector<16x16x128xbf16>
    %50 = vector.shape_cast %49 : vector<16x16x128xbf16> to vector<256x128xbf16>
    %c8 = arith.constant 8 : index
    %c0_27 = arith.constant 0 : index
    %c0_28 = arith.constant 0 : index
    %51 = vector.load %arg2[%c8, %c0_27, %c0_28] : memref<9x128x128xbf16, #tpu.memory_space<vmem>>, vector<1x128x128xbf16>
    %52 = vector.shape_cast %51 : vector<1x128x128xbf16> to vector<128x128xbf16>
    %cst_29 = arith.constant dense<0.000000e+00> : vector<256x128xf32>
    %53 = tpu.matmul %50, %52, %cst_29 {dimension_numbers = #tpu.dot_dimension_numbers<[1], [0], [0], [1], [0, 0, 1, 1], [], []>} : vector<256x128xbf16>, vector<128x128xbf16>, vector<256x128xf32> -> vector<256x128xf32>
    %54 = arith.addf %48, %53 : vector<256x128xf32>
    %55 = arith.truncf %54 : vector<256x128xf32> to vector<256x128xbf16>
    %c0_30 = arith.constant 0 : index
    %c0_31 = arith.constant 0 : index
    %c0_32 = arith.constant 0 : index
    %56 = vector.load %arg3[%c0_30, %c0_31, %c0_32] : memref<1x256x128xbf16, #tpu.memory_space<vmem>>, vector<1x256x128xbf16>
    %57 = vector.shape_cast %56 : vector<1x256x128xbf16> to vector<256x128xbf16>
    %58 = vector.shape_cast %55 : vector<256x128xbf16> to vector<1x256x128xbf16>
    tpu.vector_store %arg3[%c0_30, %c0_31, %c0_32], %58 {strides = array<i32>} : memref<1x256x128xbf16, #tpu.memory_space<vmem>>, vector<1x256x128xbf16>,
    %cst_33 = arith.constant dense<0.000000e+00> : vector<128xf32>
    %59 = vector.multi_reduction <add>, %54, %cst_33 [0] : vector<256x128xf32> to vector<128xf32>
    %60 = vector.shape_cast %59 : vector<128xf32> to vector<1x128xf32>
    %61 = arith.mulf %54, %54 : vector<256x128xf32>
    %cst_34 = arith.constant dense<0.000000e+00> : vector<128xf32>
    %62 = vector.multi_reduction <add>, %61, %cst_34 [0] : vector<256x128xf32> to vector<128xf32>
    %63 = vector.shape_cast %62 : vector<128xf32> to vector<1x128xf32>
    %64 = tpu.concatenate %60, %63 in 0 : vector<1x128xf32>, vector<1x128xf32> -> vector<2x128xf32>
    %c0_35 = arith.constant 0 : index
    %c0_36 = arith.constant 0 : index
    %c0_37 = arith.constant 0 : index
    %65 = vector.load %arg4[%c0_35, %c0_36, %c0_37] : memref<1x2x128xf32, #tpu.memory_space<vmem>>, vector<1x2x128xf32>
    %66 = vector.shape_cast %65 : vector<1x2x128xf32> to vector<2x128xf32>
    %67 = vector.shape_cast %64 : vector<2x128xf32> to vector<1x2x128xf32>
    tpu.vector_store %arg4[%c0_35, %c0_36, %c0_37], %67 {strides = array<i32>} : memref<1x2x128xf32, #tpu.memory_space<vmem>>, vector<1x2x128xf32>,
    return
  }
  func.func @transform_0(%arg0: i32) -> (i32, i32, i32, i32) {
    %c0_i32 = arith.constant 0 : i32
    %c0_i32_0 = arith.constant 0 : i32
    %c0_i32_1 = arith.constant 0 : i32
    %c0_i32_2 = arith.constant 0 : i32
    return %arg0, %c0_i32, %c0_i32_0, %c0_i32_1 : i32, i32, i32, i32
  }
  func.func @transform_1(%arg0: i32) -> (i32, i32, i32) {
    %c0_i32 = arith.constant 0 : i32
    %c0_i32_0 = arith.constant 0 : i32
    %c0_i32_1 = arith.constant 0 : i32
    %c0_i32_2 = arith.constant 0 : i32
    return %c0_i32, %c0_i32_0, %c0_i32_1 : i32, i32, i32
  }
  func.func @transform_2(%arg0: i32) -> (i32, i32, i32) {
    %c0_i32 = arith.constant 0 : i32
    %c0_i32_0 = arith.constant 0 : i32
    %c0_i32_1 = arith.constant 0 : i32
    return %arg0, %c0_i32, %c0_i32_0 : i32, i32, i32
  }
  func.func @transform_3(%arg0: i32) -> (i32, i32, i32) {
    %c0_i32 = arith.constant 0 : i32
    %c0_i32_0 = arith.constant 0 : i32
    %c0_i32_1 = arith.constant 0 : i32
    return %arg0, %c0_i32, %c0_i32_0 : i32, i32, i32
  }
}

module attributes {stable_mosaic.version = 11 : i64} {
  func.func @kernel(%arg0: i32, %arg1: memref<256x128xbf16, #tpu.memory_space<vmem>>, %arg2: memref<1x128xf32, #tpu.memory_space<vmem>>, %arg3: memref<1x128xf32, #tpu.memory_space<vmem>>, %arg4: memref<256x128xbf16, #tpu.memory_space<vmem>>, %arg5: memref<1x128xf32, #tpu.memory_space<vmem>>, %arg6: memref<1x128xf32, #tpu.memory_space<vmem>>, %arg7: memref<256x128xbf16, #tpu.memory_space<vmem>>) attributes {dimension_semantics = [#tpu.dimension_semantics<parallel>], iteration_bounds = array<i64: 2>, scalar_prefetch = 0 : i64, scratch_operands = 0 : i64, tpu.core_type = #tpu.core_type<tc>, window_params = [{transform_indices = @transform_0, window_bounds = array<i64: 256, 128>}, {pipeline_mode = #tpu.pipeline_mode<synchronous>, transform_indices = @transform_1, window_bounds = array<i64: 1, 128>}, {pipeline_mode = #tpu.pipeline_mode<synchronous>, transform_indices = @transform_2, window_bounds = array<i64: 1, 128>}, {transform_indices = @transform_3, window_bounds = array<i64: 256, 128>}, {pipeline_mode = #tpu.pipeline_mode<synchronous>, transform_indices = @transform_4, window_bounds = array<i64: 1, 128>}, {pipeline_mode = #tpu.pipeline_mode<synchronous>, transform_indices = @transform_5, window_bounds = array<i64: 1, 128>}, {transform_indices = @transform_6, window_bounds = array<i64: 256, 128>}]} {
    %c0 = arith.constant 0 : index
    %c0_0 = arith.constant 0 : index
    %0 = vector.load %arg1[%c0, %c0_0] : memref<256x128xbf16, #tpu.memory_space<vmem>>, vector<256x128xbf16>
    %1 = arith.extf %0 : vector<256x128xbf16> to vector<256x128xf32>
    %c0_1 = arith.constant 0 : index
    %c0_2 = arith.constant 0 : index
    %2 = vector.load %arg2[%c0_1, %c0_2] : memref<1x128xf32, #tpu.memory_space<vmem>>, vector<1x128xf32>
    %3 = vector.broadcast %2 : vector<1x128xf32> to vector<256x128xf32>
    %4 = arith.mulf %1, %3 : vector<256x128xf32>
    %c0_3 = arith.constant 0 : index
    %c0_4 = arith.constant 0 : index
    %5 = vector.load %arg3[%c0_3, %c0_4] : memref<1x128xf32, #tpu.memory_space<vmem>>, vector<1x128xf32>
    %6 = vector.broadcast %5 : vector<1x128xf32> to vector<256x128xf32>
    %7 = arith.addf %4, %6 : vector<256x128xf32>
    %c0_5 = arith.constant 0 : index
    %c0_6 = arith.constant 0 : index
    %8 = vector.load %arg4[%c0_5, %c0_6] : memref<256x128xbf16, #tpu.memory_space<vmem>>, vector<256x128xbf16>
    %9 = arith.extf %8 : vector<256x128xbf16> to vector<256x128xf32>
    %c0_7 = arith.constant 0 : index
    %c0_8 = arith.constant 0 : index
    %10 = vector.load %arg5[%c0_7, %c0_8] : memref<1x128xf32, #tpu.memory_space<vmem>>, vector<1x128xf32>
    %11 = vector.broadcast %10 : vector<1x128xf32> to vector<256x128xf32>
    %12 = arith.mulf %9, %11 : vector<256x128xf32>
    %13 = arith.addf %7, %12 : vector<256x128xf32>
    %c0_9 = arith.constant 0 : index
    %c0_10 = arith.constant 0 : index
    %14 = vector.load %arg6[%c0_9, %c0_10] : memref<1x128xf32, #tpu.memory_space<vmem>>, vector<1x128xf32>
    %15 = vector.broadcast %14 : vector<1x128xf32> to vector<256x128xf32>
    %16 = arith.addf %13, %15 : vector<256x128xf32>
    %cst = arith.constant 0.000000e+00 : f32
    %17 = vector.broadcast %cst : f32 to vector<256x128xf32>
    %18 = arith.maximumf %16, %17 : vector<256x128xf32>
    %19 = arith.truncf %18 : vector<256x128xf32> to vector<256x128xbf16>
    %c0_11 = arith.constant 0 : index
    %c0_12 = arith.constant 0 : index
    %20 = vector.load %arg7[%c0_11, %c0_12] : memref<256x128xbf16, #tpu.memory_space<vmem>>, vector<256x128xbf16>
    tpu.vector_store %arg7[%c0_11, %c0_12], %19 {strides = array<i32>} : memref<256x128xbf16, #tpu.memory_space<vmem>>, vector<256x128xbf16>,
    return
  }
  func.func @transform_0(%arg0: i32) -> (i32, i32) {
    %c0_i32 = arith.constant 0 : i32
    %c0_i32_0 = arith.constant 0 : i32
    return %arg0, %c0_i32 : i32, i32
  }
  func.func @transform_1(%arg0: i32) -> (i32, i32) {
    %c0_i32 = arith.constant 0 : i32
    %c0_i32_0 = arith.constant 0 : i32
    %c0_i32_1 = arith.constant 0 : i32
    return %c0_i32, %c0_i32_0 : i32, i32
  }
  func.func @transform_2(%arg0: i32) -> (i32, i32) {
    %c0_i32 = arith.constant 0 : i32
    %c0_i32_0 = arith.constant 0 : i32
    %c0_i32_1 = arith.constant 0 : i32
    return %c0_i32, %c0_i32_0 : i32, i32
  }
  func.func @transform_3(%arg0: i32) -> (i32, i32) {
    %c0_i32 = arith.constant 0 : i32
    %c0_i32_0 = arith.constant 0 : i32
    return %arg0, %c0_i32 : i32, i32
  }
  func.func @transform_4(%arg0: i32) -> (i32, i32) {
    %c0_i32 = arith.constant 0 : i32
    %c0_i32_0 = arith.constant 0 : i32
    %c0_i32_1 = arith.constant 0 : i32
    return %c0_i32, %c0_i32_0 : i32, i32
  }
  func.func @transform_5(%arg0: i32) -> (i32, i32) {
    %c0_i32 = arith.constant 0 : i32
    %c0_i32_0 = arith.constant 0 : i32
    %c0_i32_1 = arith.constant 0 : i32
    return %c0_i32, %c0_i32_0 : i32, i32
  }
  func.func @transform_6(%arg0: i32) -> (i32, i32) {
    %c0_i32 = arith.constant 0 : i32
    %c0_i32_0 = arith.constant 0 : i32
    return %arg0, %c0_i32 : i32, i32
  }
}

</mosaic_0001>

<bundles_post_ra>
// kernel: double_conv_pallas.9
= control target key start
LH: loop header
LB: loop body
LE: loop exit
PB: predicated region body
PF: predicated region fallthrough
CT: control target
= control target key end

     0   :  { %s851_s12 = smov 0   ;;  %s985_s0 = inlined_call_operand.vmem [shape: bf16[512,128], index: 0, kind: input, shape index: {}]   ;;  %s986_s1 = inlined_call_operand.vmem [shape: f32[1,128], index: 1, kind: input, shape index: {}]   ;;  %s987_s2 = inlined_call_operand.vmem [shape: f32[1,128], index: 2, kind: input, shape index: {}]   ;;  %s988_s3 = inlined_call_operand.vmem [shape: bf16[512,128], index: 3, kind: output, shape index: {}]  }
   0x1 LB: > { %s564_s13 = sadd.s32 4294967295, %s829_s12   ;;  %p568_p0 = scmp.ge.s32.totalorder %s829_s12, 1  ;;  %s829_s12 = sphi %s851_s12, %s13_s12  }
   0x2   : > { %p138_p1 = scmp.lt.s32.totalorder %s829_s12, 3 }
   0x4   : > { %p139_p2 = pnand %p568_p0, %p138_p1 }
   0x5   : > { %s569_s14 = sshll.u32 (!%p139_p2), %s564_s13, 5  ;;  %v872_v0 = vld [vmem:[%s986_s1] ss:$0 sm:$0xff] (!%p139_p2) }
   0x6   : > { %142 = sbr.rel (%p139_p2) target bundleno = 59 (0x3b), region = 32  ;;  %p163_p3 = scmp.lt.s32.totalorder (!%p139_p2), %s569_s14, 63  ;;  %v881_v9 = vld [vmem:[%s987_s2] ss:$0 sm:$0xff] (!%p139_p2) }
   0xd   : > { %s990_s14 = smov (!%p163_p3, %s569_s14), 63 }
   0xe   : > { %s570_s15 = sshll.u32 %s990_s14, 2 }
   0xf   : > { %s867_s18 = scalar_lea.vmem %s985_s0, %s570_s15  ;;  %s906_s25 = scalar_lea.vmem %s988_s3, %s570_s15 }
  0x10   : > { %v642_v1 = vld [vmem:[%s867_s18] sm:$0xff]   ;;  %v785_v2 = vld [vmem:[%s867_s18 + $0x8] sm:$0xff]   ;;  %v786_v3 = vld [vmem:[%s867_s18 + $0x10] sm:$0xff]  }
  0x11   : > { %v643_v4 = vunpack.c.l.bf16 %v642_v1  ;;  %v644_v5 = vunpack.c.h.bf16 %v642_v1  ;;  %v647_v6 = vunpack.c.l.bf16 %v785_v2  ;;  %v648_v7 = vunpack.c.h.bf16 %v785_v2  ;;  %v787_v8 = vld [vmem:[%s867_s18 + $0x18] sm:$0xff]   ;;  %v788_v30 = vld [vmem:[%s867_s18 + $0x20] sm:$0xff]   ;;  %v789_v35 = vld [vmem:[%s867_s18 + $0x28] sm:$0xff]  }
  0x12   : > { %v651_v10 = vunpack.c.l.bf16 %v786_v3  ;;  %v652_v11 = vunpack.c.h.bf16 %v786_v3  ;;  %v655_v12 = vunpack.c.l.bf16 %v787_v8  ;;  %v656_v13 = vunpack.c.h.bf16 %v787_v8  ;;  %v790_v40 = vld [vmem:[%s867_s18 + $0x30] sm:$0xff]   ;;  %v791_v45 = vld [vmem:[%s867_s18 + $0x38] sm:$0xff]   ;;  %v792_v3 = vld [vmem:[%s867_s18 + $0x40] sm:$0xff]  }
  0x13   : > { %v245_v14 = vmul.f32 %v643_v4, %v872_v0  ;;  %v246_v15 = vmul.f32 %v644_v5, %v872_v0  ;;  %v247_v16 = vmul.f32 %v647_v6, %v872_v0  ;;  %v248_v17 = vmul.f32 %v648_v7, %v872_v0 }
  0x14   : > { %v249_v18 = vmul.f32 %v651_v10, %v872_v0  ;;  %v250_v19 = vmul.f32 %v652_v11, %v872_v0  ;;  %v251_v20 = vmul.f32 %v655_v12, %v872_v0  ;;  %v252_v21 = vmul.f32 %v656_v13, %v872_v0  ;;  %v793_v13 = vld [vmem:[%s867_s18 + $0x48] sm:$0xff]  }
  0x15   : > { %v284_v22 = vadd.f32 %v881_v9, %v245_v14  ;;  %v285_v23 = vadd.f32 %v881_v9, %v246_v15  ;;  %v286_v24 = vadd.f32 %v881_v9, %v247_v16  ;;  %v287_v25 = vadd.f32 %v881_v9, %v248_v17 }
  0x16   : > { %v288_v26 = vadd.f32 %v881_v9, %v249_v18  ;;  %v289_v27 = vadd.f32 %v881_v9, %v250_v19  ;;  %v290_v28 = vadd.f32 %v881_v9, %v251_v20  ;;  %v291_v29 = vadd.f32 %v881_v9, %v252_v21  ;;  %v794_v18 = vld [vmem:[%s867_s18 + $0x50] sm:$0xff]  }
  0x17   : > { %v316_v31 = vmax.f32 %v284_v22, 0.0  ;;  %v317_v32 = vmax.f32 %v285_v23, 0.0  ;;  %v318_v33 = vmax.f32 %v286_v24, 0.0  ;;  %v319_v34 = vmax.f32 %v287_v25, 0.0  ;;  %v795_v23 = vld [vmem:[%s867_s18 + $0x58] sm:$0xff]  }
  0x18   : > { %v320_v36 = vmax.f32 %v288_v26, 0.0  ;;  %v321_v37 = vmax.f32 %v289_v27, 0.0  ;;  %v322_v38 = vmax.f32 %v290_v28, 0.0  ;;  %v323_v39 = vmax.f32 %v291_v29, 0.0 }
  0x19   : > { %v708_v41 = vpack.c.bf16 %v317_v32, %v316_v31  ;;  %v713_v42 = vpack.c.bf16 %v319_v34, %v318_v33  ;;  %v659_v43 = vunpack.c.l.bf16 %v788_v30  ;;  %v660_v44 = vunpack.c.h.bf16 %v788_v30 }
  0x1a   : > { %v718_v46 = vpack.c.bf16 %v321_v37, %v320_v36  ;;  %v723_v47 = vpack.c.bf16 %v323_v39, %v322_v38  ;;  %v663_v48 = vunpack.c.l.bf16 %v789_v35  ;;  %v664_v49 = vunpack.c.h.bf16 %v789_v35 }
  0x1b   : > { %709 = vst [vmem:[%s906_s25] sm:$0xff] %v708_v41   ;;  %800 = vst [vmem:[%s906_s25 + $0x8] sm:$0xff] %v713_v42   ;;  %v253_v50 = vmul.f32 %v659_v43, %v872_v0  ;;  %v254_v51 = vmul.f32 %v660_v44, %v872_v0  ;;  %v667_v52 = vunpack.c.l.bf16 %v790_v40  ;;  %v668_v53 = vunpack.c.h.bf16 %v790_v40  ;;  %v796_v40 = vld [vmem:[%s867_s18 + $0x60] sm:$0xff]  }
  0x1c   : > { %801 = vst [vmem:[%s906_s25 + $0x10] sm:$0xff] %v718_v46   ;;  %802 = vst [vmem:[%s906_s25 + $0x18] sm:$0xff] %v723_v47   ;;  %v255_v54 = vmul.f32 %v663_v48, %v872_v0  ;;  %v256_v55 = vmul.f32 %v664_v49, %v872_v0  ;;  %v671_v56 = vunpack.c.l.bf16 %v791_v45  ;;  %v672_v57 = vunpack.c.h.bf16 %v791_v45 }
  0x1d   : > { %v292_v58 = vadd.f32 %v881_v9, %v253_v50  ;;  %v293_v59 = vadd.f32 %v881_v9, %v254_v51  ;;  %v257_v60 = vmul.f32 %v667_v52, %v872_v0  ;;  %v258_v61 = vmul.f32 %v668_v53, %v872_v0  ;;  %v797_v53 = vld [vmem:[%s867_s18 + $0x68] sm:$0xff]  }
  0x1e   : > { %v294_v62 = vadd.f32 %v881_v9, %v255_v54  ;;  %v295_v63 = vadd.f32 %v881_v9, %v256_v55  ;;  %v259_v1 = vmul.f32 %v671_v56, %v872_v0  ;;  %v260_v2 = vmul.f32 %v672_v57, %v872_v0 }
  0x1f   : > { %v324_v4 = vmax.f32 %v292_v58, 0.0  ;;  %v325_v5 = vmax.f32 %v293_v59, 0.0  ;;  %v296_v6 = vadd.f32 %v881_v9, %v257_v60  ;;  %v297_v7 = vadd.f32 %v881_v9, %v258_v61  ;;  %v798_v58 = vld [vmem:[%s867_s18 + $0x70] sm:$0xff]  }
  0x20   : > { %v326_v8 = vmax.f32 %v294_v62, 0.0  ;;  %v327_v10 = vmax.f32 %v295_v63, 0.0  ;;  %v298_v11 = vadd.f32 %v881_v9, %v259_v1  ;;  %v299_v12 = vadd.f32 %v881_v9, %v260_v2  ;;  %v799_v63 = vld [vmem:[%s867_s18 + $0x78] sm:$0xff]  }
  0x21   : > { %v728_v14 = vpack.c.bf16 %v325_v5, %v324_v4  ;;  %v328_v15 = vmax.f32 %v296_v6, 0.0  ;;  %v329_v16 = vmax.f32 %v297_v7, 0.0  ;;  %v675_v17 = vunpack.c.l.bf16 %v792_v3 }
  0x22   : > { %v733_v19 = vpack.c.bf16 %v327_v10, %v326_v8  ;;  %v330_v20 = vmax.f32 %v298_v11, 0.0  ;;  %v331_v21 = vmax.f32 %v299_v12, 0.0  ;;  %v676_v22 = vunpack.c.h.bf16 %v792_v3 }
  0x23   : > { %803 = vst [vmem:[%s906_s25 + $0x20] sm:$0xff] %v728_v14   ;;  %v738_v24 = vpack.c.bf16 %v329_v16, %v328_v15  ;;  %v261_v25 = vmul.f32 %v675_v17, %v872_v0  ;;  %v679_v26 = vunpack.c.l.bf16 %v793_v13  ;;  %v680_v27 = vunpack.c.h.bf16 %v793_v13 }
  0x24   : > { %804 = vst [vmem:[%s906_s25 + $0x28] sm:$0xff] %v733_v19   ;;  %v743_v28 = vpack.c.bf16 %v331_v21, %v330_v20  ;;  %v262_v29 = vmul.f32 %v676_v22, %v872_v0  ;;  %v683_v30 = vunpack.c.l.bf16 %v794_v18  ;;  %v684_v31 = vunpack.c.h.bf16 %v794_v18 }
  0x25   : > { %805 = vst [vmem:[%s906_s25 + $0x30] sm:$0xff] %v738_v24   ;;  %v300_v32 = vadd.f32 %v881_v9, %v261_v25  ;;  %v263_v33 = vmul.f32 %v679_v26, %v872_v0  ;;  %v264_v34 = vmul.f32 %v680_v27, %v872_v0  ;;  %v687_v35 = vunpack.c.l.bf16 %v795_v23 }
  0x26   : > { %806 = vst [vmem:[%s906_s25 + $0x38] sm:$0xff] %v743_v28   ;;  %v301_v36 = vadd.f32 %v881_v9, %v262_v29  ;;  %v265_v37 = vmul.f32 %v683_v30, %v872_v0  ;;  %v266_v38 = vmul.f32 %v684_v31, %v872_v0  ;;  %v688_v39 = vunpack.c.h.bf16 %v795_v23 }
  0x27   : > { %v332_v41 = vmax.f32 %v300_v32, 0.0  ;;  %v302_v42 = vadd.f32 %v881_v9, %v263_v33  ;;  %v303_v43 = vadd.f32 %v881_v9, %v264_v34  ;;  %v267_v44 = vmul.f32 %v687_v35, %v872_v0 }
  0x28   : > { %v333_v45 = vmax.f32 %v301_v36, 0.0  ;;  %v304_v46 = vadd.f32 %v881_v9, %v265_v37  ;;  %v305_v47 = vadd.f32 %v881_v9, %v266_v38  ;;  %v268_v48 = vmul.f32 %v688_v39, %v872_v0 }
  0x29   : > { %v334_v49 = vmax.f32 %v302_v42, 0.0  ;;  %v335_v50 = vmax.f32 %v303_v43, 0.0  ;;  %v306_v51 = vadd.f32 %v881_v9, %v267_v44  ;;  %v691_v52 = vunpack.c.l.bf16 %v796_v40 }
  0x2a   : > { %v748_v54 = vpack.c.bf16 %v333_v45, %v332_v41  ;;  %v336_v55 = vmax.f32 %v304_v46, 0.0  ;;  %v337_v56 = vmax.f32 %v305_v47, 0.0  ;;  %v307_v57 = vadd.f32 %v881_v9, %v268_v48 }
  0x2b   : > { %v753_v59 = vpack.c.bf16 %v335_v50, %v334_v49  ;;  %v338_v60 = vmax.f32 %v306_v51, 0.0  ;;  %v692_v61 = vunpack.c.h.bf16 %v796_v40  ;;  %v269_v62 = vmul.f32 %v691_v52, %v872_v0 }
  0x2c   : > { %807 = vst [vmem:[%s906_s25 + $0x40] sm:$0xff] %v748_v54   ;;  %v758_v1 = vpack.c.bf16 %v337_v56, %v336_v55  ;;  %v339_v2 = vmax.f32 %v307_v57, 0.0  ;;  %v695_v3 = vunpack.c.l.bf16 %v797_v53  ;;  %v696_v4 = vunpack.c.h.bf16 %v797_v53 }
  0x2d   : > { %808 = vst [vmem:[%s906_s25 + $0x48] sm:$0xff] %v753_v59   ;;  %v270_v5 = vmul.f32 %v692_v61, %v872_v0  ;;  %v308_v6 = vadd.f32 %v881_v9, %v269_v62  ;;  %v699_v7 = vunpack.c.l.bf16 %v798_v58  ;;  %v700_v8 = vunpack.c.h.bf16 %v798_v58 }
  0x2e   : > { %809 = vst [vmem:[%s906_s25 + $0x50] sm:$0xff] %v758_v1   ;;  %v763_v10 = vpack.c.bf16 %v339_v2, %v338_v60  ;;  %v271_v11 = vmul.f32 %v695_v3, %v872_v0  ;;  %v272_v12 = vmul.f32 %v696_v4, %v872_v0  ;;  %v703_v13 = vunpack.c.l.bf16 %v799_v63 }
  0x2f   : > { %v309_v14 = vadd.f32 %v881_v9, %v270_v5  ;;  %v340_v15 = vmax.f32 %v308_v6, 0.0  ;;  %v273_v16 = vmul.f32 %v699_v7, %v872_v0  ;;  %v274_v17 = vmul.f32 %v700_v8, %v872_v0 }
  0x30   : > { %810 = vst [vmem:[%s906_s25 + $0x58] sm:$0xff] %v763_v10   ;;  %v310_v18 = vadd.f32 %v881_v9, %v271_v11  ;;  %v311_v19 = vadd.f32 %v881_v9, %v272_v12  ;;  %v704_v20 = vunpack.c.h.bf16 %v799_v63  ;;  %v275_v21 = vmul.f32 %v703_v13, %v872_v0 }
  0x31   : > { %v341_v22 = vmax.f32 %v309_v14, 0.0  ;;  %v312_v23 = vadd.f32 %v881_v9, %v273_v16  ;;  %v313_v24 = vadd.f32 %v881_v9, %v274_v17 }
  0x32   : > { %v342_v25 = vmax.f32 %v310_v18, 0.0  ;;  %v343_v26 = vmax.f32 %v311_v19, 0.0  ;;  %v276_v27 = vmul.f32 %v704_v20, %v872_v0  ;;  %v314_v28 = vadd.f32 %v881_v9, %v275_v21 }
  0x33   : > { %v768_v29 = vpack.c.bf16 %v341_v22, %v340_v15  ;;  %v344_v30 = vmax.f32 %v312_v23, 0.0  ;;  %v345_v31 = vmax.f32 %v313_v24, 0.0 }
  0x34   : > { %v773_v32 = vpack.c.bf16 %v343_v26, %v342_v25  ;;  %v315_v33 = vadd.f32 %v881_v9, %v276_v27  ;;  %v346_v34 = vmax.f32 %v314_v28, 0.0 }
  0x35   : > { %811 = vst [vmem:[%s906_s25 + $0x60] sm:$0xff] %v768_v29   ;;  %v778_v35 = vpack.c.bf16 %v345_v31, %v344_v30 }
  0x36   : > { %812 = vst [vmem:[%s906_s25 + $0x68] sm:$0xff] %v773_v32   ;;  %v347_v36 = vmax.f32 %v315_v33, 0.0 }
  0x37   : > { %813 = vst [vmem:[%s906_s25 + $0x70] sm:$0xff] %v778_v35  }
  0x38   : > { %v783_v37 = vpack.c.bf16 %v347_v36, %v346_v34 }
  0x3a   : > { %814 = vst [vmem:[%s906_s25 + $0x78] sm:$0xff] %v783_v37  }
  0x3b PF: > { %s13_s12 = sadd.s32 1, %s829_s12  }
  0x3c   : > { %p10_p4 = scmp.ge.s32.totalorder %s13_s12, 4  }
  0x3e   :  { %12 = sbr.rel (!%p10_p4) target bundleno = 1 (0x1), region = 62 }

// kernel: double_conv_pallas.11
= control target key start
LH: loop header
LB: loop body
LE: loop exit
PB: predicated region body
PF: predicated region fallthrough
CT: control target
= control target key end

     0   :  { %s1238_s21 = smov 0   ;;  %s1465_s0 = inlined_call_operand.vmem [shape: bf16[512,128], index: 0, kind: input, shape index: {}]   ;;  %s1466_s1 = inlined_call_operand.vmem [shape: f32[1,128], index: 1, kind: input, shape index: {}]   ;;  %s1467_s2 = inlined_call_operand.vmem [shape: f32[1,128], index: 2, kind: input, shape index: {}]   ;;  %s1468_s3 = inlined_call_operand.vmem [shape: bf16[512,128], index: 3, kind: input, shape index: {}]   ;;  %s1469_s4 = inlined_call_operand.vmem [shape: f32[1,128], index: 4, kind: input, shape index: {}]   ;;  %s1470_s5 = inlined_call_operand.vmem [shape: f32[1,128], index: 5, kind: input, shape index: {}]   ;;  %s1471_s6 = inlined_call_operand.vmem [shape: bf16[512,128], index: 6, kind: output, shape index: {}]  }
   0x1 LB: > { %s853_s22 = sadd.s32 4294967295, %s1201_s21   ;;  %p857_p0 = scmp.ge.s32.totalorder %s1201_s21, 1  ;;  %s1201_s21 = sphi %s1238_s21, %s16_s21  }
   0x2   : > { %p224_p1 = scmp.lt.s32.totalorder %s1201_s21, 3 }
   0x4   : > { %p225_p2 = pnand %p857_p0, %p224_p1 }
   0x5   : > { %s858_s23 = sshll.u32 (!%p225_p2), %s853_s22, 5  ;;  %v1263_v0 = vld [vmem:[%s1466_s1] ss:$0 sm:$0xff] (!%p225_p2) }
   0x6   : > { %228 = sbr.rel (%p225_p2) target bundleno = 93 (0x5d), region = 44  ;;  %p260_p3 = scmp.lt.s32.totalorder (!%p225_p2), %s858_s23, 63  ;;  %v1268_v1 = vld [vmem:[%s1469_s4] ss:$0 sm:$0xff] (!%p225_p2) }
   0x7   : > { %v1277_v10 = vld [vmem:[%s1467_s2] ss:$0 sm:$0xff] (!%p225_p2) }
   0x8   : > { %v1294_v29 = vld [vmem:[%s1470_s5] ss:$0 sm:$0xff] (!%p225_p2) }
   0xd   : > { %s1473_s23 = smov (!%p260_p3, %s858_s23), 63 }
   0xe   : > { %s1246_s24 = sshll.u32 %s1473_s23, 2 }
   0xf   : > { %s1252_s27 = scalar_lea.vmem %s1465_s0, %s1246_s24  ;;  %s1258_s30 = scalar_lea.vmem %s1468_s3, %s1246_s24 }
  0x10   : > { %v935_v2 = vld [vmem:[%s1252_s27] sm:$0xff]   ;;  %v1142_v4 = vld [vmem:[%s1252_s27 + $0x8] sm:$0xff]   ;;  %v1143_v15 = vld [vmem:[%s1252_s27 + $0x10] sm:$0xff]   ;;  %s1314_s17 = scalar_lea.vmem %s1471_s6, %s1246_s24 }
  0x11   : > { %v999_v3 = vld [vmem:[%s1258_s30] sm:$0xff]   ;;  %v936_v5 = vunpack.c.l.bf16 %v935_v2  ;;  %v937_v6 = vunpack.c.h.bf16 %v935_v2  ;;  %v1157_v9 = vld [vmem:[%s1258_s30 + $0x8] sm:$0xff]   ;;  %v940_v11 = vunpack.c.l.bf16 %v1142_v4  ;;  %v941_v12 = vunpack.c.h.bf16 %v1142_v4  ;;  %v1158_v20 = vld [vmem:[%s1258_s30 + $0x10] sm:$0xff]  }
  0x12   : > { %v1000_v7 = vunpack.c.l.bf16 %v999_v3  ;;  %v1001_v8 = vunpack.c.h.bf16 %v999_v3  ;;  %v1004_v13 = vunpack.c.l.bf16 %v1157_v9  ;;  %v1005_v14 = vunpack.c.h.bf16 %v1157_v9  ;;  %v1144_v38 = vld [vmem:[%s1252_s27 + $0x18] sm:$0xff]   ;;  %v1145_v60 = vld [vmem:[%s1252_s27 + $0x20] sm:$0xff]  }
  0x13   : > { %v348_v16 = vmul.f32 %v936_v5, %v1263_v0  ;;  %v349_v17 = vmul.f32 %v937_v6, %v1263_v0  ;;  %v350_v21 = vmul.f32 %v940_v11, %v1263_v0  ;;  %v351_v22 = vmul.f32 %v941_v12, %v1263_v0  ;;  %v1159_v51 = vld [vmem:[%s1258_s30 + $0x18] sm:$0xff]   ;;  %v1160_v3 = vld [vmem:[%s1258_s30 + $0x20] sm:$0xff]  }
  0x14   : > { %v490_v18 = vmul.f32 %v1000_v7, %v1268_v1  ;;  %v491_v19 = vmul.f32 %v1001_v8, %v1268_v1  ;;  %v492_v23 = vmul.f32 %v1004_v13, %v1268_v1  ;;  %v493_v24 = vmul.f32 %v1005_v14, %v1268_v1  ;;  %v1146_v8 = vld [vmem:[%s1252_s27 + $0x28] sm:$0xff]  }
  0x15   : > { %v387_v25 = vadd.f32 %v1277_v10, %v348_v16  ;;  %v388_v26 = vadd.f32 %v1277_v10, %v349_v17  ;;  %v944_v27 = vunpack.c.l.bf16 %v1143_v15  ;;  %v945_v28 = vunpack.c.h.bf16 %v1143_v15 }
  0x16   : > { %v389_v30 = vadd.f32 %v1277_v10, %v350_v21  ;;  %v390_v31 = vadd.f32 %v1277_v10, %v351_v22  ;;  %v1008_v32 = vunpack.c.l.bf16 %v1158_v20  ;;  %v1009_v33 = vunpack.c.h.bf16 %v1158_v20  ;;  %v1161_v22 = vld [vmem:[%s1258_s30 + $0x28] sm:$0xff]  }
  0x17   : > { %v522_v34 = vadd.f32 %v490_v18, %v387_v25  ;;  %v523_v35 = vadd.f32 %v491_v19, %v388_v26  ;;  %v352_v36 = vmul.f32 %v944_v27, %v1263_v0  ;;  %v353_v37 = vmul.f32 %v945_v28, %v1263_v0 }
  0x18   : > { %v524_v39 = vadd.f32 %v492_v23, %v389_v30  ;;  %v525_v40 = vadd.f32 %v493_v24, %v390_v31  ;;  %v494_v41 = vmul.f32 %v1008_v32, %v1268_v1  ;;  %v495_v42 = vmul.f32 %v1009_v33, %v1268_v1 }
  0x19   : > { %v561_v43 = vadd.f32 %v1294_v29, %v522_v34  ;;  %v562_v44 = vadd.f32 %v1294_v29, %v523_v35  ;;  %v391_v45 = vadd.f32 %v1277_v10, %v352_v36  ;;  %v392_v46 = vadd.f32 %v1277_v10, %v353_v37  ;;  %v1147_v36 = vld [vmem:[%s1252_s27 + $0x30] sm:$0xff]  }
  0x1a   : > { %v563_v47 = vadd.f32 %v1294_v29, %v524_v39  ;;  %v564_v48 = vadd.f32 %v1294_v29, %v525_v40  ;;  %v948_v49 = vunpack.c.l.bf16 %v1144_v38  ;;  %v949_v50 = vunpack.c.h.bf16 %v1144_v38 }
  0x1b   : > { %v593_v52 = vmax.f32 %v561_v43, 0.0  ;;  %v594_v53 = vmax.f32 %v562_v44, 0.0  ;;  %v526_v54 = vadd.f32 %v494_v41, %v391_v45  ;;  %v527_v55 = vadd.f32 %v495_v42, %v392_v46  ;;  %v1162_v41 = vld [vmem:[%s1258_s30 + $0x30] sm:$0xff]  }
  0x1c   : > { %v595_v56 = vmax.f32 %v563_v47, 0.0  ;;  %v596_v57 = vmax.f32 %v564_v48, 0.0  ;;  %v354_v58 = vmul.f32 %v948_v49, %v1263_v0  ;;  %v355_v59 = vmul.f32 %v949_v50, %v1263_v0 }
  0x1d   : > { %v1065_v61 = vpack.c.bf16 %v594_v53, %v593_v52  ;;  %v565_v62 = vadd.f32 %v1294_v29, %v526_v54  ;;  %v566_v63 = vadd.f32 %v1294_v29, %v527_v55  ;;  %v1012_v2 = vunpack.c.l.bf16 %v1159_v51  ;;  %v1148_v54 = vld [vmem:[%s1252_s27 + $0x38] sm:$0xff]  }
  0x1e   : > { %v1070_v4 = vpack.c.bf16 %v596_v57, %v595_v56  ;;  %v393_v5 = vadd.f32 %v1277_v10, %v354_v58  ;;  %v394_v6 = vadd.f32 %v1277_v10, %v355_v59  ;;  %v1013_v7 = vunpack.c.h.bf16 %v1159_v51 }
  0x1f   : > { %1066 = vst [vmem:[%s1314_s17] sm:$0xff] %v1065_v61   ;;  %v597_v9 = vmax.f32 %v565_v62, 0.0  ;;  %v598_v11 = vmax.f32 %v566_v63, 0.0  ;;  %v496_v12 = vmul.f32 %v1012_v2, %v1268_v1  ;;  %v952_v13 = vunpack.c.l.bf16 %v1145_v60  ;;  %v1163_v63 = vld [vmem:[%s1258_s30 + $0x38] sm:$0xff]  }
  0x20   : > { %1172 = vst [vmem:[%s1314_s17 + $0x8] sm:$0xff] %v1070_v4   ;;  %v497_v14 = vmul.f32 %v1013_v7, %v1268_v1  ;;  %v953_v15 = vunpack.c.h.bf16 %v1145_v60  ;;  %v1016_v16 = vunpack.c.l.bf16 %v1160_v3  ;;  %v1017_v17 = vunpack.c.h.bf16 %v1160_v3 }
  0x21   : > { %v1075_v18 = vpack.c.bf16 %v598_v11, %v597_v9  ;;  %v528_v19 = vadd.f32 %v496_v12, %v393_v5  ;;  %v356_v20 = vmul.f32 %v952_v13, %v1263_v0  ;;  %v956_v21 = vunpack.c.l.bf16 %v1146_v8 }
  0x22   : > { %v529_v23 = vadd.f32 %v497_v14, %v394_v6  ;;  %v357_v24 = vmul.f32 %v953_v15, %v1263_v0  ;;  %v498_v25 = vmul.f32 %v1016_v16, %v1268_v1  ;;  %v499_v26 = vmul.f32 %v1017_v17, %v1268_v1  ;;  %v1149_v6 = vld [vmem:[%s1252_s27 + $0x40] sm:$0xff]  }
  0x23   : > { %1173 = vst [vmem:[%s1314_s17 + $0x10] sm:$0xff] %v1075_v18   ;;  %v567_v27 = vadd.f32 %v1294_v29, %v528_v19  ;;  %v395_v28 = vadd.f32 %v1277_v10, %v356_v20  ;;  %v957_v30 = vunpack.c.h.bf16 %v1146_v8  ;;  %v358_v31 = vmul.f32 %v956_v21, %v1263_v0  ;;  %v1164_v20 = vld [vmem:[%s1258_s30 + $0x40] sm:$0xff]  }
  0x24   : > { %v568_v32 = vadd.f32 %v1294_v29, %v529_v23  ;;  %v396_v33 = vadd.f32 %v1277_v10, %v357_v24  ;;  %v1020_v34 = vunpack.c.l.bf16 %v1161_v22  ;;  %v1021_v35 = vunpack.c.h.bf16 %v1161_v22 }
  0x25   : > { %v599_v37 = vmax.f32 %v567_v27, 0.0  ;;  %v530_v38 = vadd.f32 %v498_v25, %v395_v28  ;;  %v359_v39 = vmul.f32 %v957_v30, %v1263_v0  ;;  %v397_v40 = vadd.f32 %v1277_v10, %v358_v31  ;;  %v1150_v30 = vld [vmem:[%s1252_s27 + $0x48] sm:$0xff]  }
  0x26   : > { %v600_v42 = vmax.f32 %v568_v32, 0.0  ;;  %v531_v43 = vadd.f32 %v499_v26, %v396_v33  ;;  %v500_v44 = vmul.f32 %v1020_v34, %v1268_v1  ;;  %v501_v45 = vmul.f32 %v1021_v35, %v1268_v1 }
  0x27   : > { %v569_v46 = vadd.f32 %v1294_v29, %v530_v38  ;;  %v398_v47 = vadd.f32 %v1277_v10, %v359_v39  ;;  %v960_v48 = vunpack.c.l.bf16 %v1147_v36  ;;  %v961_v49 = vunpack.c.h.bf16 %v1147_v36 }
  0x28   : > { %v1080_v50 = vpack.c.bf16 %v600_v42, %v599_v37  ;;  %v570_v51 = vadd.f32 %v1294_v29, %v531_v43  ;;  %v532_v52 = vadd.f32 %v500_v44, %v397_v40  ;;  %v1024_v53 = vunpack.c.l.bf16 %v1162_v41  ;;  %v1165_v43 = vld [vmem:[%s1258_s30 + $0x48] sm:$0xff]  }
  0x29   : > { %v601_v55 = vmax.f32 %v569_v46, 0.0  ;;  %v533_v56 = vadd.f32 %v501_v45, %v398_v47  ;;  %v360_v57 = vmul.f32 %v960_v48, %v1263_v0  ;;  %v361_v58 = vmul.f32 %v961_v49, %v1263_v0  ;;  %v1151_v48 = vld [vmem:[%s1252_s27 + $0x50] sm:$0xff]  }
  0x2a   : > { %1174 = vst [vmem:[%s1314_s17 + $0x18] sm:$0xff] %v1080_v50   ;;  %v602_v59 = vmax.f32 %v570_v51, 0.0  ;;  %v571_v60 = vadd.f32 %v1294_v29, %v532_v52  ;;  %v1025_v61 = vunpack.c.h.bf16 %v1162_v41  ;;  %v502_v62 = vmul.f32 %v1024_v53, %v1268_v1 }
  0x2b   : > { %v572_v2 = vadd.f32 %v1294_v29, %v533_v56  ;;  %v399_v3 = vadd.f32 %v1277_v10, %v360_v57  ;;  %v400_v4 = vadd.f32 %v1277_v10, %v361_v58  ;;  %v964_v5 = vunpack.c.l.bf16 %v1148_v54 }
  0x2c   : > { %v1085_v7 = vpack.c.bf16 %v602_v59, %v601_v55  ;;  %v603_v8 = vmax.f32 %v571_v60, 0.0  ;;  %v503_v9 = vmul.f32 %v1025_v61, %v1268_v1  ;;  %v965_v11 = vunpack.c.h.bf16 %v1148_v54  ;;  %v1166_v61 = vld [vmem:[%s1258_s30 + $0x50] sm:$0xff]  }
  0x2d   : > { %v604_v12 = vmax.f32 %v572_v2, 0.0  ;;  %v534_v13 = vadd.f32 %v502_v62, %v399_v3  ;;  %v362_v14 = vmul.f32 %v964_v5, %v1263_v0  ;;  %v1028_v15 = vunpack.c.l.bf16 %v1163_v63 }
  0x2e   : > { %1175 = vst [vmem:[%s1314_s17 + $0x20] sm:$0xff] %v1085_v7   ;;  %v535_v16 = vadd.f32 %v503_v9, %v400_v4  ;;  %v363_v17 = vmul.f32 %v965_v11, %v1263_v0  ;;  %v1029_v18 = vunpack.c.h.bf16 %v1163_v63  ;;  %v968_v19 = vunpack.c.l.bf16 %v1149_v6  ;;  %v1152_v4 = vld [vmem:[%s1252_s27 + $0x58] sm:$0xff]  }
  0x2f   : > { %v1090_v21 = vpack.c.bf16 %v604_v12, %v603_v8  ;;  %v573_v22 = vadd.f32 %v1294_v29, %v534_v13  ;;  %v401_v23 = vadd.f32 %v1277_v10, %v362_v14  ;;  %v504_v24 = vmul.f32 %v1028_v15, %v1268_v1 }
  0x30   : > { %v574_v25 = vadd.f32 %v1294_v29, %v535_v16  ;;  %v402_v26 = vadd.f32 %v1277_v10, %v363_v17  ;;  %v505_v27 = vmul.f32 %v1029_v18, %v1268_v1  ;;  %v969_v28 = vunpack.c.h.bf16 %v1149_v6  ;;  %v1167_v18 = vld [vmem:[%s1258_s30 + $0x58] sm:$0xff]  }
  0x31   : > { %1176 = vst [vmem:[%s1314_s17 + $0x28] sm:$0xff] %v1090_v21   ;;  %v605_v31 = vmax.f32 %v573_v22, 0.0  ;;  %v536_v32 = vadd.f32 %v504_v24, %v401_v23  ;;  %v364_v33 = vmul.f32 %v968_v19, %v1263_v0  ;;  %v1032_v34 = vunpack.c.l.bf16 %v1164_v20 }
  0x32   : > { %v606_v35 = vmax.f32 %v574_v25, 0.0  ;;  %v537_v36 = vadd.f32 %v505_v27, %v402_v26  ;;  %v365_v37 = vmul.f32 %v969_v28, %v1263_v0  ;;  %v1033_v38 = vunpack.c.h.bf16 %v1164_v20  ;;  %v1153_v27 = vld [vmem:[%s1252_s27 + $0x60] sm:$0xff]  }
  0x33   : > { %v575_v39 = vadd.f32 %v1294_v29, %v536_v32  ;;  %v403_v40 = vadd.f32 %v1277_v10, %v364_v33  ;;  %v506_v41 = vmul.f32 %v1032_v34, %v1268_v1  ;;  %v972_v42 = vunpack.c.l.bf16 %v1150_v30 }
  0x34   : > { %v1095_v44 = vpack.c.bf16 %v606_v35, %v605_v31  ;;  %v576_v45 = vadd.f32 %v1294_v29, %v537_v36  ;;  %v404_v46 = vadd.f32 %v1277_v10, %v365_v37  ;;  %v507_v47 = vmul.f32 %v1033_v38, %v1268_v1  ;;  %v1168_v37 = vld [vmem:[%s1258_s30 + $0x60] sm:$0xff]  }
  0x35   : > { %v607_v49 = vmax.f32 %v575_v39, 0.0  ;;  %v538_v50 = vadd.f32 %v506_v41, %v403_v40  ;;  %v973_v51 = vunpack.c.h.bf16 %v1150_v30  ;;  %v366_v52 = vmul.f32 %v972_v42, %v1263_v0 }
  0x36   : > { %1177 = vst [vmem:[%s1314_s17 + $0x30] sm:$0xff] %v1095_v44   ;;  %v608_v53 = vmax.f32 %v576_v45, 0.0  ;;  %v539_v54 = vadd.f32 %v507_v47, %v404_v46  ;;  %v1036_v55 = vunpack.c.l.bf16 %v1165_v43  ;;  %v1037_v56 = vunpack.c.h.bf16 %v1165_v43  ;;  %v1154_v46 = vld [vmem:[%s1252_s27 + $0x68] sm:$0xff]  }
  0x37   : > { %v577_v57 = vadd.f32 %v1294_v29, %v538_v50  ;;  %v367_v58 = vmul.f32 %v973_v51, %v1263_v0  ;;  %v405_v59 = vadd.f32 %v1277_v10, %v366_v52  ;;  %v976_v60 = vunpack.c.l.bf16 %v1151_v48 }
  0x38   : > { %v1100_v62 = vpack.c.bf16 %v608_v53, %v607_v49  ;;  %v578_v63 = vadd.f32 %v1294_v29, %v539_v54  ;;  %v508_v2 = vmul.f32 %v1036_v55, %v1268_v1  ;;  %v509_v3 = vmul.f32 %v1037_v56, %v1268_v1 }
  0x39   : > { %v609_v5 = vmax.f32 %v577_v57, 0.0  ;;  %v406_v6 = vadd.f32 %v1277_v10, %v367_v58  ;;  %v977_v7 = vunpack.c.h.bf16 %v1151_v48  ;;  %v368_v8 = vmul.f32 %v976_v60, %v1263_v0 }
  0x3a   : > { %1178 = vst [vmem:[%s1314_s17 + $0x38] sm:$0xff] %v1100_v62   ;;  %v610_v9 = vmax.f32 %v578_v63, 0.0  ;;  %v540_v11 = vadd.f32 %v508_v2, %v405_v59  ;;  %v1040_v12 = vunpack.c.l.bf16 %v1166_v61  ;;  %v1041_v13 = vunpack.c.h.bf16 %v1166_v61  ;;  %v1169_v59 = vld [vmem:[%s1258_s30 + $0x68] sm:$0xff]   ;;  %v1155_v2 = vld [vmem:[%s1252_s27 + $0x70] sm:$0xff]  }
  0x3b   : > { %v541_v14 = vadd.f32 %v509_v3, %v406_v6  ;;  %v369_v15 = vmul.f32 %v977_v7, %v1263_v0  ;;  %v407_v16 = vadd.f32 %v1277_v10, %v368_v8  ;;  %v980_v17 = vunpack.c.l.bf16 %v1152_v4 }
  0x3c   : > { %v1105_v19 = vpack.c.bf16 %v610_v9, %v609_v5  ;;  %v579_v20 = vadd.f32 %v1294_v29, %v540_v11  ;;  %v510_v21 = vmul.f32 %v1040_v12, %v1268_v1  ;;  %v511_v22 = vmul.f32 %v1041_v13, %v1268_v1 }
  0x3d   : > { %v580_v23 = vadd.f32 %v1294_v29, %v541_v14  ;;  %v408_v24 = vadd.f32 %v1277_v10, %v369_v15  ;;  %v981_v25 = vunpack.c.h.bf16 %v1152_v4  ;;  %v370_v26 = vmul.f32 %v980_v17, %v1263_v0 }
  0x3e   : > { %1179 = vst [vmem:[%s1314_s17 + $0x40] sm:$0xff] %v1105_v19   ;;  %v611_v28 = vmax.f32 %v579_v20, 0.0  ;;  %v542_v30 = vadd.f32 %v510_v21, %v407_v16  ;;  %v1044_v31 = vunpack.c.l.bf16 %v1167_v18  ;;  %v1045_v32 = vunpack.c.h.bf16 %v1167_v18  ;;  %v1170_v16 = vld [vmem:[%s1258_s30 + $0x70] sm:$0xff]   ;;  %v1156_v21 = vld [vmem:[%s1252_s27 + $0x78] sm:$0xff]  }
  0x3f   : > { %v612_v33 = vmax.f32 %v580_v23, 0.0  ;;  %v543_v34 = vadd.f32 %v511_v22, %v408_v24  ;;  %v371_v35 = vmul.f32 %v981_v25, %v1263_v0  ;;  %v409_v36 = vadd.f32 %v1277_v10, %v370_v26 }
  0x40   : > { %v581_v38 = vadd.f32 %v1294_v29, %v542_v30  ;;  %v512_v39 = vmul.f32 %v1044_v31, %v1268_v1  ;;  %v513_v40 = vmul.f32 %v1045_v32, %v1268_v1  ;;  %v984_v41 = vunpack.c.l.bf16 %v1153_v27 }
  0x41   : > { %v1110_v42 = vpack.c.bf16 %v612_v33, %v611_v28  ;;  %v582_v43 = vadd.f32 %v1294_v29, %v543_v34  ;;  %v410_v44 = vadd.f32 %v1277_v10, %v371_v35  ;;  %v985_v45 = vunpack.c.h.bf16 %v1153_v27  ;;  %v1171_v35 = vld [vmem:[%s1258_s30 + $0x78] sm:$0xff]  }
  0x42   : > { %v613_v47 = vmax.f32 %v581_v38, 0.0  ;;  %v544_v48 = vadd.f32 %v512_v39, %v409_v36  ;;  %v372_v49 = vmul.f32 %v984_v41, %v1263_v0  ;;  %v1048_v50 = vunpack.c.l.bf16 %v1168_v37 }
  0x43   : > { %1180 = vst [vmem:[%s1314_s17 + $0x48] sm:$0xff] %v1110_v42   ;;  %v614_v51 = vmax.f32 %v582_v43, 0.0  ;;  %v545_v52 = vadd.f32 %v513_v40, %v410_v44  ;;  %v373_v53 = vmul.f32 %v985_v45, %v1263_v0  ;;  %v1049_v54 = vunpack.c.h.bf16 %v1168_v37 }
  0x44   : > { %v583_v55 = vadd.f32 %v1294_v29, %v544_v48  ;;  %v411_v56 = vadd.f32 %v1277_v10, %v372_v49  ;;  %v514_v57 = vmul.f32 %v1048_v50, %v1268_v1  ;;  %v988_v58 = vunpack.c.l.bf16 %v1154_v46 }
  0x45   : > { %v1115_v60 = vpack.c.bf16 %v614_v51, %v613_v47  ;;  %v584_v61 = vadd.f32 %v1294_v29, %v545_v52  ;;  %v412_v62 = vadd.f32 %v1277_v10, %v373_v53  ;;  %v515_v63 = vmul.f32 %v1049_v54, %v1268_v1 }
  0x46   : > { %v615_v3 = vmax.f32 %v583_v55, 0.0  ;;  %v546_v4 = vadd.f32 %v514_v57, %v411_v56  ;;  %v989_v5 = vunpack.c.h.bf16 %v1154_v46  ;;  %v374_v6 = vmul.f32 %v988_v58, %v1263_v0 }
  0x47   : > { %1181 = vst [vmem:[%s1314_s17 + $0x50] sm:$0xff] %v1115_v60   ;;  %v616_v7 = vmax.f32 %v584_v61, 0.0  ;;  %v547_v8 = vadd.f32 %v515_v63, %v412_v62  ;;  %v1052_v9 = vunpack.c.l.bf16 %v1169_v59  ;;  %v1053_v11 = vunpack.c.h.bf16 %v1169_v59 }
  0x48   : > { %v585_v12 = vadd.f32 %v1294_v29, %v546_v4  ;;  %v375_v13 = vmul.f32 %v989_v5, %v1263_v0  ;;  %v413_v14 = vadd.f32 %v1277_v10, %v374_v6  ;;  %v992_v15 = vunpack.c.l.bf16 %v1155_v2 }
  0x49   : > { %v1120_v17 = vpack.c.bf16 %v616_v7, %v615_v3  ;;  %v586_v18 = vadd.f32 %v1294_v29, %v547_v8  ;;  %v516_v19 = vmul.f32 %v1052_v9, %v1268_v1  ;;  %v517_v20 = vmul.f32 %v1053_v11, %v1268_v1 }
  0x4a   : > { %v617_v22 = vmax.f32 %v585_v12, 0.0  ;;  %v414_v23 = vadd.f32 %v1277_v10, %v375_v13  ;;  %v993_v24 = vunpack.c.h.bf16 %v1155_v2  ;;  %v376_v25 = vmul.f32 %v992_v15, %v1263_v0 }
  0x4b   : > { %1182 = vst [vmem:[%s1314_s17 + $0x58] sm:$0xff] %v1120_v17   ;;  %v618_v26 = vmax.f32 %v586_v18, 0.0  ;;  %v548_v27 = vadd.f32 %v516_v19, %v413_v14  ;;  %v1056_v28 = vunpack.c.l.bf16 %v1170_v16  ;;  %v1057_v30 = vunpack.c.h.bf16 %v1170_v16 }
  0x4c   : > { %v549_v31 = vadd.f32 %v517_v20, %v414_v23  ;;  %v377_v32 = vmul.f32 %v993_v24, %v1263_v0  ;;  %v415_v33 = vadd.f32 %v1277_v10, %v376_v25  ;;  %v996_v34 = vunpack.c.l.bf16 %v1156_v21 }
  0x4d   : > { %v1125_v36 = vpack.c.bf16 %v618_v26, %v617_v22  ;;  %v587_v37 = vadd.f32 %v1294_v29, %v548_v27  ;;  %v518_v38 = vmul.f32 %v1056_v28, %v1268_v1  ;;  %v519_v39 = vmul.f32 %v1057_v30, %v1268_v1 }
  0x4e   : > { %v588_v40 = vadd.f32 %v1294_v29, %v549_v31  ;;  %v416_v41 = vadd.f32 %v1277_v10, %v377_v32  ;;  %v997_v42 = vunpack.c.h.bf16 %v1156_v21  ;;  %v378_v43 = vmul.f32 %v996_v34, %v1263_v0 }
  0x4f   : > { %1183 = vst [vmem:[%s1314_s17 + $0x60] sm:$0xff] %v1125_v36   ;;  %v619_v44 = vmax.f32 %v587_v37, 0.0  ;;  %v550_v45 = vadd.f32 %v518_v38, %v415_v33  ;;  %v1060_v46 = vunpack.c.l.bf16 %v1171_v35  ;;  %v1061_v47 = vunpack.c.h.bf16 %v1171_v35 }
  0x50   : > { %v620_v48 = vmax.f32 %v588_v40, 0.0  ;;  %v551_v49 = vadd.f32 %v519_v39, %v416_v41  ;;  %v379_v50 = vmul.f32 %v997_v42, %v1263_v0  ;;  %v417_v51 = vadd.f32 %v1277_v10, %v378_v43 }
  0x51   : > { %v589_v52 = vadd.f32 %v1294_v29, %v550_v45  ;;  %v520_v53 = vmul.f32 %v1060_v46, %v1268_v1  ;;  %v521_v54 = vmul.f32 %v1061_v47, %v1268_v1 }
  0x52   : > { %v1130_v55 = vpack.c.bf16 %v620_v48, %v619_v44  ;;  %v590_v56 = vadd.f32 %v1294_v29, %v551_v49  ;;  %v418_v57 = vadd.f32 %v1277_v10, %v379_v50 }
  0x53   : > { %v621_v58 = vmax.f32 %v589_v52, 0.0  ;;  %v552_v59 = vadd.f32 %v520_v53, %v417_v51 }
  0x54   : > { %1184 = vst [vmem:[%s1314_s17 + $0x68] sm:$0xff] %v1130_v55   ;;  %v622_v60 = vmax.f32 %v590_v56, 0.0  ;;  %v553_v0 = vadd.f32 %v521_v54, %v418_v57 }
  0x55   : > { %v591_v61 = vadd.f32 %v1294_v29, %v552_v59 }
  0x56   : > { %v1135_v62 = vpack.c.bf16 %v622_v60, %v621_v58  ;;  %v592_v63 = vadd.f32 %v1294_v29, %v553_v0 }
  0x57   : > { %v623_v2 = vmax.f32 %v591_v61, 0.0 }
  0x58   : > { %1185 = vst [vmem:[%s1314_s17 + $0x70] sm:$0xff] %v1135_v62   ;;  %v624_v3 = vmax.f32 %v592_v63, 0.0 }
  0x5a   : > { %v1140_v1 = vpack.c.bf16 %v624_v3, %v623_v2 }
  0x5c   : > { %1186 = vst [vmem:[%s1314_s17 + $0x78] sm:$0xff] %v1140_v1  }
  0x5d PF: > { %s16_s21 = sadd.s32 1, %s1201_s21  }
  0x5e   : > { %p13_p4 = scmp.ge.s32.totalorder %s16_s21, 4  }
  0x60   :  { %15 = sbr.rel (!%p13_p4) target bundleno = 1 (0x1), region = 77 }

// kernel: double_conv_pallas.8
= control target key start
LH: loop header
LB: loop body
LE: loop exit
PB: predicated region body
PF: predicated region fallthrough
CT: control target
= control target key end

     0   :  { %s6086_s21 = smov 0   ;;  %s7233_s0 = inlined_call_operand.vmem [shape: bf16[2,18,18,128], index: 0, kind: input, shape index: {}]   ;;  %s7234_s1 = inlined_call_operand.vmem [shape: bf16[9,128,128], index: 1, kind: input, shape index: {}]   ;;  %s7235_s2 = inlined_call_operand.vmem [shape: bf16[128,128], index: 2, kind: input, shape index: {}]   ;;  %s7236_s3 = inlined_call_operand.vmem [shape: bf16[2,256,128], index: 3, kind: output, shape index: {0}]   ;;  %s7237_s4 = inlined_call_operand.vmem [shape: f32[2,2,128], index: 4, kind: output, shape index: {1}]   ;;  %s7238_s5 = inlined_call_operand.vmem [shape: bf16[2,256,128], index: 5, kind: output, shape index: {2}]   ;;  %s7239_s6 = inlined_call_operand.vmem [shape: f32[2,2,128], index: 6, kind: output, shape index: {3}]  }
   0x1 LB: > { %s4343_s22 = sadd.s32 4294967295, %s6049_s21   ;;  %p4347_p0 = scmp.ge.s32.totalorder %s6049_s21, 1  ;;  %s6049_s21 = sphi %s6086_s21, %s17_s21  }
   0x2   : > { %p219_p1 = scmp.lt.s32.totalorder %s6049_s21, 3 }
   0x4   : > { %p220_p2 = pnand %p4347_p0, %p219_p1 }
   0x6   : > { %223 = sbr.rel (%p220_p2) target bundleno = 601 (0x259), region = 32 }
   0xd   : > { %v5942_v0 = vld [vmem:[%s7234_s1 + $0x40] sm:$0xff]   ;;  %p262_p3 = scmp.lt.s32.totalorder %s4343_s22, 1  ;;  %v5944_v2 = vld [vmem:[%s7234_s1 + $0x48] sm:$0xff]   ;;  %v5946_v4 = vld [vmem:[%s7234_s1 + $0x50] sm:$0xff]   ;;  %vm356_vm0 = vsmask.f32 3328 }
   0xe   : > { %v5943_v1 = vld [vmem:[%s7234_s1 + $0x100] sm:$0xff]   ;;  %5197 = vmatprep.subr.bf16.mxu1 %v5942_v0  ;;  %v5945_v3 = vld [vmem:[%s7234_s1 + $0x108] sm:$0xff]   ;;  %v5947_v5 = vld [vmem:[%s7234_s1 + $0x110] sm:$0xff]   ;;  %vm357_vm1 = vsmask.f32 7440  ;;  %vm1354_vm3 = vcmask 1042432  }
   0xf   : > { %5389 = vmatprep.subr.bf16.mxu0 %v5943_v1  ;;  %5198 = vmatpush3.bf16.msra.mxu1 %v5942_v0  ;;  %s7338_s22 = smov (!%p262_p3, %s4343_s22), 1  ;;  %v5948_v6 = vld [vmem:[%s7234_s1 + $0x58] sm:$0xff]   ;;  %v5950_v8 = vld [vmem:[%s7234_s1 + $0x60] sm:$0xff]   ;;  %v5952_v10 = vld [vmem:[%s7234_s1 + $0x68] sm:$0xff]   ;;  %vm1355_vm4 = vcmask 1046532   ;;  %vm3697_vm6 = vcmask 1040384  }
  0x10   : > { %5390 = vmatpush3.bf16.msra.mxu0 %v5943_v1  ;;  %5199 = vmatprep.subr.bf16.mxu1 %v5944_v2  ;;  %v5949_v7 = vld [vmem:[%s7234_s1 + $0x118] sm:$0xff]   ;;  %s5933_s15 = smul.u32 216, %s7338_s22  ;;  %v5951_v9 = vld [vmem:[%s7234_s1 + $0x120] sm:$0xff]   ;;  %v5953_v11 = vld [vmem:[%s7234_s1 + $0x128] sm:$0xff]   ;;  %s4351_s23 = sshll.u32 %s7338_s22, 1 }
  0x11   : > { %5391 = vmatprep.subr.bf16.mxu0 %v5945_v3  ;;  %v5954_v17 = vld [vmem:[%s7234_s1 + $0x70] sm:$0xff]   ;;  %v5956_v38 = vld [vmem:[%s7234_s1 + $0x78] sm:$0xff]   ;;  %vm6181_vm2 = vmor %vm356_vm0, %vm357_vm1  ;;  %s284_s27 = scalar_lea.vmem %s7239_s6, %s4351_s23  ;;  %s275_s30 = scalar_lea.vmem %s7237_s4, %s4351_s23 }
  0x12   : > { %s6130_s24 = scalar_lea.vmem %s7233_s0, %s5933_s15  ;;  %v5955_v32 = vld [vmem:[%s7234_s1 + $0x130] sm:$0xff]   ;;  %v5957_v53 = vld [vmem:[%s7234_s1 + $0x138] sm:$0xff]   ;;  %vm6572_vm5 = vmor %vm1354_vm3, %vm1355_vm4 }
  0x13   : > { %5200 = vmatpush3.bf16.msra.mxu1 %v5944_v2  ;;  %v6139_v12 = vld [vmem:[%s6130_s24] sm:$0xf]  ;;  %v6142_v13 = vld [vmem:[%s6130_s24 + $0x4] sm:$0xf]  ;;  %v288_v14 = vld [vmem:[%s6130_s24 + $0x8] sm:$0x1] }
  0x14   : > { %5392 = vmatpush3.bf16.msra.mxu0 %v5945_v3  ;;  %5201 = vmatprep.subr.bf16.mxu1 %v5946_v4  ;;  %v360_v15 = vshrl.u32 %v6139_v12, 16  ;;  %v363_v16 = vshll.u32 %v6139_v12, 16  ;;  %v369_v18 = vshll.u32 %v6142_v13, 16  ;;  %v373_v19 = vshrl.u32 %v6142_v13, 16  ;;  %v6153_v21 = vld [vmem:[%s6130_s24 + $0xc] sm:$0xf] }
  0x15   : > { %5393 = vmatprep.subr.bf16.mxu0 %v5947_v5  ;;  %v379_v20 = vshll.u32 %v288_v14, 16  ;;  %v6156_v24 = vld [vmem:[%s6130_s24 + $0x10] sm:$0xf]  ;;  %v6159_v25 = vld [vmem:[%s6130_s24 + $0x14] sm:$0x1]  ;;  %v384_v30 = vshrl.u32 %v6153_v21, 16 }
  0x16   : > { %v362_v22 = vrot.slane %v360_v15, 4  ;;  %v365_v23 = vrot.slane %v363_v16, 5  ;;  %v371_v27 = vrot.slane %v369_v18, 5  ;;  %v375_v28 = vrot.slane %v373_v19, 4  ;;  %v6165_v31 = vld [vmem:[%s6130_s24 + $0x18] sm:$0xf] }
  0x17   : > { %5202 = vmatpush3.bf16.msra.mxu1 %v5946_v4  ;;  %v381_v29 = vrot.slane %v379_v20, 5  ;;  %v387_v34 = vshll.u32 %v6153_v21, 16  ;;  %v393_v35 = vshll.u32 %v6156_v24, 16  ;;  %v397_v36 = vshrl.u32 %v6156_v24, 16  ;;  %v6174_v37 = vld [vmem:[%s6130_s24 + $0x1c] sm:$0xf] }
  0x18   : > { %5394 = vmatpush3.bf16.msra.mxu0 %v5947_v5  ;;  %5203 = vmatprep.subr.bf16.mxu1 %v5948_v6  ;;  %v366_v33 = vor.u32 %v365_v23, %v362_v22  ;;  %v376_v40 = vor.u32 %v375_v28, %v371_v27  ;;  %v386_v41 = vrot.slane %v384_v30, 4  ;;  %v403_v42 = vshll.u32 %v6159_v25, 16  ;;  %v6187_v43 = vld [vmem:[%s6130_s24 + $0x20] sm:$0x1]  ;;  %v6202_v62 = vld [vmem:[%s6130_s24 + $0x24] sm:$0xf] }
  0x19   : > { %5395 = vmatprep.subr.bf16.mxu0 %v5949_v7  ;;  %v408_v44 = vshrl.u32 %v6165_v31, 16  ;;  %v389_v46 = vrot.slane %v387_v34, 5  ;;  %v395_v47 = vrot.slane %v393_v35, 5  ;;  %v399_v48 = vrot.slane %v397_v36, 4  ;;  %v6205_v3 = vld [vmem:[%s6130_s24 + $0x28] sm:$0xf] }
  0x1a   : > { %v367_v45 = vrot.slane %v366_v33, 4  ;;  %v377_v49 = vrot.slane %v376_v40, 4  ;;  %v405_v50 = vrot.slane %v403_v42, 5  ;;  %v411_v52 = vshll.u32 %v6165_v31, 16  ;;  %v5959_v14 = vld [vmem:[%s7234_s1] sm:$0xff]  }
  0x1b   : > { %5204 = vmatpush3.bf16.msra.mxu1 %v5948_v6  ;;  %v410_v51 = vrot.slane %v408_v44, 4  ;;  %v390_v55 = vor.u32 %v389_v46, %v386_v41  ;;  %v400_v56 = vor.u32 %v399_v48, %v395_v47  ;;  %v417_v57 = vshll.u32 %v6174_v37, 16  ;;  %v6230_v23 = vld [vmem:[%s6130_s24 + $0x34] sm:$0xf]  ;;  %v6422_v26 = vld [vmem:[%s6130_s24 + $0x88] sm:$0xf] }
  0x1c   : > { %5396 = vmatpush3.bf16.msra.mxu0 %v5949_v7  ;;  %5205 = vmatprep.subr.bf16.mxu1 %v5950_v8  ;;  %v372_v54 = vsel %vm6181_vm2, %v367_v45, %v371_v27  ;;  %v382_v58 = vsel %vm6181_vm2, %v377_v49, %v381_v29  ;;  %v413_v59 = vrot.slane %v411_v52, 5  ;;  %v421_v60 = vshrl.u32 %v6174_v37, 16  ;;  %v6251_v49 = vld [vmem:[%s6130_s24 + $0x3c] sm:$0xf]  ;;  %7292 = vst [vmem:[#allocation9_spill] sm:$0xff] %v6422_v26 }
  0x1d   : > { %5397 = vmatprep.subr.bf16.mxu0 %v5951_v9  ;;  %v427_v61 = vshll.u32 %v6187_v43, 16  ;;  %v4371_v63 = vcombine.low %v372_v54, %v382_v58  ;;  %v391_v0 = vrot.slane %v390_v55, 4  ;;  %v401_v1 = vrot.slane %v400_v56, 4  ;;  %v5960_v54 = vld [vmem:[%s7234_s1 + $0x148] sm:$0xff]   ;;  %v6259_v55 = vld [vmem:[%s6130_s24 + $0x40] sm:$0xf] }
  0x1e   : > { %v419_v2 = vrot.slane %v417_v57, 5  ;;  %v414_v4 = vor.u32 %v413_v59, %v410_v51  ;;  %v423_v5 = vrot.slane %v421_v60, 4  ;;  %v432_v15 = vshrl.u32 %v6202_v62, 16  ;;  %v5963_v56 = vld [vmem:[%s7234_s1 + $0x10] sm:$0xff]   ;;  %v6266_v60 = vld [vmem:[%s6130_s24 + $0x44] sm:$0x1] }
  0x1f   : > { %5206 = vmatpush3.bf16.msra.mxu1 %v5950_v8  ;;  %v429_v6 = vrot.slane %v427_v61, 5  ;;  %v6209_v8 = vld [vmem:[%s6130_s24 + $0x2c] sm:$0x1]  ;;  %5213 = vmatprep.mubr.bf16.mxu1 %v4371_v63  ;;  %v435_v16 = vshll.u32 %v6202_v62, 16  ;;  %v441_v22 = vshll.u32 %v6205_v3, 16  ;;  %v445_v29 = vshrl.u32 %v6205_v3, 16 }
  0x20   : > { %5398 = vmatpush3.bf16.msra.mxu0 %v5951_v9  ;;  %5207 = vmatprep.subr.bf16.mxu1 %v5952_v10  ;;  %v396_v9 = vsel %vm6181_vm2, %v391_v0, %v395_v47  ;;  %v415_v19 = vrot.slane %v414_v4, 4  ;;  %v424_v20 = vor.u32 %v423_v5, %v419_v2  ;;  %v434_v27 = vrot.slane %v432_v15, 4  ;;  %v6275_v4 = vld [vmem:[%s6130_s24 + $0x48] sm:$0xf]  ;;  %v6278_v5 = vld [vmem:[%s6130_s24 + $0x4c] sm:$0xf] }
  0x21   : > { %5399 = vmatprep.subr.bf16.mxu0 %v5953_v11  ;;  %v437_v28 = vrot.slane %v435_v16, 5  ;;  %v451_v30 = vshll.u32 %v6209_v8, 16  ;;  %v443_v35 = vrot.slane %v441_v22, 5  ;;  %v447_v41 = vrot.slane %v445_v29, 4  ;;  %v5962_v22 = vld [vmem:[%s7234_s1 + $0x150] sm:$0xff]  }
  0x22   : > { %v420_v33 = vsel %vm6181_vm2, %v415_v19, %v419_v2  ;;  %v425_v34 = vrot.slane %v424_v20, 4  ;;  %v465_v47 = vshll.u32 %v6230_v23, 16  ;;  %v469_v48 = vshrl.u32 %v6230_v23, 16 }
  0x23   : > { %5208 = vmatpush3.bf16.msra.mxu1 %v5952_v10  ;;  %v406_v10 = vsel %vm6181_vm2, %v401_v1, %v405_v50  ;;  %v438_v40 = vor.u32 %v437_v28, %v434_v27  ;;  %v453_v42 = vrot.slane %v451_v30, 5  ;;  %v448_v52 = vor.u32 %v447_v41, %v443_v35  ;;  %v5965_v30 = vld [vmem:[%s7234_s1 + $0x18] sm:$0xff]  }
  0x24   : > { %5400 = vmatpush3.bf16.msra.mxu0 %v5953_v11  ;;  %5209 = vmatprep.subr.bf16.mxu1 %v5954_v17  ;;  %v5958_v11 = vld [vmem:[%s7234_s1 + $0x140] sm:$0xff]   ;;  %v6226_v18 = vcombine.low %v396_v9, %v406_v10  ;;  %v430_v45 = vsel %vm6181_vm2, %v425_v34, %v429_v6  ;;  %v467_v57 = vrot.slane %v465_v47, 5  ;;  %v471_v58 = vrot.slane %v469_v48, 4 }
  0x25   : > { %5401 = vmatprep.subr.bf16.mxu0 %v5955_v32  ;;  %v6253_v50 = vcombine.low %v420_v33, %v430_v45  ;;  %v439_v51 = vrot.slane %v438_v40, 4  ;;  %v480_v61 = vshrl.u32 %v6251_v49, 16  ;;  %v449_v0 = vrot.slane %v448_v52, 4  ;;  %v6306_v45 = vld [vmem:[%s6130_s24 + $0x54] sm:$0xf] }
  0x26   : > { %7285 = vst [vmem:[#allocation2_spill] sm:$0xff] %v6226_v18  ;;  %5405 = vmatprep.mubr.bf16.mxu0 %v6226_v18  ;;  %v483_v2 = vshll.u32 %v6251_v49, 16  ;;  %v472_v6 = vor.u32 %v471_v58, %v467_v57  ;;  %v493_v20 = vshrl.u32 %v6259_v55, 16  ;;  %v499_v29 = vshll.u32 %v6266_v60, 16  ;;  %v6311_v52 = vld [vmem:[%s6130_s24 + $0x58] sm:$0xf] }
  0x27   : > { %5210 = vmatpush3.bf16.msra.mxu1 %v5954_v17  ;;  %v6224_v17 = vld [vmem:[%s6130_s24 + $0x30] sm:$0xf]  ;;  %7286 = vst [vmem:[#allocation3_spill] sm:$0xff] %v6253_v50  ;;  %v444_v63 = vsel %vm6181_vm2, %v439_v51, %v443_v35  ;;  %v482_v10 = vrot.slane %v480_v61, 4  ;;  %v454_v15 = vsel %vm6181_vm2, %v449_v0, %v453_v42  ;;  %v507_v42 = vshll.u32 %v6275_v4, 16 }
  0x28   : > { %5402 = vmatpush3.bf16.msra.mxu0 %v5955_v32  ;;  %5211 = vmatprep.subr.bf16.mxu1 %v5956_v38  ;;  %v6235_v32 = vld [vmem:[%s6130_s24 + $0x38] sm:$0x1]  ;;  %v456_v36 = vshrl.u32 %v6224_v17, 16  ;;  %v459_v44 = vshll.u32 %v6224_v17, 16  ;;  %v485_v19 = vrot.slane %v483_v2, 5  ;;  %v473_v27 = vrot.slane %v472_v6, 4 }
  0x29   : > { %5403 = vmatprep.subr.bf16.mxu0 %v5957_v53  ;;  %v475_v59 = vshll.u32 %v6235_v32, 16  ;;  %v495_v35 = vrot.slane %v493_v20, 4  ;;  %v501_v41 = vrot.slane %v499_v29, 5  ;;  %v509_v58 = vrot.slane %v507_v42, 5 }
  0x2a   : > { %v458_v46 = vrot.slane %v456_v36, 4  ;;  %v486_v34 = vor.u32 %v485_v19, %v482_v10  ;;  %v6296_v36 = vld [vmem:[%s6130_s24 + $0x50] sm:$0x1]  ;;  %v517_v61 = vshrl.u32 %v6278_v5, 16  ;;  %v528_v2 = vshrl.u32 %v6306_v45, 16  ;;  %v5966_v19 = vld [vmem:[%s7234_s1 + $0x160] sm:$0xff]  }
  0x2b   : > { %5212 = vmatpush3.bf16.msra.mxu1 %v5956_v38  ;;  %v5961_v38 = vld [vmem:[%s7234_s1 + $0x8] sm:$0xff]   ;;  %v477_v9 = vrot.slane %v475_v59, 5  ;;  %v531_v6 = vshll.u32 %v6306_v45, 16  ;;  %v541_v29 = vshrl.u32 %v6311_v52, 16 }
  0x2c   : > { %5404 = vmatpush3.bf16.msra.mxu0 %v5957_v53  ;;  %5245 = vmatprep.subr.bf16.mxu1 %v5959_v14  ;;  %v461_v53 = vrot.slane %v459_v44, 5  ;;  %v513_v44 = vshll.u32 %v6278_v5, 16  ;;  %v487_v47 = vrot.slane %v486_v34, 4 }
  0x2d   : > { %5437 = vmatprep.subr.bf16.mxu0 %v5958_v11  ;;  %v478_v40 = vsel %vm6181_vm2, %v473_v27, %v477_v9  ;;  %v6334_v9 = vld [vmem:[%s6130_s24 + $0x64] sm:$0xf]  ;;  %v530_v27 = vrot.slane %v528_v2, 4  ;;  %v6360_v2 = vld [vmem:[%s6130_s24 + $0x6c] sm:$0xf] }
  0x2e   : > { %5214 = vmatmul.mubr.bf16.vlgmr.msra.gmra.mrb[0].mxu1 %v6226_v18  ;;  %v462_v1 = vor.u32 %v461_v53, %v458_v46  ;;  %v5964_v53 = vld [vmem:[%s7234_s1 + $0x158] sm:$0xff]   ;;  %v515_v59 = vrot.slane %v513_v44, 5 }
  0x2f   : > { %5246 = vmatpush3.bf16.msra.mxu1 %v5959_v14  ;;  %5406 = vmatmul.mubr.bf16.vlgmr.msra.gmra.mrb[0].mxu0 %v6253_v50  ;;  %v489_v14 = vshll.u32 %v6259_v55, 16 }
  0x30   : > { %5247 = vmatprep.subr.bf16.mxu1 %v5961_v38  ;;  %5217 = vmatprep.mubr.bf16.mxu1 %v6253_v50  ;;  %v463_v16 = vrot.slane %v462_v1, 4 }
  0x31   : > { %5438 = vmatpush3.bf16.msra.mxu0 %v5958_v11  ;;  %v6287_v11 = vcombine.low %v444_v63, %v454_v15  ;;  %v491_v28 = vrot.slane %v489_v14, 5  ;;  %v6322_v63 = vld [vmem:[%s6130_s24 + $0x5c] sm:$0x1]  ;;  %v519_v14 = vrot.slane %v517_v61, 4 }
  0x32   : > { %5439 = vmatprep.subr.bf16.mxu0 %v5960_v54  ;;  %v468_v33 = vsel %vm6181_vm2, %v463_v16, %v467_v57  ;;  %v5967_v57 = vld [vmem:[%s7234_s1 + $0x20] sm:$0xff]   ;;  %v537_v16 = vshll.u32 %v6311_v52, 16 }
  0x33   : > { %5248 = vmatpush3.bf16.msra.mxu1 %v5961_v38  ;;  %7287 = vst [vmem:[#allocation4_spill] sm:$0xff] %v6287_v11  ;;  %v504_v38 = vshrl.u32 %v6275_v4, 16  ;;  %5409 = vmatprep.mubr.bf16.mxu0 %v6287_v11  ;;  %v6308_v46 = vcombine.low %v468_v33, %v478_v40  ;;  %v496_v48 = vor.u32 %v495_v35, %v491_v28  ;;  %v5969_v33 = vld [vmem:[%s7234_s1 + $0x28] sm:$0xff]  }
  0x34   : > { %5249 = vmatprep.subr.bf16.mxu1 %v5963_v56  ;;  %v492_v0 = vsel %vm6181_vm2, %v487_v47, %v491_v28  ;;  %v533_v28 = vrot.slane %v531_v6, 5  ;;  %v539_v40 = vrot.slane %v537_v16, 5  ;;  %v565_v16 = vshrl.u32 %v6334_v9, 16 }
  0x35   : > { %7288 = vst [vmem:[#allocation5_spill] sm:$0xff] %v6308_v46  ;;  %5440 = vmatpush3.bf16.msra.mxu0 %v5960_v54  ;;  %v506_v51 = vrot.slane %v504_v38, 4  ;;  %v523_v54 = vshll.u32 %v6296_v36, 16  ;;  %v497_v1 = vrot.slane %v496_v48, 4  ;;  %v520_v38 = vor.u32 %v519_v14, %v515_v59  ;;  %v6355_v48 = vld [vmem:[%s6130_s24 + $0x68] sm:$0x1] }
  0x36   : > { %5218 = vmatmul.mubr.bf16.gmra.mrb[4].mxu1 %v6287_v11  ;;  %5441 = vmatprep.subr.bf16.mxu0 %v5962_v22  ;;  %v534_v42 = vor.u32 %v533_v28, %v530_v27  ;;  %v6485_v11 = vld [vmem:[%s6130_s24 + $0xa4] sm:$0x1] }
  0x37   : > { %5250 = vmatpush3.bf16.msra.mxu1 %v5963_v56  ;;  %v6325_v56 = vld [vmem:[%s6130_s24 + $0x60] sm:$0xf]  ;;  %5410 = vmatmul.mubr.bf16.gmra.mrb[4].mxu0 %v6308_v46  ;;  %v510_v10 = vor.u32 %v509_v58, %v506_v51  ;;  %v525_v15 = vrot.slane %v523_v54, 5  ;;  %v502_v20 = vsel %vm6181_vm2, %v497_v1, %v501_v41  ;;  %v547_v41 = vshll.u32 %v6322_v63, 16  ;;  %7302 = vst [vmem:[#allocation19_spill] sm:$0xff] %v6485_v11 }
  0x38   : > { %5251 = vmatprep.subr.bf16.mxu1 %v5965_v30  ;;  %5221 = vmatprep.mubr.bf16.mxu1 %v6308_v46  ;;  %v6346_v34 = vcombine.low %v492_v0, %v502_v20  ;;  %v552_v44 = vshrl.u32 %v6325_v56, 16  ;;  %v521_v47 = vrot.slane %v520_v38, 4  ;;  %v555_v51 = vshll.u32 %v6325_v56, 16  ;;  %v6369_v20 = vld [vmem:[%s6130_s24 + $0x70] sm:$0xf] }
  0x39   : > { %5442 = vmatpush3.bf16.msra.mxu0 %v5962_v22  ;;  %v511_v35 = vrot.slane %v510_v10, 4  ;;  %v543_v22 = vrot.slane %v541_v29, 4  ;;  %v561_v58 = vshll.u32 %v6334_v9, 16  ;;  %v535_v61 = vrot.slane %v534_v42, 4  ;;  %v6380_v29 = vld [vmem:[%s6130_s24 + $0x74] sm:$0x1] }
  0x3a   : > { %7289 = vst [vmem:[#allocation6_spill] sm:$0xff] %v6346_v34  ;;  %5443 = vmatprep.subr.bf16.mxu0 %v5964_v53  ;;  %5413 = vmatprep.mubr.bf16.mxu0 %v6346_v34  ;;  %v549_v0 = vrot.slane %v547_v41, 5  ;;  %v554_v1 = vrot.slane %v552_v44, 4  ;;  %v526_v6 = vsel %vm6181_vm2, %v521_v47, %v525_v15  ;;  %v557_v10 = vrot.slane %v555_v51, 5  ;;  %v6388_v44 = vld [vmem:[%s6130_s24 + $0x7c] sm:$0xf] }
  0x3b   : > { %5252 = vmatpush3.bf16.msra.mxu1 %v5965_v30  ;;  %v516_v30 = vsel %vm6181_vm2, %v511_v35, %v515_v59  ;;  %v544_v54 = vor.u32 %v543_v22, %v539_v40  ;;  %v5968_v59 = vld [vmem:[%s7234_s1 + $0x168] sm:$0xff]   ;;  %v563_v14 = vrot.slane %v561_v58, 5  ;;  %v540_v27 = vsel %vm6181_vm2, %v535_v61, %v539_v40  ;;  %v6383_v35 = vld [vmem:[%s6130_s24 + $0x78] sm:$0xf] }
  0x3c   : > { %5253 = vmatprep.subr.bf16.mxu1 %v5967_v57  ;;  %v571_v15 = vshll.u32 %v6355_v48, 16  ;;  %v558_v38 = vor.u32 %v557_v10, %v554_v1  ;;  %v567_v42 = vrot.slane %v565_v16, 4  ;;  %v576_v22 = vshrl.u32 %v6360_v2, 16 }
  0x3d   : > { %5444 = vmatpush3.bf16.msra.mxu0 %v5964_v53  ;;  %v5971_v53 = vld [vmem:[%s7234_s1 + $0x30] sm:$0xff]   ;;  %v545_v28 = vrot.slane %v544_v54, 4  ;;  %v579_v41 = vshll.u32 %v6360_v2, 16  ;;  %v585_v47 = vshll.u32 %v6369_v20, 16  ;;  %v589_v51 = vshrl.u32 %v6369_v20, 16 }
  0x3e   : > { %5222 = vmatmul.mubr.bf16.gmra.mrb[8].mxu1 %v6346_v34  ;;  %5445 = vmatprep.subr.bf16.mxu0 %v5966_v19  ;;  %v559_v61 = vrot.slane %v558_v38, 4  ;;  %v568_v54 = vor.u32 %v567_v42, %v563_v14  ;;  %v578_v1 = vrot.slane %v576_v22, 4  ;;  %v595_v7 = vshll.u32 %v6380_v29, 16 }
  0x3f   : > { %5254 = vmatpush3.bf16.msra.mxu1 %v5967_v57  ;;  %v6374_v57 = vcombine.low %v516_v30, %v526_v6  ;;  %v550_v40 = vsel %vm6181_vm2, %v545_v28, %v549_v0  ;;  %v573_v30 = vrot.slane %v571_v15, 5  ;;  %v581_v6 = vrot.slane %v579_v41, 5  ;;  %v5970_v0 = vld [vmem:[%s7234_s1 + $0x170] sm:$0xff]   ;;  %v6412_v41 = vld [vmem:[%s6130_s24 + $0x80] sm:$0x1] }
  0x40   : > { %5255 = vmatprep.subr.bf16.mxu1 %v5969_v33  ;;  %v6396_v58 = vcombine.low %v540_v27, %v550_v40  ;;  %v587_v10 = vrot.slane %v585_v47, 5  ;;  %v591_v16 = vrot.slane %v589_v51, 4  ;;  %v5973_v27 = vld [vmem:[%s7234_s1 + $0x38] sm:$0xff]   ;;  %v600_v28 = vshrl.u32 %v6383_v35, 16  ;;  %v6416_v47 = vld [vmem:[%s6130_s24 + $0x84] sm:$0xf] }
  0x41   : > { %7290 = vst [vmem:[#allocation7_spill] sm:$0xff] %v6374_v57  ;;  %5414 = vmatmul.mubr.bf16.gmra.mrb[8].mxu0 %v6374_v57  ;;  %5225 = vmatprep.mubr.bf16.mxu1 %v6374_v57  ;;  %v603_v15 = vshll.u32 %v6383_v35, 16  ;;  %v582_v38 = vor.u32 %v581_v6, %v578_v1  ;;  %v597_v22 = vrot.slane %v595_v7, 5  ;;  %v609_v40 = vshll.u32 %v6388_v44, 16  ;;  %v5972_v7 = vld [vmem:[%s7234_s1 + $0x178] sm:$0xff]  }
  0x42   : > { %7291 = vst [vmem:[#allocation8_spill] sm:$0xff] %v6396_v58  ;;  %5446 = vmatpush3.bf16.msra.mxu0 %v5966_v19  ;;  %5417 = vmatprep.mubr.bf16.mxu0 %v6396_v58  ;;  %v564_v19 = vsel %vm6181_vm2, %v559_v61, %v563_v14  ;;  %v592_v42 = vor.u32 %v591_v16, %v587_v10  ;;  %v602_v14 = vrot.slane %v600_v28, 4  ;;  %v624_v28 = vshrl.u32 %v6416_v47, 16  ;;  %v6453_v57 = vld [vmem:[%s6130_s24 + $0x94] sm:$0xf] }
  0x43   : > { %5256 = vmatpush3.bf16.msra.mxu1 %v5969_v33  ;;  %5447 = vmatprep.subr.bf16.mxu0 %v5968_v59  ;;  %v569_v33 = vrot.slane %v568_v54, 4  ;;  %v605_v61 = vrot.slane %v603_v15, 5  ;;  %v613_v54 = vshrl.u32 %v6388_v44, 16  ;;  %v583_v6 = vrot.slane %v582_v38, 4  ;;  %7297 = vst [vmem:[#allocation14_spill] sm:$0xff] %v6453_v57 }
  0x44   : > { %5257 = vmatprep.subr.bf16.mxu1 %v5971_v53  ;;  %v593_v16 = vrot.slane %v592_v42, 4  ;;  %v611_v18 = vrot.slane %v609_v40, 5  ;;  %v627_v42 = vshll.u32 %v6416_v47, 16  ;;  %v633_v40 = vshll.u32 %v6422_v26, 16 }
  0x45   : > { %v574_v51 = vsel %vm6181_vm2, %v569_v33, %v573_v30  ;;  %v6433_v30 = vld [vmem:[%s6130_s24 + $0x90] sm:$0xf]  ;;  %v615_v33 = vrot.slane %v613_v54, 4  ;;  %v588_v15 = vsel %vm6181_vm2, %v583_v6, %v587_v10  ;;  %v6459_v6 = vld [vmem:[%s7234_s1 + $0x180] sm:$0xff]  }
  0x46   : > { %5226 = vmatmul.mubr.bf16.gmra.mrb[12].mxu1 %v6396_v58  ;;  %5448 = vmatpush3.bf16.msra.mxu0 %v5968_v59  ;;  %v6427_v1 = vcombine.low %v564_v19, %v574_v51  ;;  %v6430_v58 = vld [vmem:[%s6130_s24 + $0x8c] sm:$0x1]  ;;  %7295 = vst [vmem:[#allocation12_spill] sm:$0xff] %v6433_v30  ;;  %v6438_v59 = vld [vmem:[%s7234_s1 + $0x80] sm:$0xff]   ;;  %v619_v19 = vshll.u32 %v6412_v41, 16  ;;  %v598_v38 = vsel %vm6181_vm2, %v593_v16, %v597_v22  ;;  %v629_v34 = vrot.slane %v627_v42, 5 }
  0x47   : > { %5258 = vmatpush3.bf16.msra.mxu1 %v5971_v53  ;;  %7294 = vst [vmem:[#allocation11_spill] sm:$0xff] %v6430_v58  ;;  %5449 = vmatprep.subr.bf16.mxu0 %v5970_v0  ;;  %v606_v53 = vor.u32 %v605_v61, %v602_v14  ;;  %v6450_v51 = vcombine.low %v588_v15, %v598_v38  ;;  %v635_v10 = vrot.slane %v633_v40, 5  ;;  %v637_v22 = vshrl.u32 %v6422_v26, 16  ;;  %v6474_v42 = vld [vmem:[%s6130_s24 + $0x9c] sm:$0xf] }
  0x48   : > { %7293 = vst [vmem:[#allocation10_spill] sm:$0xff] %v6427_v1  ;;  %5259 = vmatprep.subr.bf16.mxu1 %v5973_v27  ;;  %5229 = vmatprep.mubr.bf16.mxu1 %v6427_v1  ;;  %v616_v61 = vor.u32 %v615_v33, %v611_v18  ;;  %v621_v54 = vrot.slane %v619_v19, 5  ;;  %v643_v16 = vshll.u32 %v6430_v58, 16  ;;  %v648_v33 = vshrl.u32 %v6433_v30, 16  ;;  %7299 = vst [vmem:[#allocation16_spill] sm:$0xff] %v6474_v42 }
  0x49   : > { %5418 = vmatmul.mubr.bf16.gmra.mrb[12].mxu0 %v6427_v1  ;;  %7296 = vst [vmem:[#allocation13_spill] sm:$0xff] %v6450_v51  ;;  %v607_v14 = vrot.slane %v606_v53, 4  ;;  %v626_v1 = vrot.slane %v624_v28, 4  ;;  %v6468_v53 = vld [vmem:[%s6130_s24 + $0x98] sm:$0x1]  ;;  %v639_v28 = vrot.slane %v637_v22, 4 }
  0x4a   : > { %5450 = vmatpush3.bf16.msra.mxu0 %v5970_v0  ;;  %5421 = vmatprep.mubr.bf16.mxu0 %v6450_v51  ;;  %7298 = vst [vmem:[#allocation15_spill] sm:$0xff] %v6468_v53  ;;  %v651_v15 = vshll.u32 %v6433_v30, 16  ;;  %v657_v38 = vshll.u32 %v6453_v57, 16 }
  0x4b   : > { %5260 = vmatpush3.bf16.msra.mxu1 %v5973_v27  ;;  %5451 = vmatprep.subr.bf16.mxu0 %v5972_v7  ;;  %v612_v0 = vsel %vm6181_vm2, %v607_v14, %v611_v18  ;;  %v617_v27 = vrot.slane %v616_v61, 4  ;;  %v630_v19 = vor.u32 %v629_v34, %v626_v1  ;;  %v645_v18 = vrot.slane %v643_v16, 5 }
  0x4c   : > { %5293 = vmatprep.subr.bf16.mxu1 %v6438_v59  ;;  %v650_v14 = vrot.slane %v648_v33, 4  ;;  %v661_v61 = vshrl.u32 %v6453_v57, 16  ;;  %v640_v1 = vor.u32 %v639_v28, %v635_v10  ;;  %v653_v22 = vrot.slane %v651_v15, 5  ;;  %v6511_v57 = vld [vmem:[%s6130_s24 + $0xb0] sm:$0x1] }
  0x4d   : > { %v622_v40 = vsel %vm6181_vm2, %v617_v27, %v621_v54  ;;  %v631_v34 = vrot.slane %v630_v19, 4  ;;  %v659_v50 = vrot.slane %v657_v38, 5  ;;  %v667_v54 = vshll.u32 %v6468_v53, 16  ;;  %7306 = vst [vmem:[#allocation23_spill] sm:$0xff] %v6511_v57 }
  0x4e   : > { %5230 = vmatmul.mubr.bf16.gmra.mrb[16].mxu1 %v6450_v51  ;;  %v6480_v51 = vld [vmem:[%s6130_s24 + $0xa0] sm:$0xf]  ;;  %5452 = vmatpush3.bf16.msra.mxu0 %v5972_v7  ;;  %v6482_v46 = vcombine.low %v612_v0, %v622_v40  ;;  %v663_v30 = vrot.slane %v661_v61, 4  ;;  %v672_v27 = vshrl.u32 %v6474_v42, 16  ;;  %v641_v0 = vrot.slane %v640_v1, 4 }
  0x4f   : > { %7300 = vst [vmem:[#allocation17_spill] sm:$0xff] %v6480_v51  ;;  %5485 = vmatprep.subr.bf16.mxu0 %v6459_v6  ;;  %v636_v7 = vsel %vm6181_vm2, %v631_v34, %v635_v10  ;;  %v654_v16 = vor.u32 %v653_v22, %v650_v14  ;;  %v675_v33 = vshll.u32 %v6474_v42, 16  ;;  %v669_v28 = vrot.slane %v667_v54, 5  ;;  %v6497_v40 = vld [vmem:[%s6130_s24 + $0xa8] sm:$0xf] }
  0x50   : > { %7301 = vst [vmem:[#allocation18_spill] sm:$0xff] %v6482_v46  ;;  %5233 = vmatprep.mubr.bf16.mxu1 %v6482_v46  ;;  %v664_v19 = vor.u32 %v663_v30, %v659_v50  ;;  %v674_v15 = vrot.slane %v672_v27, 4  ;;  %v681_v38 = vshll.u32 %v6480_v51, 16  ;;  %7303 = vst [vmem:[#allocation20_spill] sm:$0xff] %v6497_v40  ;;  %v646_v61 = vsel %vm6181_vm2, %v641_v0, %v645_v18  ;;  %v6503_v34 = vld [vmem:[%s6130_s24 + $0xac] sm:$0xf] }
  0x51   : > { %5422 = vmatmul.mubr.bf16.gmra.mrb[16].mxu0 %v6482_v46  ;;  %v655_v46 = vrot.slane %v654_v16, 4  ;;  %v677_v53 = vrot.slane %v675_v33, 5  ;;  %v685_v10 = vshrl.u32 %v6480_v51, 16  ;;  %7304 = vst [vmem:[#allocation21_spill] sm:$0xff] %v6503_v34  ;;  %v6505_v14 = vcombine.low %v636_v7, %v646_v61  ;;  %v6515_v0 = vld [vmem:[%s6130_s24 + $0xb4] sm:$0xf] }
  0x52   : > { %v665_v30 = vrot.slane %v664_v19, 4  ;;  %v683_v1 = vrot.slane %v681_v38, 5  ;;  %v691_v22 = vshll.u32 %v6485_v11, 16  ;;  %v696_v18 = vshrl.u32 %v6497_v40, 16  ;;  %7307 = vst [vmem:[#allocation24_spill] sm:$0xff] %v6515_v0 }
  0x53   : > { %7305 = vst [vmem:[#allocation22_spill] sm:$0xff] %v6505_v14  ;;  %v660_v54 = vsel %vm6181_vm2, %v655_v46, %v659_v50  ;;  %v678_v27 = vor.u32 %v677_v53, %v674_v15  ;;  %v687_v42 = vrot.slane %v685_v10, 4  ;;  %5425 = vmatprep.mubr.bf16.mxu0 %v6505_v14  ;;  %v699_v50 = vshll.u32 %v6497_v40, 16  ;;  %v6524_v53 = vld [vmem:[%s6130_s24 + $0xb8] sm:$0xf] }
  0x54   : > { %v670_v7 = vsel %vm6181_vm2, %v665_v30, %v669_v28  ;;  %v693_v16 = vrot.slane %v691_v22, 5  ;;  %v705_v46 = vshll.u32 %v6503_v34, 16  ;;  %v698_v38 = vrot.slane %v696_v18, 4  ;;  %v6531_v22 = vld [vmem:[%s6130_s24 + $0xbc] sm:$0x1] }
  0x55   : > { %v6526_v33 = vcombine.low %v660_v54, %v670_v7  ;;  %v679_v19 = vrot.slane %v678_v27, 4  ;;  %v688_v15 = vor.u32 %v687_v42, %v683_v1  ;;  %v701_v61 = vrot.slane %v699_v50, 5  ;;  %v6543_v7 = vld [vmem:[%s6130_s24 + $0xc4] sm:$0xf] }
  0x56   : > { %5234 = vmatmul.mubr.bf16.gmra.mrb[20].mxu1 %v6505_v14  ;;  %v707_v10 = vrot.slane %v705_v46, 5  ;;  %v709_v28 = vshrl.u32 %v6503_v34, 16  ;;  %v715_v30 = vshll.u32 %v6511_v57, 16  ;;  %v6534_v14 = vld [vmem:[%s6130_s24 + $0xc0] sm:$0xf]  ;;  %v720_v42 = vshrl.u32 %v6515_v0, 16 }
  0x57   : > { %7308 = vst [vmem:[#allocation25_spill] sm:$0xff] %v6526_v33  ;;  %5237 = vmatprep.mubr.bf16.mxu1 %v6526_v33  ;;  %v684_v54 = vsel %vm6181_vm2, %v679_v19, %v683_v1  ;;  %v689_v27 = vrot.slane %v688_v15, 4  ;;  %v723_v18 = vshll.u32 %v6515_v0, 16  ;;  %v702_v50 = vor.u32 %v701_v61, %v698_v38  ;;  %v6552_v0 = vld [vmem:[%s6130_s24 + $0xc8] sm:$0x1] }
  0x58   : > { %v711_v46 = vrot.slane %v709_v28, 4  ;;  %v717_v57 = vrot.slane %v715_v30, 5  ;;  %v729_v34 = vshll.u32 %v6524_v53, 16  ;;  %v733_v1 = vshrl.u32 %v6524_v53, 16 }
  0x59   : > { %5426 = vmatmul.mubr.bf16.gmra.mrb[20].mxu0 %v6526_v33  ;;  %v694_v40 = vsel %vm6181_vm2, %v689_v27, %v693_v16  ;;  %v722_v33 = vrot.slane %v720_v42, 4  ;;  %v725_v11 = vrot.slane %v723_v18, 5  ;;  %v703_v15 = vrot.slane %v702_v50, 4 }
  0x5a   : > { %v6549_v19 = vcombine.low %v684_v54, %v694_v40  ;;  %v712_v51 = vor.u32 %v711_v46, %v707_v10  ;;  %v731_v58 = vrot.slane %v729_v34, 5  ;;  %v735_v38 = vrot.slane %v733_v1, 4 }
  0x5b   : > { %v726_v26 = vor.u32 %v725_v11, %v722_v33  ;;  %v739_v61 = vshll.u32 %v6531_v22, 16  ;;  %v2056_v28 = vshrl.u32 %v6534_v14, 16  ;;  %v708_v16 = vsel %vm6181_vm2, %v703_v15, %v707_v10 }
  0x5c   : > { %5429 = vmatprep.mubr.bf16.mxu0 %v6549_v19  ;;  %v713_v40 = vrot.slane %v712_v51, 4  ;;  %v2059_v30 = vshll.u32 %v6534_v14, 16  ;;  %v2065_v34 = vshll.u32 %v6543_v7, 16  ;;  %v736_v27 = vor.u32 %v735_v38, %v731_v58 }
  0x5d   : > { %v727_v54 = vrot.slane %v726_v26, 4  ;;  %v741_v11 = vrot.slane %v739_v61, 5  ;;  %v2058_v33 = vrot.slane %v2056_v28, 4  ;;  %v2069_v46 = vshrl.u32 %v6543_v7, 16 }
  0x5e   : > { %5238 = vmatmul.mubr.bf16.gmra.mrb[24].mxu1 %v6549_v19  ;;  %v718_v42 = vsel %vm6181_vm2, %v713_v40, %v717_v57  ;;  %v2061_v18 = vrot.slane %v2059_v30, 5  ;;  %v2067_v50 = vrot.slane %v2065_v34, 5  ;;  %v737_v10 = vrot.slane %v736_v27, 4 }
  0x5f   : > { %v6565_v1 = vcombine.low %v708_v16, %v718_v42  ;;  %v732_v51 = vsel %vm6181_vm2, %v727_v54, %v731_v58  ;;  %v2075_v15 = vshll.u32 %v6552_v0, 16  ;;  %v2071_v57 = vrot.slane %v2069_v46, 4 }
  0x60   : > { %v2062_v38 = vor.u32 %v2061_v18, %v2058_v33  ;;  %v4420_v61 = vrot.slane %v6153_v21, 9  ;;  %v1366_v28 = vrot.slane %v6156_v24, 5  ;;  %v742_v58 = vsel %vm6181_vm2, %v737_v10, %v741_v11 }
  0x61   : > { %5430 = vmatmul.mubr.bf16.gmra.mrb[24].mxu0 %v6565_v1  ;;  %5241 = vmatprep.mubr.bf16.mxu1 %v6565_v1  ;;  %v2077_v16 = vrot.slane %v2075_v15, 5  ;;  %v1369_v40 = vrot.slane %v6159_v25, 5  ;;  %v6585_v30 = vcombine.low %v6153_v21, %v6156_v24  ;;  %v6587_v34 = vcombine.low %v732_v51, %v742_v58 }
  0x62   : > { %v2063_v54 = vrot.slane %v2062_v38, 4  ;;  %v2072_v27 = vor.u32 %v2071_v57, %v2067_v50  ;;  %v1367_v33 = vsel %vm6572_vm5, %v4420_v61, %v1366_v28  ;;  %v1368_v42 = vrot.slane %v1366_v28, 4 }
  0x63   : > { %v4421_v18 = vrot.slane %v6165_v31, 9  ;;  %v1373_v46 = vrot.slane %v6174_v37, 5  ;;  %v6595_v11 = vcombine.low %v6165_v31, %v6174_v37  ;;  %5433 = vmatprep.mubr.bf16.mxu0 %v6587_v34  ;;  %v4422_v25 = vrot.slane %v6202_v62, 9 }
  0x64   : > { %v2068_v21 = vsel %vm6181_vm2, %v2063_v54, %v2067_v50  ;;  %v2073_v24 = vrot.slane %v2072_v27, 4  ;;  %v1380_v51 = vrot.slane %v6205_v3, 5  ;;  %v7311_v10 = vcombine.low %v6139_v12, %v6142_v13 }
  0x65   : > { %v1370_v31 = vsel %vm6572_vm5, %v1368_v42, %v1369_v40  ;;  %v1374_v37 = vsel %vm6572_vm5, %v4421_v18, %v1373_v46  ;;  %v1375_v15 = vrot.slane %v1373_v46, 4  ;;  %v1383_v38 = vrot.slane %v6209_v8, 5 }
  0x66   : > { %5242 = vmatmul.mubr.bf16.gmra.mrb[28].mxu1 %v6587_v34  ;;  %v2078_v50 = vsel %vm6181_vm2, %v2073_v24, %v2077_v16  ;;  %v6613_v57 = vcombine.low %v1367_v33, %v1370_v31  ;;  %v1381_v61 = vsel %vm6572_vm5, %v4422_v25, %v1380_v51  ;;  %v1382_v28 = vrot.slane %v1380_v51, 4 }
  0x67   : > { %5261 = vmatprep.mubr.bf16.mxu1 %v7311_v10  ;;  %v6617_v12 = vcombine.low %v2068_v21, %v2078_v50  ;;  %v7312_v13 = vrot.slane %v6187_v43, 5  ;;  %v6625_v40 = vcombine.low %v6202_v62, %v6205_v3  ;;  %v4423_v8 = vrot.slane %v6224_v17, 9  ;;  %v5981_v43 = vld [vmem:[%s7234_s1 + $0x88] sm:$0xff]  }
  0x68   : > { %v1384_v54 = vsel %vm6572_vm5, %v1382_v28, %v1383_v38  ;;  %v1387_v27 = vrot.slane %v6230_v23, 5  ;;  %v1390_v33 = vrot.slane %v6235_v32, 5  ;;  %v6642_v62 = vcombine.low %v6224_v17, %v6230_v23  ;;  %v5985_v28 = vld [vmem:[%s7234_s1 + $0x90] sm:$0xff]  }
  0x69   : > { %v1377_v58 = vsel %vm6572_vm5, %v1375_v15, %v7312_v13  ;;  %5434 = vmatmul.mubr.bf16.gmra.mrb[28].mxu0 %v6617_v12  ;;  %v6638_v42 = vcombine.low %v1381_v61, %v1384_v54  ;;  %v4424_v3 = vrot.slane %v6251_v49, 9  ;;  %v1394_v18 = vrot.slane %v6259_v55, 5 }
  0x6a   : > { %v6628_v16 = vcombine.low %v1374_v37, %v1377_v58  ;;  %5453 = vmatprep.mubr.bf16.mxu0 %v6613_v57  ;;  %v1388_v32 = vsel %vm6572_vm5, %v4423_v8, %v1387_v27  ;;  %v1389_v46 = vrot.slane %v1387_v27, 4  ;;  %v1397_v21 = vrot.slane %v6266_v60, 5  ;;  %v5980_v37 = vld [vmem:[%s7234_s1 + $0x188] sm:$0xff]  }
  0x6b   : > { %v6652_v24 = vcombine.low %v6251_v49, %v6259_v55  ;;  %v1395_v17 = vsel %vm6572_vm5, %v4424_v3, %v1394_v18  ;;  %v1396_v23 = vrot.slane %v1394_v18, 4  ;;  %v4425_v25 = vrot.slane %v6275_v4, 9 }
  0x6c   : > { %v1401_v51 = vrot.slane %v6278_v5, 5  ;;  %v1391_v10 = vsel %vm6572_vm5, %v1389_v46, %v1390_v33  ;;  %v1404_v31 = vrot.slane %v6296_v36, 5  ;;  %v6664_v60 = vcombine.low %v6275_v4, %v6278_v5  ;;  %v5984_v46 = vld [vmem:[%s7234_s1 + $0x190] sm:$0xff]  }
  0x6d   : > { %v4426_v49 = vrot.slane %v6306_v45, 9  ;;  %v6669_v55 = vcombine.low %v1388_v32, %v1391_v10  ;;  %v1398_v15 = vsel %vm6572_vm5, %v1396_v23, %v1397_v21  ;;  %v1411_v38 = vrot.slane %v6322_v63, 5 }
  0x6e   : > { %5262 = vmatmul.mubr.bf16.vlgmr.msra.gmra.mrb[0].mxu1 %v6585_v30  ;;  %v1402_v36 = vsel %vm6572_vm5, %v4425_v25, %v1401_v51  ;;  %v1403_v4 = vrot.slane %v1401_v51, 4  ;;  %v6678_v5 = vcombine.low %v1395_v17, %v1398_v15  ;;  %v6684_v50 = vcombine.low %v6306_v45, %v6311_v52  ;;  %v7314_v15 = vld [vmem:[#allocation11_spill] sm:$0xff] }
  0x6f   : > { %5294 = vmatpush3.bf16.msra.mxu1 %v6438_v59  ;;  %5265 = vmatprep.mubr.bf16.mxu1 %v6595_v11  ;;  %v1408_v59 = vrot.slane %v6311_v52, 5  ;;  %v4427_v13 = vrot.slane %v6325_v56, 9  ;;  %v1415_v58 = vrot.slane %v6334_v9, 5  ;;  %v1418_v8 = vrot.slane %v6355_v48, 5  ;;  %v5989_v48 = vld [vmem:[%s7234_s1 + $0x98] sm:$0xff]  }
  0x70   : > { %5295 = vmatprep.subr.bf16.mxu1 %v5981_v43  ;;  %v1405_v61 = vsel %vm6572_vm5, %v1403_v4, %v1404_v31  ;;  %v6700_v52 = vcombine.low %v6325_v56, %v6334_v9  ;;  %v4428_v3 = vrot.slane %v6360_v2, 9  ;;  %v1422_v18 = vrot.slane %v6369_v20, 5  ;;  %v7313_v31 = vld [vmem:[#allocation9_spill] sm:$0xff] }
  0x71   : > { %v6694_v54 = vcombine.low %v1402_v36, %v1405_v61  ;;  %v1409_v63 = vsel %vm6572_vm5, %v4426_v49, %v1408_v59  ;;  %v1410_v45 = vrot.slane %v1408_v59, 4  ;;  %5454 = vmatmul.mubr.bf16.vlgmr.msra.gmra.mrb[0].mxu0 %v6628_v16  ;;  %v1416_v27 = vsel %vm6572_vm5, %v4427_v13, %v1415_v58 }
  0x72   : > { %v1417_v33 = vrot.slane %v1415_v58, 4  ;;  %5486 = vmatpush3.bf16.msra.mxu0 %v6459_v6  ;;  %5457 = vmatprep.mubr.bf16.mxu0 %v6638_v42  ;;  %v1425_v9 = vrot.slane %v6380_v29, 5  ;;  %v4429_v32 = vrot.slane %v6383_v35, 9  ;;  %v1423_v29 = vsel %vm6572_vm5, %v4428_v3, %v1422_v18  ;;  %v7316_v58 = vld [vmem:[#allocation14_spill] sm:$0xff] }
  0x73   : > { %5296 = vmatpush3.bf16.msra.mxu1 %v5981_v43  ;;  %v1412_v56 = vsel %vm6572_vm5, %v1410_v45, %v1411_v38  ;;  %v6717_v43 = vcombine.low %v6360_v2, %v6369_v20  ;;  %5487 = vmatprep.subr.bf16.mxu0 %v5980_v37  ;;  %v1424_v17 = vrot.slane %v1422_v18, 4  ;;  %v1429_v20 = vrot.slane %v6388_v44, 5  ;;  %v7317_v45 = vld [vmem:[#allocation15_spill] sm:$0xff] }
  0x74   : > { %5297 = vmatprep.subr.bf16.mxu1 %v5985_v28  ;;  %v6723_v6 = vcombine.low %v1409_v63, %v1412_v56  ;;  %v1419_v21 = vsel %vm6572_vm5, %v1417_v33, %v1418_v8  ;;  %v1432_v23 = vrot.slane %v6412_v41, 5  ;;  %v6736_v25 = vcombine.low %v6383_v35, %v6388_v44  ;;  %v5988_v41 = vld [vmem:[%s7234_s1 + $0x198] sm:$0xff]   ;;  %v7318_v33 = vld [vmem:[#allocation16_spill] sm:$0xff] }
  0x75   : > { %v6730_v2 = vcombine.low %v1416_v27, %v1419_v21  ;;  %v1426_v51 = vsel %vm6572_vm5, %v1424_v17, %v1425_v9  ;;  %v4430_v10 = vrot.slane %v6416_v47, 9  ;;  %v1436_v49 = vrot.slane %v7313_v31, 5  ;;  %v5997_v21 = vld [vmem:[%s7234_s1 + $0xa8] sm:$0xff]   ;;  %v7319_v17 = vld [vmem:[#allocation17_spill] sm:$0xff] }
  0x76   : > { %5266 = vmatmul.mubr.bf16.gmra.mrb[4].mxu1 %v6625_v40  ;;  %v1439_v36 = vrot.slane %v7314_v15, 5  ;;  %5488 = vmatpush3.bf16.msra.mxu0 %v5980_v37  ;;  %v6747_v35 = vcombine.low %v1423_v29, %v1426_v51  ;;  %v1430_v44 = vsel %vm6572_vm5, %v4429_v32, %v1429_v20  ;;  %v1431_v4 = vrot.slane %v1429_v20, 4  ;;  %v5993_v37 = vld [vmem:[%s7234_s1 + $0xa0] sm:$0xff]   ;;  %v7320_v20 = vld [vmem:[#allocation19_spill] sm:$0xff]  ;;  %v7322_v15 = vld [vmem:[#allocation21_spill] sm:$0xff] }
  0x77   : > { %5269 = vmatprep.mubr.bf16.mxu1 %v6642_v62  ;;  %5298 = vmatpush3.bf16.msra.mxu1 %v5985_v28  ;;  %v6753_v59 = vcombine.low %v6416_v47, %v7313_v31  ;;  %v1437_v38 = vsel %vm6572_vm5, %v4430_v10, %v1436_v49  ;;  %v1438_v61 = vrot.slane %v1436_v49, 4  ;;  %v7315_v28 = vld [vmem:[#allocation12_spill] sm:$0xff]  ;;  %v1443_v8 = vrot.slane %v7316_v58, 5  ;;  %v5992_v10 = vld [vmem:[%s7234_s1 + $0x1a0] sm:$0xff]  }
  0x78   : > { %5299 = vmatprep.subr.bf16.mxu1 %v5989_v48  ;;  %5489 = vmatprep.subr.bf16.mxu0 %v5984_v46  ;;  %v4431_v13 = vrot.slane %v7315_v28, 9  ;;  %v1433_v63 = vsel %vm6572_vm5, %v1431_v4, %v1432_v23  ;;  %v1446_v27 = vrot.slane %v7317_v45, 5  ;;  %v6767_v47 = vcombine.low %v7315_v28, %v7316_v58 }
  0x79   : > { %v4432_v3 = vrot.slane %v7318_v33, 9  ;;  %5458 = vmatmul.mubr.bf16.gmra.mrb[4].mxu0 %v6669_v55  ;;  %v6771_v18 = vcombine.low %v1430_v44, %v1433_v63  ;;  %v1440_v56 = vsel %vm6572_vm5, %v1438_v61, %v1439_v36  ;;  %v1445_v32 = vrot.slane %v1443_v8, 4  ;;  %v7323_v44 = vld [vmem:[#allocation23_spill] sm:$0xff]  ;;  %v7324_v63 = vld [vmem:[#allocation24_spill] sm:$0xff] }
  0x7a   : > { %v1444_v9 = vsel %vm6572_vm5, %v4431_v13, %v1443_v8  ;;  %5461 = vmatprep.mubr.bf16.mxu0 %v6678_v5  ;;  %5490 = vmatpush3.bf16.msra.mxu0 %v5984_v46  ;;  %v6781_v29 = vcombine.low %v1437_v38, %v1440_v56  ;;  %v1453_v23 = vrot.slane %v7320_v20, 5  ;;  %v6787_v51 = vcombine.low %v7318_v33, %v7319_v17  ;;  %v7321_v46 = vld [vmem:[#allocation20_spill] sm:$0xff]  ;;  %v5996_v33 = vld [vmem:[%s7234_s1 + $0x1a8] sm:$0xff]  }
  0x7b   : > { %5300 = vmatpush3.bf16.msra.mxu1 %v5989_v48  ;;  %v1450_v48 = vrot.slane %v7319_v17, 5  ;;  %5491 = vmatprep.subr.bf16.mxu0 %v5988_v41  ;;  %v1447_v31 = vsel %vm6572_vm5, %v1445_v32, %v1446_v27  ;;  %v4433_v49 = vrot.slane %v7321_v46, 9  ;;  %v1457_v36 = vrot.slane %v7322_v15, 5  ;;  %v6001_v17 = vld [vmem:[%s7234_s1 + $0xb0] sm:$0xff]  }
  0x7c   : > { %5301 = vmatprep.subr.bf16.mxu1 %v5993_v37  ;;  %v1460_v4 = vrot.slane %v7323_v44, 5  ;;  %v6798_v38 = vcombine.low %v1444_v9, %v1447_v31  ;;  %v6804_v13 = vcombine.low %v7321_v46, %v7322_v15  ;;  %v4434_v45 = vrot.slane %v7324_v63, 9  ;;  %v6007_v44 = vld [vmem:[%s7234_s1 + $0xc0] sm:$0xff]  }
  0x7d   : > { %v1451_v61 = vsel %vm6572_vm5, %v4432_v3, %v1450_v48  ;;  %v1452_v28 = vrot.slane %v1450_v48, 4  ;;  %v1458_v58 = vsel %vm6572_vm5, %v4433_v49, %v1457_v36  ;;  %v1459_v8 = vrot.slane %v1457_v36, 4 }
  0x7e   : > { %5270 = vmatmul.mubr.bf16.gmra.mrb[8].mxu1 %v6652_v24  ;;  %v1464_v27 = vrot.slane %v6524_v53, 5  ;;  %5492 = vmatpush3.bf16.msra.mxu0 %v5988_v41  ;;  %v1467_v56 = vrot.slane %v6531_v22, 5  ;;  %v4525_v9 = vrot.slane %v6534_v14, 9  ;;  %v6840_v46 = vcombine.low %v6534_v14, %v6543_v7 }
  0x7f   : > { %5273 = vmatprep.mubr.bf16.mxu1 %v6664_v60  ;;  %5302 = vmatpush3.bf16.msra.mxu1 %v5993_v37  ;;  %v1454_v3 = vsel %vm6572_vm5, %v1452_v28, %v1453_v23  ;;  %v6819_v37 = vcombine.low %v7324_v63, %v6524_v53  ;;  %v1461_v41 = vsel %vm6572_vm5, %v1459_v8, %v1460_v4  ;;  %v2344_v53 = vrot.slane %v6543_v7, 5  ;;  %v6006_v4 = vld [vmem:[%s7234_s1 + $0x1c0] sm:$0xff]  }
  0x80   : > { %5303 = vmatprep.subr.bf16.mxu1 %v5997_v21  ;;  %5493 = vmatprep.subr.bf16.mxu0 %v5992_v10  ;;  %v6822_v32 = vcombine.low %v1451_v61, %v1454_v3  ;;  %v1465_v48 = vsel %vm6572_vm5, %v4434_v45, %v1464_v27  ;;  %v1466_v22 = vrot.slane %v1464_v27, 4  ;;  %v6831_v20 = vcombine.low %v1458_v58, %v1461_v41  ;;  %v6040_v61 = vld [vmem:[%s6130_s24 + $0x4] sm:$0xf]  ;;  %v6041_v58 = vld [vmem:[%s6130_s24 + $0x8] sm:$0x1] }
  0x81   : > { %v2347_v23 = vrot.slane %v6552_v0, 5  ;;  %5462 = vmatmul.mubr.bf16.gmra.mrb[8].mxu0 %v6694_v54  ;;  %v2345_v15 = vsel %vm6572_vm5, %v4525_v9, %v2344_v53  ;;  %v2346_v36 = vrot.slane %v2344_v53, 4  ;;  %v6005_v0 = vld [vmem:[%s7234_s1 + $0xb8] sm:$0xff]   ;;  %v1359_v28 = vrot.slane %v6040_v61, 5  ;;  %v6042_v63 = vld [vmem:[%s6130_s24] sm:$0xf] }
  0x82   : > { %v1468_v31 = vsel %vm6572_vm5, %v1466_v22, %v1467_v56  ;;  %5465 = vmatprep.mubr.bf16.mxu0 %v6723_v6  ;;  %5494 = vmatpush3.bf16.msra.mxu0 %v5992_v10  ;;  %v6004_v10 = vld [vmem:[%s7234_s1 + $0x1b8] sm:$0xff]   ;;  %v1362_v8 = vrot.slane %v6041_v58, 5  ;;  %v4419_v45 = vrot.slane %v6042_v63, 9  ;;  %v6009_v9 = vld [vmem:[%s7234_s1 + $0xc8] sm:$0xff]   ;;  %v6015_v53 = vld [vmem:[%s7234_s1 + $0xe0] sm:$0xff]  }
  0x83   : > { %5304 = vmatpush3.bf16.msra.mxu1 %v5997_v21  ;;  %v6843_v49 = vcombine.low %v1465_v48, %v1468_v31  ;;  %5495 = vmatprep.subr.bf16.mxu0 %v5996_v33  ;;  %v6000_v21 = vld [vmem:[%s7234_s1 + $0x1b0] sm:$0xff]   ;;  %v2348_v14 = vsel %vm6572_vm5, %v2346_v36, %v2347_v23  ;;  %v1361_v27 = vrot.slane %v1359_v28, 4  ;;  %v6008_v41 = vld [vmem:[%s7234_s1 + $0x1c8] sm:$0xff]   ;;  %v6012_v22 = vld [vmem:[%s7234_s1 + $0x1d8] sm:$0xff]  }
  0x84   : > { %5305 = vmatprep.subr.bf16.mxu1 %v6001_v17  ;;  %v6857_v7 = vcombine.low %v2345_v15, %v2348_v14  ;;  %v6010_v48 = vld [vmem:[%s7234_s1 + $0x1d0] sm:$0xff]   ;;  %v6017_v23 = vld [vmem:[%s7234_s1 + $0xe8] sm:$0xff]   ;;  %v6014_v31 = vld [vmem:[%s7234_s1 + $0x1e0] sm:$0xff]  }
  0x85   : > { %v1363_v3 = vsel %vm6572_vm5, %v1361_v27, %v1362_v8  ;;  %v6016_v15 = vld [vmem:[%s7234_s1 + $0x1e8] sm:$0xff]   ;;  %v6019_v36 = vld [vmem:[%s7234_s1 + $0xf0] sm:$0xff]   ;;  %v6022_v14 = vld [vmem:[%s7234_s1 + $0x1f8] sm:$0xff]  }
  0x86   : > { %5274 = vmatmul.mubr.bf16.gmra.mrb[12].mxu1 %v6684_v50  ;;  %5496 = vmatpush3.bf16.msra.mxu0 %v5996_v33  ;;  %v1360_v33 = vsel %vm6572_vm5, %v4419_v45, %v1359_v28  ;;  %v6972_v61 = vld [vmem:[%s6130_s24 + $0xd0] sm:$0xf]  ;;  %v7325_v58 = vld [vmem:[#allocation3_spill] sm:$0xff]  ;;  %v7327_v27 = vld [vmem:[#allocation5_spill] sm:$0xff] }
  0x87   : > { %5277 = vmatprep.mubr.bf16.mxu1 %v6700_v52  ;;  %5306 = vmatpush3.bf16.msra.mxu1 %v6001_v17  ;;  %v4451_v56 = vcombine.low %v1360_v33, %v1363_v3  ;;  %v6011_v17 = vld [vmem:[%s7234_s1 + $0xd0] sm:$0xff]   ;;  %v6027_v8 = vld [vmem:[%s7235_s2 + $0x8] sm:$0xff]   ;;  %v6030_v33 = vld [vmem:[%s7234_s1 + $0x218] sm:$0xff]   ;;  %v3164_v39 = vrot.slane %v6972_v61, 5 }
  0x88   : > { %5307 = vmatprep.subr.bf16.mxu1 %v6005_v0  ;;  %5497 = vmatprep.subr.bf16.mxu0 %v6000_v21  ;;  %v6026_v63 = vld [vmem:[%s7234_s1 + $0x208] sm:$0xff]   ;;  %v7326_v45 = vld [vmem:[#allocation4_spill] sm:$0xff]  ;;  %v6033_v3 = vld [vmem:[%s7235_s2 + $0x20] sm:$0xff]  }
  0x89   : > { %5466 = vmatmul.mubr.bf16.gmra.mrb[12].mxu0 %v6730_v2 }
  0x8a   : > { %5469 = vmatprep.mubr.bf16.mxu0 %v6747_v35  ;;  %5498 = vmatpush3.bf16.msra.mxu0 %v6000_v21  ;;  %v6018_v21 = vld [vmem:[%s7234_s1 + $0x1f0] sm:$0xff]  }
  0x8b   : > { %5308 = vmatpush3.bf16.msra.mxu1 %v6005_v0  ;;  %5499 = vmatprep.subr.bf16.mxu0 %v6004_v10  ;;  %v6023_v0 = vld [vmem:[%s7234_s1 + $0xf8] sm:$0xff]  }
  0x8c   : > { %5341 = vmatprep.subr.bf16.mxu1 %v6007_v44 }
  0x8e   : > { %5278 = vmatmul.mubr.bf16.gmra.mrb[16].mxu1 %v6717_v43  ;;  %5500 = vmatpush3.bf16.msra.mxu0 %v6004_v10  ;;  %v6025_v10 = vld [vmem:[%s7235_s2] sm:$0xff]  }
  0x8f   : > { %5281 = vmatprep.mubr.bf16.mxu1 %v6736_v25  ;;  %5533 = vmatprep.subr.bf16.mxu0 %v6006_v4 }
  0x91   : > { %5470 = vmatmul.mubr.bf16.gmra.mrb[16].mxu0 %v6771_v18 }
  0x92   : > { %5473 = vmatprep.mubr.bf16.mxu0 %v6781_v29 }
  0x96   : > { %5282 = vmatmul.mubr.bf16.gmra.mrb[20].mxu1 %v6753_v59 }
  0x97   : > { %5285 = vmatprep.mubr.bf16.mxu1 %v6767_v47 }
  0x99   : > { %5474 = vmatmul.mubr.bf16.gmra.mrb[20].mxu0 %v6798_v38 }
  0x9a   : > { %5477 = vmatprep.mubr.bf16.mxu0 %v6822_v32 }
  0x9e   : > { %5286 = vmatmul.mubr.bf16.gmra.mrb[24].mxu1 %v6787_v51 }
  0x9f   : > { %5289 = vmatprep.mubr.bf16.mxu1 %v6804_v13 }
  0xa1   : > { %5478 = vmatmul.mubr.bf16.gmra.mrb[24].mxu0 %v6831_v20 }
  0xa2   : > { %5481 = vmatprep.mubr.bf16.mxu0 %v6843_v49 }
  0xa6   : > { %5290 = vmatmul.mubr.bf16.gmra.mrb[28].mxu1 %v6819_v37 }
  0xa7   : > { %5309 = vmatprep.mubr.bf16.mxu1 %v4451_v56  ;;  %v7328_v56 = vld [vmem:[#allocation6_spill] sm:$0xff] }
  0xa9   : > { %5482 = vmatmul.mubr.bf16.gmra.mrb[28].mxu0 %v6857_v7 }
  0xaa   : > { %5501 = vmatprep.mubr.bf16.mxu0 %v6595_v11 }
  0xae   : > { %5310 = vmatmul.mubr.bf16.vlgmr.msra.gmra.mrb[0].mxu1 %v6613_v57  ;;  %v6013_v57 = vld [vmem:[%s7234_s1 + $0xd8] sm:$0xff]  }
  0xaf   : > { %5342 = vmatpush3.bf16.msra.mxu1 %v6007_v44  ;;  %5313 = vmatprep.mubr.bf16.mxu1 %v6628_v16  ;;  %v6024_v44 = vld [vmem:[%s7234_s1 + $0x200] sm:$0xff]  }
  0xb0   : > { %5343 = vmatprep.subr.bf16.mxu1 %v6009_v9 }
  0xb1   : > { %5502 = vmatmul.mubr.bf16.vlgmr.msra.gmra.mrb[0].mxu0 %v6625_v40 }
  0xb2   : > { %5534 = vmatpush3.bf16.msra.mxu0 %v6006_v4  ;;  %5505 = vmatprep.mubr.bf16.mxu0 %v6642_v62  ;;  %v6969_v4 = vld [vmem:[%s6130_s24 + $0xcc] sm:$0xf] }
  0xb3   : > { %5344 = vmatpush3.bf16.msra.mxu1 %v6009_v9  ;;  %5535 = vmatprep.subr.bf16.mxu0 %v6008_v41  ;;  %v4567_v28 = vcombine.low %v6969_v4, %v6972_v61  ;;  %v7329_v9 = vld [vmem:[#allocation7_spill] sm:$0xff] }
  0xb4   : > { %5345 = vmatprep.subr.bf16.mxu1 %v6011_v17 }
  0xb6   : > { %5314 = vmatmul.mubr.bf16.gmra.mrb[4].mxu1 %v6638_v42  ;;  %5536 = vmatpush3.bf16.msra.mxu0 %v6008_v41  ;;  %v6034_v41 = vld [vmem:[%s7234_s1 + $0x228] sm:$0xff]  }
  0xb7   : > { %5317 = vmatprep.mubr.bf16.mxu1 %v6669_v55  ;;  %5346 = vmatpush3.bf16.msra.mxu1 %v6011_v17  ;;  %v6037_v17 = vld [vmem:[%s7235_s2 + $0x30] sm:$0xff]  }
  0xb8   : > { %5347 = vmatprep.subr.bf16.mxu1 %v6013_v57  ;;  %5537 = vmatprep.subr.bf16.mxu0 %v6010_v48 }
  0xb9   : > { %5506 = vmatmul.mubr.bf16.gmra.mrb[4].mxu0 %v6652_v24 }
  0xba   : > { %5509 = vmatprep.mubr.bf16.mxu0 %v6664_v60  ;;  %5538 = vmatpush3.bf16.msra.mxu0 %v6010_v48  ;;  %v7331_v48 = vld [vmem:[#allocation10_spill] sm:$0xff] }
  0xbb   : > { %5348 = vmatpush3.bf16.msra.mxu1 %v6013_v57  ;;  %5539 = vmatprep.subr.bf16.mxu0 %v6012_v22  ;;  %v7330_v57 = vld [vmem:[#allocation8_spill] sm:$0xff] }
  0xbc   : > { %5349 = vmatprep.subr.bf16.mxu1 %v6015_v53 }
  0xbe   : > { %5318 = vmatmul.mubr.bf16.gmra.mrb[8].mxu1 %v6678_v5  ;;  %5540 = vmatpush3.bf16.msra.mxu0 %v6012_v22  ;;  %v6038_v22 = vld [vmem:[%s7234_s1 + $0x238] sm:$0xff]  }
  0xbf   : > { %5321 = vmatprep.mubr.bf16.mxu1 %v6694_v54  ;;  %5350 = vmatpush3.bf16.msra.mxu1 %v6015_v53  ;;  %v7332_v53 = vld [vmem:[#allocation13_spill] sm:$0xff] }
  0xc0   : > { %5351 = vmatprep.subr.bf16.mxu1 %v6017_v23  ;;  %5541 = vmatprep.subr.bf16.mxu0 %v6014_v31 }
  0xc1   : > { %5510 = vmatmul.mubr.bf16.gmra.mrb[8].mxu0 %v6684_v50 }
  0xc2   : > { %5513 = vmatprep.mubr.bf16.mxu0 %v6700_v52  ;;  %5542 = vmatpush3.bf16.msra.mxu0 %v6014_v31  ;;  %v2879_v31 = vshll.u32 %v6969_v4, 16 }
  0xc3   : > { %5352 = vmatpush3.bf16.msra.mxu1 %v6017_v23  ;;  %5543 = vmatprep.subr.bf16.mxu0 %v6016_v15  ;;  %v7333_v23 = vld [vmem:[#allocation18_spill] sm:$0xff] }
  0xc4   : > { %5353 = vmatprep.subr.bf16.mxu1 %v6019_v36 }
  0xc6   : > { %5322 = vmatmul.mubr.bf16.gmra.mrb[12].mxu1 %v6723_v6  ;;  %5544 = vmatpush3.bf16.msra.mxu0 %v6016_v15  ;;  %v2889_v15 = vshrl.u32 %v6972_v61, 16 }
  0xc7   : > { %5325 = vmatprep.mubr.bf16.mxu1 %v6730_v2  ;;  %5354 = vmatpush3.bf16.msra.mxu1 %v6019_v36  ;;  %v7335_v36 = vld [vmem:[#allocation25_spill] sm:$0xff] }
  0xc8   : > { %5355 = vmatprep.subr.bf16.mxu1 %v6023_v0  ;;  %5545 = vmatprep.subr.bf16.mxu0 %v6018_v21 }
  0xc9   : > { %5514 = vmatmul.mubr.bf16.gmra.mrb[12].mxu0 %v6717_v43 }
  0xca   : > { %5517 = vmatprep.mubr.bf16.mxu0 %v6736_v25  ;;  %5546 = vmatpush3.bf16.msra.mxu0 %v6018_v21  ;;  %v2881_v21 = vrot.slane %v2879_v31, 5 }
  0xcb   : > { %5356 = vmatpush3.bf16.msra.mxu1 %v6023_v0  ;;  %5547 = vmatprep.subr.bf16.mxu0 %v6022_v14  ;;  %v2885_v0 = vshll.u32 %v6972_v61, 16 }
  0xcc   : > { %5629 = vmatprep.subr.bf16.mxu1 %v6025_v10 }
  0xce   : > { %5326 = vmatmul.mubr.bf16.gmra.mrb[16].mxu1 %v6747_v35  ;;  %5548 = vmatpush3.bf16.msra.mxu0 %v6022_v14  ;;  %v2891_v14 = vrot.slane %v2889_v15, 4 }
  0xcf   : > { %5329 = vmatprep.mubr.bf16.mxu1 %v6771_v18  ;;  %5581 = vmatprep.subr.bf16.mxu0 %v6024_v44 }
  0xd1   : > { %5518 = vmatmul.mubr.bf16.gmra.mrb[16].mxu0 %v6753_v59 }
  0xd2   : > { %5521 = vmatprep.mubr.bf16.mxu0 %v6767_v47 }
  0xd6   : > { %5330 = vmatmul.mubr.bf16.gmra.mrb[20].mxu1 %v6781_v29 }
  0xd7   : > { %5333 = vmatprep.mubr.bf16.mxu1 %v6798_v38 }
  0xd9   : > { %5522 = vmatmul.mubr.bf16.gmra.mrb[20].mxu0 %v6787_v51 }
  0xda   : > { %5525 = vmatprep.mubr.bf16.mxu0 %v6804_v13 }
  0xde   : > { %5334 = vmatmul.mubr.bf16.gmra.mrb[24].mxu1 %v6822_v32 }
  0xdf   : > { %5337 = vmatprep.mubr.bf16.mxu1 %v6831_v20 }
  0xe1   : > { %5526 = vmatmul.mubr.bf16.gmra.mrb[24].mxu0 %v6819_v37 }
  0xe2   : > { %5529 = vmatprep.mubr.bf16.mxu0 %v6840_v46 }
  0xe6   : > { %5338 = vmatmul.mubr.bf16.gmra.mrb[28].mxu1 %v6843_v49 }
  0xe7   : > { %5357 = vmatprep.mubr.bf16.mxu1 %v6585_v30  ;;  %v6029_v30 = vld [vmem:[%s7235_s2 + $0x10] sm:$0xff]  }
  0xe9   : > { %5530 = vmatmul.mubr.bf16.gmra.mrb[28].mxu0 %v4567_v28 }
  0xea   : > { %5549 = vmatprep.mubr.bf16.mxu0 %v7325_v58 }
  0xee   : > { %5358 = vmatmul.mubr.bf16.vlgmr.msra.gmra.mrb[0].mxu1 %v6595_v11  ;;  %v6031_v11 = vld [vmem:[%s7235_s2 + $0x18] sm:$0xff]  }
  0xef   : > { %5630 = vmatpush3.bf16.msra.mxu1 %v6025_v10  ;;  %5361 = vmatprep.mubr.bf16.mxu1 %v6625_v40  ;;  %v6028_v40 = vld [vmem:[%s7234_s1 + $0x210] sm:$0xff]  }
  0xf0   : > { %5631 = vmatprep.subr.bf16.mxu1 %v6027_v8  ;;  %v339_v10 = vld [vmem:[%s6130_s24 + $0xd4] sm:$0x1]  ;;  %s4701_s24 = sshll.u32 %s7338_s22, 7 }
  0xf1   : > { %5550 = vmatmul.mubr.bf16.vlgmr.msra.gmra.mrb[0].mxu0 %v7326_v45  ;;  %s7156_s17 = scalar_lea.vmem %s7238_s5, %s4701_s24  ;;  %s7163_s20 = scalar_lea.vmem %s7236_s3, %s4701_s24 }
  0xf2   : > { %5582 = vmatpush3.bf16.msra.mxu0 %v6024_v44  ;;  %5553 = vmatprep.mubr.bf16.mxu0 %v7327_v27 }
  0xf3   : > { %5632 = vmatpush3.bf16.msra.mxu1 %v6027_v8  ;;  %5583 = vmatprep.subr.bf16.mxu0 %v6026_v63  ;;  %v2895_v8 = vshll.u32 %v339_v10, 16 }
  0xf4   : > { %5633 = vmatprep.subr.bf16.mxu1 %v6029_v30 }
  0xf6   : > { %5362 = vmatmul.mubr.bf16.gmra.mrb[4].mxu1 %v6642_v62  ;;  %5584 = vmatpush3.bf16.msra.mxu0 %v6026_v63  ;;  %v6035_v62 = vld [vmem:[%s7235_s2 + $0x28] sm:$0xff]  }
  0xf7   : > { %5365 = vmatprep.mubr.bf16.mxu1 %v6652_v24  ;;  %5634 = vmatpush3.bf16.msra.mxu1 %v6029_v30  ;;  %v6032_v24 = vld [vmem:[%s7234_s1 + $0x220] sm:$0xff]   ;;  %v2897_v30 = vrot.slane %v2895_v8, 5 }
  0xf8   : > { %5635 = vmatprep.subr.bf16.mxu1 %v6031_v11  ;;  %5585 = vmatprep.subr.bf16.mxu0 %v6028_v40 }
  0xf9   : > { %5554 = vmatmul.mubr.bf16.gmra.mrb[4].mxu0 %v7328_v56 }
  0xfa   : > { %5557 = vmatprep.mubr.bf16.mxu0 %v7329_v9  ;;  %5586 = vmatpush3.bf16.msra.mxu0 %v6028_v40 }
  0xfb   : > { %5636 = vmatpush3.bf16.msra.mxu1 %v6031_v11  ;;  %5587 = vmatprep.subr.bf16.mxu0 %v6030_v33 }
  0xfc   : > { %5637 = vmatprep.subr.bf16.mxu1 %v6033_v3 }
  0xfe   : > { %5366 = vmatmul.mubr.bf16.gmra.mrb[8].mxu1 %v6664_v60  ;;  %5588 = vmatpush3.bf16.msra.mxu0 %v6030_v33  ;;  %v6039_v60 = vld [vmem:[%s7235_s2 + $0x38] sm:$0xff]   ;;  %v7336_v33 = vld [vmem:[#allocation2_spill] sm:$0xff] }
  0xff   : > { %5369 = vmatprep.mubr.bf16.mxu1 %v6684_v50  ;;  %5638 = vmatpush3.bf16.msra.mxu1 %v6033_v3  ;;  %v6036_v50 = vld [vmem:[%s7234_s1 + $0x230] sm:$0xff]  }
 0x100   : > { %5639 = vmatprep.subr.bf16.mxu1 %v6035_v62  ;;  %5589 = vmatprep.subr.bf16.mxu0 %v6032_v24 }
 0x101   : > { %5558 = vmatmul.mubr.bf16.gmra.mrb[8].mxu0 %v7330_v57 }
 0x102   : > { %5561 = vmatprep.mubr.bf16.mxu0 %v7331_v48  ;;  %5590 = vmatpush3.bf16.msra.mxu0 %v6032_v24 }
 0x103   : > { %5640 = vmatpush3.bf16.msra.mxu1 %v6035_v62  ;;  %5591 = vmatprep.subr.bf16.mxu0 %v6034_v41 }
 0x104   : > { %5641 = vmatprep.subr.bf16.mxu1 %v6037_v17 }
 0x106   : > { %5370 = vmatmul.mubr.bf16.gmra.mrb[12].mxu1 %v6700_v52  ;;  %5592 = vmatpush3.bf16.msra.mxu0 %v6034_v41  ;;  %v7334_v52 = vld [vmem:[#allocation22_spill] sm:$0xff] }
 0x107   : > { %5373 = vmatprep.mubr.bf16.mxu1 %v6717_v43  ;;  %5642 = vmatpush3.bf16.msra.mxu1 %v6037_v17  ;;  %v2876_v43 = vshrl.u32 %v6969_v4, 16 }
 0x108   : > { %5643 = vmatprep.subr.bf16.mxu1 %v6039_v60  ;;  %5593 = vmatprep.subr.bf16.mxu0 %v6036_v50 }
 0x109   : > { %5562 = vmatmul.mubr.bf16.gmra.mrb[12].mxu0 %v7332_v53 }
 0x10a   : > { %5565 = vmatprep.mubr.bf16.mxu0 %v7333_v23  ;;  %5594 = vmatpush3.bf16.msra.mxu0 %v6036_v50 }
 0x10b   : > { %5644 = vmatpush3.bf16.msra.mxu1 %v6039_v60  ;;  %5595 = vmatprep.subr.bf16.mxu0 %v6038_v22 }
 0x10e   : > { %5374 = vmatmul.mubr.bf16.gmra.mrb[16].mxu1 %v6736_v25  ;;  %5596 = vmatpush3.bf16.msra.mxu0 %v6038_v22  ;;  %v2878_v25 = vrot.slane %v2876_v43, 4 }
 0x10f   : > { %5377 = vmatprep.mubr.bf16.mxu1 %v6753_v59  ;;  %v2887_v59 = vrot.slane %v2885_v0, 5 }
 0x110   : > { %v2882_v44 = vor.u32 %v2881_v21, %v2878_v25 }
 0x111   : > { %5566 = vmatmul.mubr.bf16.gmra.mrb[16].mxu0 %v7334_v52  ;;  %v2892_v28 = vor.u32 %v2891_v14, %v2887_v59 }
 0x112   : > { %5569 = vmatprep.mubr.bf16.mxu0 %v7335_v36  ;;  %v2883_v63 = vrot.slane %v2882_v44, 4 }
 0x116   : > { %5378 = vmatmul.mubr.bf16.gmra.mrb[20].mxu1 %v6767_v47  ;;  %v2893_v47 = vrot.slane %v2892_v28, 4 }
 0x117   : > { %5381 = vmatprep.mubr.bf16.mxu1 %v6787_v51  ;;  %v2888_v51 = vsel %vm6181_vm2, %v2883_v63, %v2887_v59 }
 0x118   : > { %v2898_v11 = vsel %vm6181_vm2, %v2893_v47, %v2897_v30 }
 0x119   : > { %5570 = vmatmul.mubr.bf16.gmra.mrb[20].mxu0 %v6549_v19  ;;  %v4592_v40 = vcombine.low %v2888_v51, %v2898_v11 }
 0x11a   : > { %5573 = vmatprep.mubr.bf16.mxu0 %v6565_v1 }
 0x11e   : > { %5382 = vmatmul.mubr.bf16.gmra.mrb[24].mxu1 %v6804_v13 }
 0x11f   : > { %5385 = vmatprep.mubr.bf16.mxu1 %v6819_v37 }
 0x121   : > { %5574 = vmatmul.mubr.bf16.gmra.mrb[24].mxu0 %v6587_v34 }
 0x122   : > { %5577 = vmatprep.mubr.bf16.mxu0 %v6617_v12 }
 0x126   : > { %5386 = vmatmul.mubr.bf16.gmra.mrb[28].mxu1 %v6840_v46 }
 0x127   : > { %5645 = vmatprep.mubr.bf16.mxu1 %v7336_v33 }
 0x129   : > { %5578 = vmatmul.mubr.bf16.gmra.mrb[28].mxu0 %v4592_v40 }
 0x12a   : > { %5597 = vmatprep.mubr.bf16.mxu0 %v6628_v16  ;;  %v4601_v16 = vrot.slane %v6969_v4, 9 }
 0x12e   : > { %5646 = vmatmul.mubr.bf16.vlgmr.msra.gmra.mrb[32].mxu1 %v7325_v58 }
 0x12f   : > { %5649 = vmatprep.mubr.bf16.mxu1 %v7326_v45 }
 0x131   : > { %5598 = vmatmul.mubr.bf16.vlgmr.msra.gmra.mrb[0].mxu0 %v6638_v42  ;;  %v3166_v42 = vrot.slane %v3164_v39, 4 }
 0x132   : > { %5601 = vmatprep.mubr.bf16.mxu0 %v6669_v55  ;;  %v3167_v55 = vrot.slane %v339_v10, 5 }
 0x136   : > { %5650 = vmatmul.mubr.bf16.gmra.mrb[36].mxu1 %v7327_v27 }
 0x137   : > { %5653 = vmatprep.mubr.bf16.mxu1 %v7328_v56 }
 0x139   : > { %5602 = vmatmul.mubr.bf16.gmra.mrb[4].mxu0 %v6678_v5  ;;  %v3168_v5 = vsel %vm6572_vm5, %v3166_v42, %v3167_v55 }
 0x13a   : > { %5605 = vmatprep.mubr.bf16.mxu0 %v6694_v54 }
 0x13e   : > { %5654 = vmatmul.mubr.bf16.gmra.mrb[40].mxu1 %v7329_v9 }
 0x13f   : > { %5657 = vmatprep.mubr.bf16.mxu1 %v7330_v57 }
 0x141   : > { %5606 = vmatmul.mubr.bf16.gmra.mrb[8].mxu0 %v6723_v6 }
 0x142   : > { %5609 = vmatprep.mubr.bf16.mxu0 %v6730_v2 }
 0x146   : > { %5658 = vmatmul.mubr.bf16.gmra.mrb[44].mxu1 %v7331_v48 }
 0x147   : > { %5661 = vmatprep.mubr.bf16.mxu1 %v7332_v53 }
 0x149   : > { %5610 = vmatmul.mubr.bf16.gmra.mrb[12].mxu0 %v6747_v35 }
 0x14a   : > { %5613 = vmatprep.mubr.bf16.mxu0 %v6771_v18 }
 0x14e   : > { %5662 = vmatmul.mubr.bf16.gmra.mrb[48].mxu1 %v7333_v23 }
 0x14f   : > { %5665 = vmatprep.mubr.bf16.mxu1 %v7334_v52 }
 0x151   : > { %5614 = vmatmul.mubr.bf16.gmra.mrb[16].mxu0 %v6781_v29 }
 0x152   : > { %5617 = vmatprep.mubr.bf16.mxu0 %v6798_v38 }
 0x156   : > { %5666 = vmatmul.mubr.bf16.gmra.mrb[52].mxu1 %v7335_v36 }
 0x157   : > { %5669 = vmatprep.mubr.bf16.mxu1 %v6549_v19  ;;  %v3165_v19 = vsel %vm6572_vm5, %v4601_v16, %v3164_v39 }
 0x158   : > { %v4618_v54 = vcombine.low %v3165_v19, %v3168_v5 }
 0x159   : > { %5618 = vmatmul.mubr.bf16.gmra.mrb[20].mxu0 %v6822_v32 }
 0x15a   : > { %5621 = vmatprep.mubr.bf16.mxu0 %v6831_v20 }
 0x15e   : > { %5670 = vmatmul.mubr.bf16.gmra.mrb[56].mxu1 %v6565_v1 }
 0x15f   : > { %5673 = vmatprep.mubr.bf16.mxu1 %v6587_v34 }
 0x161   : > { %5622 = vmatmul.mubr.bf16.gmra.mrb[24].mxu0 %v6843_v49 }
 0x162   : > { %5625 = vmatprep.mubr.bf16.mxu0 %v6857_v7 }
 0x166   : > { %5674 = vmatmul.mubr.bf16.gmra.mrb[60].mxu1 %v6617_v12 }
 0x169   : > { %5626 = vmatmul.mubr.bf16.gmra.mrb[28].mxu0 %v4618_v54 }
 0x1c1   : > { %v5359_v1 = vpop.f32.mrb[0].mxu1 }
 0x1c2   : > { %v1896_v34 = vpop.f32.mrb[1].mxu1 }
 0x1c3   : > { %v5360_v6 = vpop.f32.mrb[2].mxu1 }
 0x1c4   : > { %v1899_v2 = vpop.f32.mrb[3].mxu1 }
 0x1c9   : > { %v7096_v35 = vpop.f32.mrb[4].mxu1 }
 0x1ca   : > { %v7098_v18 = vpop.f32.mrb[5].mxu1 }
 0x1cb   : > { %v7100_v29 = vpop.f32.mrb[6].mxu1 }
 0x1cc   : > { %v7102_v38 = vpop.f32.mrb[7].mxu1 }
 0x1d1   : > { %v7104_v13 = vpop.f32.mrb[8].mxu1 }
 0x1d2   : > { %v7106_v26 = vpop.f32.mrb[9].mxu1 }
 0x1d3   : > { %v7108_v37 = vpop.f32.mrb[10].mxu1 }
 0x1d4   : > { %v7110_v12 = vpop.f32.mrb[11].mxu1 }
 0x1d9   : > { %v7112_v32 = vpop.f32.mrb[12].mxu1 }
 0x1da   : > { %v7114_v20 = vpop.f32.mrb[13].mxu1 }
 0x1db   : > { %v7116_v46 = vpop.f32.mrb[14].mxu1 }
 0x1dc   : > { %v7118_v49 = vpop.f32.mrb[15].mxu1 }
 0x1e1   : > { %v7120_v7 = vpop.f32.mrb[16].mxu1 }
 0x1e2   : > { %v7122_v4 = vpop.f32.mrb[17].mxu1 }
 0x1e3   : > { %v7124_v61 = vpop.f32.mrb[18].mxu1 }
 0x1e4   : > { %v7126_v58 = vpop.f32.mrb[19].mxu1 }
 0x1e9   : > { %v7128_v45 = vpop.f32.mrb[20].mxu1 }
 0x1ea   : > { %v7130_v27 = vpop.f32.mrb[21].mxu1 }
 0x1eb   : > { %v7132_v3 = vpop.f32.mrb[22].mxu1 }
 0x1ec   : > { %v7134_v56 = vpop.f32.mrb[23].mxu1 }
 0x1f1   : > { %v7136_v9 = vpop.f32.mrb[24].mxu1 }
 0x1f2   : > { %v7138_v62 = vpop.f32.mrb[25].mxu1 }
 0x1f3   : > { %v7140_v24 = vpop.f32.mrb[26].mxu1 }
 0x1f4   : > { %v7142_v41 = vpop.f32.mrb[27].mxu1 }
 0x1f9   : > { %v7144_v17 = vpop.f32.mrb[28].mxu1 }
 0x1fa   : > { %v7146_v57 = vpop.f32.mrb[29].mxu1 }
 0x1fb   : > { %v7148_v48 = vpop.f32.mrb[30].mxu1 }
 0x1fc   : > { %v7150_v60 = vpop.f32.mrb[31].mxu1 }
 0x201   : > { %v5647_v50 = vpop.f32.mrb[32].mxu1 }
 0x202   : > { %v3798_v22 = vpop.f32.mrb[33].mxu1  ;;  %v4124_v21 = vmul.f32 %v5647_v50, %v5647_v50 }
 0x203   : > { %v4122_v53 = vmul.f32 %v3798_v22, %v3798_v22  ;;  %v5648_v23 = vpop.f32.mrb[34].mxu1 }
 0x204   : > { %v4855_v52 = vpack.c.bf16 %v5648_v23, %v5647_v50  ;;  %v3801_v43 = vpop.f32.mrb[35].mxu1  ;;  %v5599_v0 = vpop.f32.mrb[0].mxu0  ;;  %v4125_v11 = vmul.f32 %v5648_v23, %v5648_v23 }
 0x205   : > { %v4850_v31 = vpack.c.bf16 %v3801_v43, %v3798_v22  ;;  %v4085_v15 = vadd.f32 %v3801_v43, %v3798_v22  ;;  %v4123_v36 = vmul.f32 %v3801_v43, %v3801_v43  ;;  %v5677_v25 = vadd.f32 %v5599_v0, %v5359_v1  ;;  %v3272_v59 = vpop.f32.mrb[1].mxu0 }
 0x206   : > { %4942 = vst [vmem:[%s7156_s17 + $0x8] sm:$0xff] %v4855_v52   ;;  %v5678_v44 = vadd.f32 %v3272_v59, %v1896_v34  ;;  %v5600_v28 = vpop.f32.mrb[2].mxu0 }
 0x207   : > { %4851 = vst [vmem:[%s7156_s17] sm:$0xff] %v4850_v31   ;;  %v4086_v14 = vadd.f32 %v5647_v50, %v4085_v15  ;;  %v4154_v10 = vadd.f32 %v4123_v36, %v4122_v53  ;;  %v5679_v8 = vadd.f32 %v5600_v28, %v5360_v6  ;;  %v3275_v63 = vpop.f32.mrb[3].mxu0  ;;  %v3630_v50 = vmul.f32 %v5677_v25, %v5677_v25 }
 0x208   : > { %v5680_v40 = vadd.f32 %v3275_v63, %v1899_v2  ;;  %v3628_v39 = vmul.f32 %v5678_v44, %v5678_v44 }
 0x209   : > { %v4155_v47 = vadd.f32 %v4154_v10, %v4124_v21  ;;  %v5651_v30 = vpop.f32.mrb[36].mxu1  ;;  %v4087_v51 = vadd.f32 %v5648_v23, %v4086_v14  ;;  %v4775_v16 = vpack.c.bf16 %v5679_v8, %v5677_v25  ;;  %v3631_v36 = vmul.f32 %v5679_v8, %v5679_v8 }
 0x20a   : > { %v3814_v33 = vpop.f32.mrb[37].mxu1  ;;  %v4770_v5 = vpack.c.bf16 %v5680_v40, %v5678_v44  ;;  %v3591_v54 = vadd.f32 %v5680_v40, %v5678_v44  ;;  %v3629_v1 = vmul.f32 %v5680_v40, %v5680_v40 }
 0x20b   : > { %v4088_v42 = vadd.f32 %v4087_v51, %v3814_v33  ;;  %v4126_v55 = vmul.f32 %v3814_v33, %v3814_v33  ;;  %v5652_v19 = vpop.f32.mrb[38].mxu1  ;;  %v4156_v34 = vadd.f32 %v4155_v47, %v4125_v11  ;;  %4927 = vst [vmem:[%s7163_s20 + $0x8] sm:$0xff] %v4775_v16   ;;  %v4128_v47 = vmul.f32 %v5651_v30, %v5651_v30 }
 0x20c   : > { %v3817_v6 = vpop.f32.mrb[39].mxu1  ;;  %v4865_v22 = vpack.c.bf16 %v5652_v19, %v5651_v30  ;;  %4771 = vst [vmem:[%s7163_s20] sm:$0xff] %v4770_v5   ;;  %v3592_v2 = vadd.f32 %v5677_v25, %v3591_v54  ;;  %v3660_v52 = vadd.f32 %v3629_v1, %v3628_v39  ;;  %v5603_v43 = vpop.f32.mrb[4].mxu0  ;;  %v4129_v5 = vmul.f32 %v5652_v19, %v5652_v19 }
 0x20d   : > { %v4860_v53 = vpack.c.bf16 %v3817_v6, %v3814_v33  ;;  %v4089_v23 = vadd.f32 %v4088_v42, %v3817_v6  ;;  %v4157_v31 = vadd.f32 %v4156_v34, %v4126_v55  ;;  %v4127_v15 = vmul.f32 %v3817_v6, %v3817_v6  ;;  %v3288_v21 = vpop.f32.mrb[5].mxu0 }
 0x20e   : > { %v5681_v0 = vadd.f32 %v5603_v43, %v7096_v35  ;;  %4944 = vst [vmem:[%s7156_s17 + $0x18] sm:$0xff] %v4865_v22   ;;  %v3661_v14 = vadd.f32 %v3660_v52, %v3630_v50  ;;  %v5682_v10 = vadd.f32 %v3288_v21, %v7098_v18  ;;  %v3593_v44 = vadd.f32 %v5679_v8, %v3592_v2  ;;  %v5604_v28 = vpop.f32.mrb[6].mxu0 }
 0x20f   : > { %4943 = vst [vmem:[%s7156_s17 + $0x10] sm:$0xff] %v4860_v53   ;;  %v4090_v59 = vadd.f32 %v5651_v30, %v4089_v23  ;;  %v4158_v63 = vadd.f32 %v4157_v31, %v4127_v15  ;;  %v5683_v25 = vadd.f32 %v5604_v28, %v7100_v29  ;;  %v3291_v51 = vpop.f32.mrb[7].mxu0 }
 0x210   : > { %v3594_v33 = vadd.f32 %v5682_v10, %v3593_v44  ;;  %v3632_v39 = vmul.f32 %v5682_v10, %v5682_v10  ;;  %v3662_v35 = vadd.f32 %v3661_v14, %v3631_v36  ;;  %v5684_v16 = vadd.f32 %v3291_v51, %v7102_v38 }
 0x211   : > { %v5655_v11 = vpop.f32.mrb[40].mxu1  ;;  %v4091_v40 = vadd.f32 %v5652_v19, %v4090_v59  ;;  %v4785_v55 = vpack.c.bf16 %v5683_v25, %v5681_v0  ;;  %v4159_v18 = vadd.f32 %v4158_v63, %v4128_v47  ;;  %v3634_v23 = vmul.f32 %v5681_v0, %v5681_v0 }
 0x212   : > { %v3830_v42 = vpop.f32.mrb[41].mxu1  ;;  %v3663_v54 = vadd.f32 %v3662_v35, %v3632_v39  ;;  %v4780_v1 = vpack.c.bf16 %v5684_v16, %v5682_v10  ;;  %v3595_v30 = vadd.f32 %v5684_v16, %v3594_v33  ;;  %v3633_v34 = vmul.f32 %v5684_v16, %v5684_v16 }
 0x213   : > { %v5656_v8 = vpop.f32.mrb[42].mxu1  ;;  %4929 = vst [vmem:[%s7163_s20 + $0x18] sm:$0xff] %v4785_v55   ;;  %v4092_v6 = vadd.f32 %v4091_v40, %v3830_v42  ;;  %v4130_v50 = vmul.f32 %v3830_v42, %v3830_v42  ;;  %v4160_v22 = vadd.f32 %v4159_v18, %v4129_v5  ;;  %v3635_v59 = vmul.f32 %v5683_v25, %v5683_v25 }
 0x214   : > { %v3833_v29 = vpop.f32.mrb[43].mxu1  ;;  %v4875_v53 = vpack.c.bf16 %v5656_v8, %v5655_v11  ;;  %4928 = vst [vmem:[%s7163_s20 + $0x10] sm:$0xff] %v4780_v1   ;;  %v3596_v38 = vadd.f32 %v5681_v0, %v3595_v30  ;;  %v3664_v2 = vadd.f32 %v3663_v54, %v3633_v34  ;;  %v5607_v52 = vpop.f32.mrb[8].mxu0  ;;  %v4132_v63 = vmul.f32 %v5655_v11, %v5655_v11 }
 0x215   : > { %v4870_v19 = vpack.c.bf16 %v3833_v29, %v3830_v42  ;;  %v5685_v43 = vadd.f32 %v5607_v52, %v7104_v13  ;;  %v3304_v31 = vpop.f32.mrb[9].mxu0  ;;  %v4161_v15 = vadd.f32 %v4160_v22, %v4130_v50  ;;  %v4093_v36 = vadd.f32 %v4092_v6, %v3833_v29 }
 0x216   : > { %4946 = vst [vmem:[%s7156_s17 + $0x28] sm:$0xff] %v4875_v53   ;;  %v4131_v21 = vmul.f32 %v3833_v29, %v3833_v29  ;;  %v3665_v14 = vadd.f32 %v3664_v2, %v3634_v23  ;;  %v5686_v10 = vadd.f32 %v3304_v31, %v7106_v26  ;;  %v3597_v44 = vadd.f32 %v5683_v25, %v3596_v38  ;;  %v5608_v28 = vpop.f32.mrb[10].mxu0 }
 0x217   : > { %4945 = vst [vmem:[%s7156_s17 + $0x20] sm:$0xff] %v4870_v19   ;;  %v5687_v0 = vadd.f32 %v5608_v28, %v7108_v37  ;;  %v3307_v47 = vpop.f32.mrb[11].mxu0  ;;  %v4094_v51 = vadd.f32 %v5655_v11, %v4093_v36  ;;  %v4133_v26 = vmul.f32 %v5656_v8, %v5656_v8  ;;  %v3638_v50 = vmul.f32 %v5685_v43, %v5685_v43 }
 0x218   : > { %v4162_v40 = vadd.f32 %v4161_v15, %v4131_v21  ;;  %v3598_v33 = vadd.f32 %v5686_v10, %v3597_v44  ;;  %v3636_v39 = vmul.f32 %v5686_v10, %v5686_v10  ;;  %v3666_v35 = vadd.f32 %v3665_v14, %v3635_v59 }
 0x219   : > { %v5659_v13 = vpop.f32.mrb[44].mxu1  ;;  %v5688_v16 = vadd.f32 %v3307_v47, %v7110_v12  ;;  %v4795_v55 = vpack.c.bf16 %v5687_v0, %v5685_v43  ;;  %v4095_v11 = vadd.f32 %v5656_v8, %v4094_v51  ;;  %v3639_v15 = vmul.f32 %v5687_v0, %v5687_v0 }
 0x21a   : > { %v3846_v42 = vpop.f32.mrb[45].mxu1  ;;  %v4163_v25 = vadd.f32 %v4162_v40, %v4132_v63  ;;  %v3667_v18 = vadd.f32 %v3666_v35, %v3636_v39  ;;  %v4136_v14 = vmul.f32 %v5659_v13, %v5659_v13 }
 0x21b   : > { %v5660_v5 = vpop.f32.mrb[46].mxu1  ;;  %v4790_v54 = vpack.c.bf16 %v5688_v16, %v5686_v10  ;;  %v3599_v1 = vadd.f32 %v5688_v16, %v3598_v33  ;;  %v3637_v37 = vmul.f32 %v5688_v16, %v5688_v16  ;;  %4931 = vst [vmem:[%s7163_s20 + $0x28] sm:$0xff] %v4795_v55   ;;  %v4134_v34 = vmul.f32 %v3846_v42, %v3846_v42 }
 0x21c   : > { %v3849_v30 = vpop.f32.mrb[47].mxu1  ;;  %v4164_v29 = vadd.f32 %v4163_v25, %v4133_v26  ;;  %v4885_v6 = vpack.c.bf16 %v5660_v5, %v5659_v13  ;;  %v5611_v53 = vpop.f32.mrb[12].mxu0  ;;  %v4096_v52 = vadd.f32 %v4095_v11, %v3846_v42 }
 0x21d   : > { %4930 = vst [vmem:[%s7163_s20 + $0x20] sm:$0xff] %v4790_v54   ;;  %v3600_v12 = vadd.f32 %v5685_v43, %v3599_v1  ;;  %v3668_v22 = vadd.f32 %v3667_v18, %v3637_v37  ;;  %v4880_v23 = vpack.c.bf16 %v3849_v30, %v3846_v42  ;;  %v5689_v38 = vadd.f32 %v5611_v53, %v7112_v32  ;;  %v3320_v2 = vpop.f32.mrb[13].mxu0 }
 0x21e   : > { %v4165_v19 = vadd.f32 %v4164_v29, %v4134_v34  ;;  %4948 = vst [vmem:[%s7156_s17 + $0x38] sm:$0xff] %v4885_v6   ;;  %v4135_v31 = vmul.f32 %v3849_v30, %v3849_v30  ;;  %v5690_v8 = vadd.f32 %v3320_v2, %v7114_v20  ;;  %v5612_v59 = vpop.f32.mrb[14].mxu0  ;;  %v4097_v44 = vadd.f32 %v4096_v52, %v3849_v30 }
 0x21f   : > { %v3669_v36 = vadd.f32 %v3668_v22, %v3638_v50  ;;  %v3601_v21 = vadd.f32 %v5687_v0, %v3600_v12  ;;  %4947 = vst [vmem:[%s7156_s17 + $0x30] sm:$0xff] %v4880_v23   ;;  %v5691_v43 = vadd.f32 %v5612_v59, %v7116_v46  ;;  %v3323_v10 = vpop.f32.mrb[15].mxu0  ;;  %v4137_v20 = vmul.f32 %v5660_v5, %v5660_v5 }
 0x220   : > { %v4166_v28 = vadd.f32 %v4165_v19, %v4135_v31  ;;  %v3640_v47 = vmul.f32 %v5690_v8, %v5690_v8  ;;  %v5692_v40 = vadd.f32 %v3323_v10, %v7118_v49  ;;  %v4098_v0 = vadd.f32 %v5659_v13, %v4097_v44 }
 0x221   : > { %v5663_v63 = vpop.f32.mrb[48].mxu1  ;;  %v3602_v32 = vadd.f32 %v5690_v8, %v3601_v21  ;;  %v3670_v51 = vadd.f32 %v3669_v36, %v3639_v15  ;;  %v4805_v39 = vpack.c.bf16 %v5691_v43, %v5689_v38  ;;  %v3642_v18 = vmul.f32 %v5689_v38, %v5689_v38 }
 0x222   : > { %v3862_v33 = vpop.f32.mrb[49].mxu1  ;;  %v4167_v35 = vadd.f32 %v4166_v28, %v4136_v14  ;;  %v4800_v55 = vpack.c.bf16 %v5692_v40, %v5690_v8  ;;  %v3641_v26 = vmul.f32 %v5692_v40, %v5692_v40  ;;  %v4099_v54 = vadd.f32 %v5660_v5, %v4098_v0 }
 0x223   : > { %v5664_v16 = vpop.f32.mrb[50].mxu1  ;;  %v3671_v42 = vadd.f32 %v3670_v51, %v3640_v47  ;;  %v3603_v46 = vadd.f32 %v5692_v40, %v3602_v32  ;;  %4933 = vst [vmem:[%s7163_s20 + $0x38] sm:$0xff] %v4805_v39   ;;  %v4138_v1 = vmul.f32 %v3862_v33, %v3862_v33  ;;  %v3643_v30 = vmul.f32 %v5691_v43, %v5691_v43 }
 0x224   : > { %v3865_v25 = vpop.f32.mrb[51].mxu1  ;;  %v4168_v37 = vadd.f32 %v4167_v35, %v4137_v20  ;;  %4932 = vst [vmem:[%s7163_s20 + $0x30] sm:$0xff] %v4800_v55   ;;  %v5615_v34 = vpop.f32.mrb[16].mxu0  ;;  %v4895_v13 = vpack.c.bf16 %v5664_v16, %v5663_v63  ;;  %v4100_v50 = vadd.f32 %v4099_v54, %v3862_v33  ;;  %v4140_v19 = vmul.f32 %v5663_v63, %v5663_v63 }
 0x225   : > { %v3604_v49 = vadd.f32 %v5689_v38, %v3603_v46  ;;  %v3672_v11 = vadd.f32 %v3671_v42, %v3641_v26  ;;  %v5693_v29 = vadd.f32 %v5615_v34, %v7120_v7  ;;  %v3336_v6 = vpop.f32.mrb[17].mxu0  ;;  %v4890_v22 = vpack.c.bf16 %v3865_v25, %v3862_v33 }
 0x226   : > { %v4169_v12 = vadd.f32 %v4168_v37, %v4138_v1  ;;  %v5694_v23 = vadd.f32 %v3336_v6, %v7122_v4  ;;  %v5616_v2 = vpop.f32.mrb[18].mxu0  ;;  %4950 = vst [vmem:[%s7156_s17 + $0x48] sm:$0xff] %v4895_v13   ;;  %v4139_v52 = vmul.f32 %v3865_v25, %v3865_v25  ;;  %v4101_v15 = vadd.f32 %v4100_v50, %v3865_v25 }
 0x227   : > { %v3673_v53 = vadd.f32 %v3672_v11, %v3642_v18  ;;  %v3605_v5 = vadd.f32 %v5691_v43, %v3604_v49  ;;  %v5695_v38 = vadd.f32 %v5616_v2, %v7124_v61  ;;  %v3339_v31 = vpop.f32.mrb[19].mxu0  ;;  %4949 = vst [vmem:[%s7156_s17 + $0x40] sm:$0xff] %v4890_v22   ;;  %v4141_v4 = vmul.f32 %v5664_v16, %v5664_v16 }
 0x228   : > { %v3644_v7 = vmul.f32 %v5694_v23, %v5694_v23  ;;  %v5696_v59 = vadd.f32 %v3339_v31, %v7126_v58  ;;  %v4102_v43 = vadd.f32 %v5663_v63, %v4101_v15  ;;  %v4170_v44 = vadd.f32 %v4169_v12, %v4139_v52 }
 0x229   : > { %v5667_v36 = vpop.f32.mrb[52].mxu1  ;;  %v3606_v8 = vadd.f32 %v5694_v23, %v3605_v5  ;;  %v3674_v21 = vadd.f32 %v3673_v53, %v3643_v30  ;;  %v4815_v10 = vpack.c.bf16 %v5695_v38, %v5693_v29  ;;  %v3646_v33 = vmul.f32 %v5693_v29, %v5693_v29 }
 0x22a   : > { %v3878_v14 = vpop.f32.mrb[53].mxu1  ;;  %v4810_v47 = vpack.c.bf16 %v5696_v59, %v5694_v23  ;;  %v3645_v51 = vmul.f32 %v5696_v59, %v5696_v59  ;;  %v4171_v39 = vadd.f32 %v4170_v44, %v4140_v19  ;;  %v4103_v20 = vadd.f32 %v5664_v16, %v4102_v43 }
 0x22b   : > { %v5668_v28 = vpop.f32.mrb[54].mxu1  ;;  %v3675_v32 = vadd.f32 %v3674_v21, %v3644_v7  ;;  %v3607_v61 = vadd.f32 %v5696_v59, %v3606_v8  ;;  %4935 = vst [vmem:[%s7163_s20 + $0x48] sm:$0xff] %v4815_v10   ;;  %v4142_v0 = vmul.f32 %v3878_v14, %v3878_v14  ;;  %v3647_v35 = vmul.f32 %v5695_v38, %v5695_v38 }
 0x22c   : > { %v3881_v40 = vpop.f32.mrb[55].mxu1  ;;  %4934 = vst [vmem:[%s7163_s20 + $0x40] sm:$0xff] %v4810_v47   ;;  %v5619_v55 = vpop.f32.mrb[20].mxu0  ;;  %v4905_v46 = vpack.c.bf16 %v5668_v28, %v5667_v36  ;;  %v4104_v25 = vadd.f32 %v4103_v20, %v3878_v14  ;;  %v4172_v18 = vadd.f32 %v4171_v39, %v4141_v4  ;;  %v4144_v11 = vmul.f32 %v5667_v36, %v5667_v36 }
 0x22d   : > { %v3608_v58 = vadd.f32 %v5693_v29, %v3607_v61  ;;  %v3676_v42 = vadd.f32 %v3675_v32, %v3645_v51  ;;  %v5697_v63 = vadd.f32 %v5619_v55, %v7128_v45  ;;  %v3352_v26 = vpop.f32.mrb[21].mxu0  ;;  %v4900_v54 = vpack.c.bf16 %v3881_v40, %v3878_v14 }
 0x22e   : > { %v5698_v37 = vadd.f32 %v3352_v26, %v7130_v27  ;;  %v5620_v16 = vpop.f32.mrb[22].mxu0  ;;  %4952 = vst [vmem:[%s7156_s17 + $0x58] sm:$0xff] %v4905_v46   ;;  %v4143_v49 = vmul.f32 %v3881_v40, %v3881_v40  ;;  %v4173_v34 = vadd.f32 %v4172_v18, %v4142_v0  ;;  %v4105_v6 = vadd.f32 %v4104_v25, %v3881_v40 }
 0x22f   : > { %v3677_v1 = vadd.f32 %v3676_v42, %v3646_v33  ;;  %v3609_v30 = vadd.f32 %v5695_v38, %v3608_v58  ;;  %v5699_v13 = vadd.f32 %v5620_v16, %v7132_v3  ;;  %v3355_v29 = vpop.f32.mrb[23].mxu0  ;;  %4951 = vst [vmem:[%s7156_s17 + $0x50] sm:$0xff] %v4900_v54   ;;  %v4145_v5 = vmul.f32 %v5668_v28, %v5668_v28 }
 0x230   : > { %v3648_v12 = vmul.f32 %v5698_v37, %v5698_v37  ;;  %v5700_v53 = vadd.f32 %v3355_v29, %v7134_v56  ;;  %v4106_v2 = vadd.f32 %v5667_v36, %v4105_v6  ;;  %v4174_v52 = vadd.f32 %v4173_v34, %v4143_v49 }
 0x231   : > { %v5671_v50 = vpop.f32.mrb[56].mxu1  ;;  %v3610_v45 = vadd.f32 %v5698_v37, %v3609_v30  ;;  %v3678_v22 = vadd.f32 %v3677_v1, %v3647_v35  ;;  %v4825_v27 = vpack.c.bf16 %v5699_v13, %v5697_v63  ;;  %v3650_v7 = vmul.f32 %v5697_v63, %v5697_v63 }
 0x232   : > { %v3894_v23 = vpop.f32.mrb[57].mxu1  ;;  %v4820_v31 = vpack.c.bf16 %v5700_v53, %v5698_v37  ;;  %v3649_v15 = vmul.f32 %v5700_v53, %v5700_v53  ;;  %v4175_v21 = vadd.f32 %v4174_v52, %v4144_v11  ;;  %v4107_v59 = vadd.f32 %v5668_v28, %v4106_v2 }
 0x233   : > { %v5672_v19 = vpop.f32.mrb[58].mxu1  ;;  %v3679_v38 = vadd.f32 %v3678_v22, %v3648_v12  ;;  %v3611_v3 = vadd.f32 %v5700_v53, %v3610_v45  ;;  %4937 = vst [vmem:[%s7163_s20 + $0x58] sm:$0xff] %v4825_v27   ;;  %v4146_v14 = vmul.f32 %v3894_v23, %v3894_v23  ;;  %v3651_v10 = vmul.f32 %v5699_v13, %v5699_v13 }
 0x234   : > { %v3897_v8 = vpop.f32.mrb[59].mxu1  ;;  %4936 = vst [vmem:[%s7163_s20 + $0x50] sm:$0xff] %v4820_v31   ;;  %v5623_v43 = vpop.f32.mrb[24].mxu0  ;;  %v4915_v44 = vpack.c.bf16 %v5672_v19, %v5671_v50  ;;  %v4108_v47 = vadd.f32 %v4107_v59, %v3894_v23  ;;  %v4176_v61 = vadd.f32 %v4175_v21, %v4145_v5  ;;  %v4148_v0 = vmul.f32 %v5671_v50, %v5671_v50 }
 0x235   : > { %v3612_v56 = vadd.f32 %v5697_v63, %v3611_v3  ;;  %v3680_v4 = vadd.f32 %v3679_v38, %v3649_v15  ;;  %v5701_v36 = vadd.f32 %v5623_v43, %v7136_v9  ;;  %v3368_v32 = vpop.f32.mrb[25].mxu0  ;;  %v4910_v51 = vpack.c.bf16 %v3897_v8, %v3894_v23 }
 0x236   : > { %v5702_v33 = vadd.f32 %v3368_v32, %v7138_v62  ;;  %v5624_v28 = vpop.f32.mrb[26].mxu0  ;;  %4954 = vst [vmem:[%s7156_s17 + $0x68] sm:$0xff] %v4915_v44   ;;  %v4147_v20 = vmul.f32 %v3897_v8, %v3897_v8  ;;  %v4177_v35 = vadd.f32 %v4176_v61, %v4146_v14  ;;  %v4109_v55 = vadd.f32 %v4108_v47, %v3897_v8 }
 0x237   : > { %v3681_v40 = vadd.f32 %v3680_v4, %v3650_v7  ;;  %v3613_v39 = vadd.f32 %v5699_v13, %v3612_v56  ;;  %v5703_v58 = vadd.f32 %v5624_v28, %v7140_v24  ;;  %v3371_v42 = vpop.f32.mrb[27].mxu0  ;;  %4953 = vst [vmem:[%s7156_s17 + $0x60] sm:$0xff] %v4910_v51   ;;  %v4149_v54 = vmul.f32 %v5672_v19, %v5672_v19 }
 0x238   : > { %v3652_v63 = vmul.f32 %v5702_v33, %v5702_v33  ;;  %v5704_v25 = vadd.f32 %v3371_v42, %v7142_v41  ;;  %v4110_v1 = vadd.f32 %v5671_v50, %v4109_v55  ;;  %v4178_v37 = vadd.f32 %v4177_v35, %v4147_v20 }
 0x239   : > { %v5675_v46 = vpop.f32.mrb[60].mxu1  ;;  %v3614_v9 = vadd.f32 %v5702_v33, %v3613_v39  ;;  %v3682_v26 = vadd.f32 %v3681_v40, %v3651_v10  ;;  %v4835_v62 = vpack.c.bf16 %v5703_v58, %v5701_v36  ;;  %v3654_v13 = vmul.f32 %v5701_v36, %v5701_v36 }
 0x23a   : > { %v3910_v18 = vpop.f32.mrb[61].mxu1  ;;  %v4830_v49 = vpack.c.bf16 %v5704_v25, %v5702_v33  ;;  %v3653_v11 = vmul.f32 %v5704_v25, %v5704_v25  ;;  %v4179_v29 = vadd.f32 %v4178_v37, %v4148_v0  ;;  %v4111_v6 = vadd.f32 %v5672_v19, %v4110_v1 }
 0x23b   : > { %v5676_v30 = vpop.f32.mrb[62].mxu1  ;;  %v3683_v16 = vadd.f32 %v3682_v26, %v3652_v63  ;;  %v3615_v24 = vadd.f32 %v5704_v25, %v3614_v9  ;;  %4939 = vst [vmem:[%s7163_s20 + $0x68] sm:$0xff] %v4835_v62   ;;  %v4150_v45 = vmul.f32 %v3910_v18, %v3910_v18  ;;  %v3655_v12 = vmul.f32 %v5703_v58, %v5703_v58 }
 0x23c   : > { %v3913_v34 = vpop.f32.mrb[63].mxu1  ;;  %4938 = vst [vmem:[%s7163_s20 + $0x60] sm:$0xff] %v4830_v49   ;;  %v5627_v53 = vpop.f32.mrb[28].mxu0  ;;  %v4925_v50 = vpack.c.bf16 %v5676_v30, %v5675_v46  ;;  %v4112_v5 = vadd.f32 %v4111_v6, %v3910_v18  ;;  %v4180_v2 = vadd.f32 %v4179_v29, %v4149_v54  ;;  %v4152_v4 = vmul.f32 %v5675_v46, %v5675_v46 }
 0x23d   : > { %v3616_v41 = vadd.f32 %v5701_v36, %v3615_v24  ;;  %v3684_v22 = vadd.f32 %v3683_v16, %v3653_v11  ;;  %v5705_v23 = vadd.f32 %v5627_v53, %v7144_v17  ;;  %v3384_v27 = vpop.f32.mrb[29].mxu0  ;;  %v4920_v52 = vpack.c.bf16 %v3913_v34, %v3910_v18 }
 0x23e   : > { %v5706_v31 = vadd.f32 %v3384_v27, %v7146_v57  ;;  %v5628_v19 = vpop.f32.mrb[30].mxu0  ;;  %4956 = vst [vmem:[%s7156_s17 + $0x78] sm:$0xff] %v4925_v50   ;;  %v4151_v15 = vmul.f32 %v3913_v34, %v3913_v34  ;;  %v4181_v8 = vadd.f32 %v4180_v2, %v4150_v45  ;;  %v4113_v59 = vadd.f32 %v4112_v5, %v3913_v34 }
 0x23f   : > { %v3685_v38 = vadd.f32 %v3684_v22, %v3654_v13  ;;  %v3617_v3 = vadd.f32 %v5703_v58, %v3616_v41  ;;  %v5707_v7 = vadd.f32 %v5628_v19, %v7148_v48  ;;  %v3387_v21 = vpop.f32.mrb[31].mxu0  ;;  %4955 = vst [vmem:[%s7156_s17 + $0x70] sm:$0xff] %v4920_v52   ;;  %v4153_v48 = vmul.f32 %v5676_v30, %v5676_v30 }
 0x240   : > { %v3656_v17 = vmul.f32 %v5706_v31, %v5706_v31  ;;  %v5708_v56 = vadd.f32 %v3387_v21, %v7150_v60  ;;  %v4114_v57 = vadd.f32 %v5675_v46, %v4113_v59  ;;  %v4182_v44 = vadd.f32 %v4181_v8, %v4151_v15 }
 0x241   : > { %v3618_v14 = vadd.f32 %v5706_v31, %v3617_v3  ;;  %v3686_v10 = vadd.f32 %v3685_v38, %v3655_v12  ;;  %v4845_v43 = vpack.c.bf16 %v5707_v7, %v5705_v23  ;;  %v3658_v33 = vmul.f32 %v5705_v23, %v5705_v23 }
 0x242   : > { %v4840_v32 = vpack.c.bf16 %v5708_v56, %v5706_v31  ;;  %v3657_v61 = vmul.f32 %v5708_v56, %v5708_v56  ;;  %v4115_v51 = vadd.f32 %v5676_v30, %v4114_v57  ;;  %v4183_v40 = vadd.f32 %v4182_v44, %v4152_v4 }
 0x243   : > { %v3687_v36 = vadd.f32 %v3686_v10, %v3656_v17  ;;  %v3619_v47 = vadd.f32 %v5708_v56, %v3618_v14  ;;  %4941 = vst [vmem:[%s7163_s20 + $0x78] sm:$0xff] %v4845_v43   ;;  %v3659_v35 = vmul.f32 %v5707_v7, %v5707_v7 }
 0x244   : > { %4940 = vst [vmem:[%s7163_s20 + $0x70] sm:$0xff] %v4840_v32   ;;  %v4116_v20 = vrot.slane %v4115_v51, 4  ;;  %v4184_v0 = vadd.f32 %v4183_v40, %v4153_v48 }
 0x245   : > { %v3620_v39 = vadd.f32 %v5705_v23, %v3619_v47  ;;  %v3688_v28 = vadd.f32 %v3687_v36, %v3657_v61 }
 0x246   : > { %v4117_v42 = vadd.f32 %v4116_v20, %v4115_v51  ;;  %v4185_v55 = vrot.slane %v4184_v0, 4 }
 0x247   : > { %v3621_v60 = vadd.f32 %v5707_v7, %v3620_v39  ;;  %v3689_v58 = vadd.f32 %v3688_v28, %v3658_v33 }
 0x248   : > { %v4118_v63 = vrot.slane %v4117_v42, 2  ;;  %v4186_v26 = vadd.f32 %v4185_v55, %v4184_v0 }
 0x249   : > { %v3622_v46 = vrot.slane %v3621_v60, 4  ;;  %v3690_v9 = vadd.f32 %v3689_v58, %v3659_v35 }
 0x24a   : > { %v4119_v62 = vadd.f32 %v4118_v63, %v4117_v42  ;;  %v4187_v54 = vrot.slane %v4186_v26, 2 }
 0x24b   : > { %v3623_v25 = vadd.f32 %v3622_v46, %v3621_v60  ;;  %v3691_v18 = vrot.slane %v3690_v9, 4 }
 0x24c   : > { %v4120_v30 = vrot.slane %v4119_v62, 1  ;;  %v4188_v16 = vadd.f32 %v4187_v54, %v4186_v26 }
 0x24d   : > { %v3624_v1 = vrot.slane %v3623_v25, 2  ;;  %v3692_v37 = vadd.f32 %v3691_v18, %v3690_v9 }
 0x24e   : > { %v4189_v11 = vrot.slane %v4188_v16, 1  ;;  %v4121_v29 = vadd.f32 %v4120_v30, %v4119_v62 }
 0x24f   : > { %v3625_v49 = vadd.f32 %v3624_v1, %v3623_v25  ;;  %v3693_v24 = vrot.slane %v3692_v37, 2 }
 0x250   : > { %v4190_v6 = vadd.f32 %v4189_v11, %v4188_v16 }
 0x251   : > { %v3626_v34 = vrot.slane %v3625_v49, 1  ;;  %v3694_v13 = vadd.f32 %v3693_v24, %v3692_v37 }
 0x252   : > { %v4191_v12 = vsel %vm3697_vm6, %v4121_v29, %v4190_v6 }
 0x253   : > { %v3695_v45 = vrot.slane %v3694_v13, 1  ;;  %v3627_v41 = vadd.f32 %v3626_v34, %v3625_v49  ;;  %4192 = vst [vmem:[%s284_s27] sm:$0x3] %v4191_v12 }
 0x255   : > { %v3696_v22 = vadd.f32 %v3695_v45, %v3694_v13 }
 0x257   : > { %v3698_v53 = vsel %vm3697_vm6, %v3627_v41, %v3696_v22 }
 0x258   : > { %3699 = vst [vmem:[%s275_s30] sm:$0x3] %v3698_v53 }
 0x259 PF: > { %s17_s21 = sadd.s32 1, %s6049_s21  }
 0x25a   : > { %p14_p4 = scmp.ge.s32.totalorder %s17_s21, 4  }
 0x25c   :  { %16 = sbr.rel (!%p14_p4) target bundleno = 1 (0x1), region = 106 }

// kernel: double_conv_pallas.10
= control target key start
LH: loop header
LB: loop body
LE: loop exit
PB: predicated region body
PF: predicated region fallthrough
CT: control target
= control target key end

     0   :  { %s5190_s12 = smov 0   ;;  %s6221_s0 = inlined_call_operand.vmem [shape: bf16[2,18,18,128], index: 0, kind: input, shape index: {}]   ;;  %s6222_s1 = inlined_call_operand.vmem [shape: bf16[9,128,128], index: 1, kind: input, shape index: {}]   ;;  %s6223_s2 = inlined_call_operand.vmem [shape: bf16[2,256,128], index: 2, kind: output, shape index: {0}]   ;;  %s6224_s3 = inlined_call_operand.vmem [shape: f32[2,2,128], index: 3, kind: output, shape index: {1}]  }
   0x1 LB: > { %s3683_s13 = sadd.s32 4294967295, %s5168_s12   ;;  %p3687_p0 = scmp.ge.s32.totalorder %s5168_s12, 1  ;;  %s5168_s12 = sphi %s5190_s12, %s14_s12  }
   0x2   : > { %p140_p1 = scmp.lt.s32.totalorder %s5168_s12, 3 }
   0x4   : > { %p141_p2 = pnand %p3687_p0, %p140_p1 }
   0x6   : > { %144 = sbr.rel (%p141_p2) target bundleno = 576 (0x240), region = 28 }
   0xd   : > { %v5055_v0 = vld [vmem:[%s6222_s1 + $0x40] sm:$0xff]   ;;  %p168_p3 = scmp.lt.s32.totalorder %s3683_s13, 1  ;;  %v5057_v2 = vld [vmem:[%s6222_s1 + $0x48] sm:$0xff]   ;;  %v5059_v4 = vld [vmem:[%s6222_s1 + $0x50] sm:$0xff]   ;;  %vm253_vm0 = vsmask.f32 3328 }
   0xe   : > { %v5056_v1 = vld [vmem:[%s6222_s1 + $0x100] sm:$0xff]   ;;  %4342 = vmatprep.subr.bf16.mxu1 %v5055_v0  ;;  %v5058_v3 = vld [vmem:[%s6222_s1 + $0x108] sm:$0xff]   ;;  %v5060_v5 = vld [vmem:[%s6222_s1 + $0x110] sm:$0xff]   ;;  %vm254_vm1 = vsmask.f32 7440  ;;  %vm1251_vm3 = vcmask 1042432  }
   0xf   : > { %4534 = vmatprep.subr.bf16.mxu0 %v5056_v1  ;;  %4343 = vmatpush3.bf16.msra.mxu1 %v5055_v0  ;;  %s6269_s13 = smov (!%p168_p3, %s3683_s13), 1  ;;  %v5061_v6 = vld [vmem:[%s6222_s1 + $0x58] sm:$0xff]   ;;  %v5063_v8 = vld [vmem:[%s6222_s1 + $0x60] sm:$0xff]   ;;  %v5065_v10 = vld [vmem:[%s6222_s1 + $0x68] sm:$0xff]   ;;  %vm1252_vm4 = vcmask 1046532   ;;  %vm3594_vm6 = vcmask 1040384  }
  0x10   : > { %4535 = vmatpush3.bf16.msra.mxu0 %v5056_v1  ;;  %4344 = vmatprep.subr.bf16.mxu1 %v5057_v2  ;;  %v5062_v7 = vld [vmem:[%s6222_s1 + $0x118] sm:$0xff]   ;;  %s5046_s30 = smul.u32 216, %s6269_s13  ;;  %v5064_v9 = vld [vmem:[%s6222_s1 + $0x120] sm:$0xff]   ;;  %v5066_v11 = vld [vmem:[%s6222_s1 + $0x128] sm:$0xff]   ;;  %s3998_s5 = sshll.u32 %s6269_s13, 7 }
  0x11   : > { %4536 = vmatprep.subr.bf16.mxu0 %v5058_v3  ;;  %v5067_v17 = vld [vmem:[%s6222_s1 + $0x70] sm:$0xff]   ;;  %v5069_v36 = vld [vmem:[%s6222_s1 + $0x78] sm:$0xff]   ;;  %vm5279_vm2 = vmor %vm253_vm0, %vm254_vm1  ;;  %s6192_s8 = scalar_lea.vmem %s6223_s2, %s3998_s5  ;;  %s3691_s9 = sshll.u32 %s6269_s13, 1 }
  0x12   : > { %s5234_s10 = scalar_lea.vmem %s6221_s0, %s5046_s30  ;;  %v5068_v31 = vld [vmem:[%s6222_s1 + $0x130] sm:$0xff]   ;;  %v5070_v53 = vld [vmem:[%s6222_s1 + $0x138] sm:$0xff]   ;;  %v5071_v1 = vld [vmem:[%s6222_s1] sm:$0xff]   ;;  %s181_s15 = scalar_lea.vmem %s6224_s3, %s3691_s9 }
  0x13   : > { %4345 = vmatpush3.bf16.msra.mxu1 %v5057_v2  ;;  %v5243_v12 = vld [vmem:[%s5234_s10] sm:$0xf]  ;;  %v5246_v13 = vld [vmem:[%s5234_s10 + $0x4] sm:$0xf]  ;;  %v185_v14 = vld [vmem:[%s5234_s10 + $0x8] sm:$0x1] }
  0x14   : > { %4537 = vmatpush3.bf16.msra.mxu0 %v5058_v3  ;;  %4346 = vmatprep.subr.bf16.mxu1 %v5059_v4  ;;  %v257_v15 = vshrl.u32 %v5243_v12, 16  ;;  %v260_v16 = vshll.u32 %v5243_v12, 16  ;;  %v266_v18 = vshll.u32 %v5246_v13, 16  ;;  %v270_v19 = vshrl.u32 %v5246_v13, 16  ;;  %v5257_v21 = vld [vmem:[%s5234_s10 + $0xc] sm:$0xf]  ;;  %vm5486_vm5 = vmor %vm1251_vm3, %vm1252_vm4 }
  0x15   : > { %4538 = vmatprep.subr.bf16.mxu0 %v5060_v5  ;;  %v276_v20 = vshll.u32 %v185_v14, 16  ;;  %v5260_v24 = vld [vmem:[%s5234_s10 + $0x10] sm:$0xf]  ;;  %v5263_v25 = vld [vmem:[%s5234_s10 + $0x14] sm:$0x1]  ;;  %v281_v30 = vshrl.u32 %v5257_v21, 16 }
  0x16   : > { %v259_v22 = vrot.slane %v257_v15, 4  ;;  %v262_v23 = vrot.slane %v260_v16, 5  ;;  %v268_v27 = vrot.slane %v266_v18, 5  ;;  %v272_v28 = vrot.slane %v270_v19, 4  ;;  %v5285_v41 = vld [vmem:[%s5234_s10 + $0x18] sm:$0xf] }
  0x17   : > { %4347 = vmatpush3.bf16.msra.mxu1 %v5059_v4  ;;  %v278_v29 = vrot.slane %v276_v20, 5  ;;  %v284_v33 = vshll.u32 %v5257_v21, 16  ;;  %v290_v34 = vshll.u32 %v5260_v24, 16  ;;  %v294_v35 = vshrl.u32 %v5260_v24, 16  ;;  %v5288_v42 = vld [vmem:[%s5234_s10 + $0x1c] sm:$0xf] }
  0x18   : > { %4539 = vmatpush3.bf16.msra.mxu0 %v5060_v5  ;;  %4348 = vmatprep.subr.bf16.mxu1 %v5061_v6  ;;  %v263_v32 = vor.u32 %v262_v23, %v259_v22  ;;  %v273_v38 = vor.u32 %v272_v28, %v268_v27  ;;  %v283_v39 = vrot.slane %v281_v30, 4  ;;  %v300_v40 = vshll.u32 %v5263_v25, 16  ;;  %v5295_v48 = vld [vmem:[%s5234_s10 + $0x20] sm:$0x1]  ;;  %v5312_v3 = vld [vmem:[%s5234_s10 + $0x24] sm:$0xf] }
  0x19   : > { %4540 = vmatprep.subr.bf16.mxu0 %v5062_v7  ;;  %v5292_v43 = vcombine.low %v5257_v21, %v5260_v24  ;;  %v286_v45 = vrot.slane %v284_v33, 5  ;;  %v292_v46 = vrot.slane %v290_v34, 5  ;;  %v296_v47 = vrot.slane %v294_v35, 4  ;;  %v5327_v14 = vld [vmem:[%s5234_s10 + $0x2c] sm:$0x1]  ;;  %v5161_v37 = vld [vmem:[%s6222_s1 + $0x138] sm:$0xff]  }
  0x1a   : > { %v264_v44 = vrot.slane %v263_v32, 4  ;;  %v274_v49 = vrot.slane %v273_v38, 4  ;;  %v302_v50 = vrot.slane %v300_v40, 5  ;;  %v305_v51 = vshrl.u32 %v5285_v41, 16  ;;  %v5332_v22 = vld [vmem:[%s5234_s10 + $0x30] sm:$0xf] }
  0x1b   : > { %4349 = vmatpush3.bf16.msra.mxu1 %v5061_v6  ;;  %v308_v52 = vshll.u32 %v5285_v41, 16  ;;  %v287_v55 = vor.u32 %v286_v45, %v283_v39  ;;  %v297_v56 = vor.u32 %v296_v47, %v292_v46  ;;  %v314_v57 = vshll.u32 %v5288_v42, 16  ;;  %v5337_v30 = vld [vmem:[%s5234_s10 + $0x34] sm:$0xf]  ;;  %v5074_v34 = vld [vmem:[%s6222_s1 + $0x8] sm:$0xff]  }
  0x1c   : > { %4541 = vmatpush3.bf16.msra.mxu0 %v5062_v7  ;;  %4350 = vmatprep.subr.bf16.mxu1 %v5063_v8  ;;  %v269_v54 = vsel %vm5279_vm2, %v264_v44, %v268_v27  ;;  %v279_v58 = vsel %vm5279_vm2, %v274_v49, %v278_v29  ;;  %v307_v59 = vrot.slane %v305_v51, 4  ;;  %v318_v61 = vshrl.u32 %v5288_v42, 16  ;;  %v5346_v35 = vld [vmem:[%s5234_s10 + $0x38] sm:$0x1] }
  0x1d   : > { %4542 = vmatprep.subr.bf16.mxu0 %v5064_v9  ;;  %v310_v60 = vrot.slane %v308_v52, 5  ;;  %v3708_v62 = vcombine.low %v269_v54, %v279_v58  ;;  %v288_v63 = vrot.slane %v287_v55, 4  ;;  %v298_v0 = vrot.slane %v297_v56, 4  ;;  %v5361_v58 = vld [vmem:[%s5234_s10 + $0x3c] sm:$0xf] }
  0x1e   : > { %v316_v2 = vrot.slane %v314_v57, 5  ;;  %v320_v5 = vrot.slane %v318_v61, 4  ;;  %v324_v6 = vshll.u32 %v5295_v48, 16  ;;  %v1273_v7 = vrot.slane %v5295_v48, 5 }
  0x1f   : > { %4351 = vmatpush3.bf16.msra.mxu1 %v5063_v8  ;;  %v311_v4 = vor.u32 %v310_v60, %v307_v59  ;;  %v5072_v8 = vld [vmem:[%s6222_s1 + $0x140] sm:$0xff]   ;;  %4358 = vmatprep.mubr.bf16.mxu1 %v3708_v62  ;;  %v329_v15 = vshrl.u32 %v5312_v3, 16  ;;  %v332_v16 = vshll.u32 %v5312_v3, 16  ;;  %v348_v33 = vshll.u32 %v5327_v14, 16  ;;  %v5077_v59 = vld [vmem:[%s6222_s1 + $0x10] sm:$0xff]  }
  0x20   : > { %4543 = vmatpush3.bf16.msra.mxu0 %v5064_v9  ;;  %4352 = vmatprep.subr.bf16.mxu1 %v5065_v10  ;;  %v5320_v9 = vld [vmem:[%s5234_s10 + $0x28] sm:$0xf]  ;;  %v321_v19 = vor.u32 %v320_v5, %v316_v2  ;;  %v326_v20 = vrot.slane %v324_v6, 5  ;;  %v356_v44 = vshll.u32 %v5332_v22, 16  ;;  %v366_v56 = vshrl.u32 %v5337_v30, 16 }
  0x21   : > { %4544 = vmatprep.subr.bf16.mxu0 %v5066_v11  ;;  %v312_v18 = vrot.slane %v311_v4, 4  ;;  %v331_v23 = vrot.slane %v329_v15, 4  ;;  %v334_v27 = vrot.slane %v332_v16, 5  ;;  %v338_v28 = vshll.u32 %v5320_v9, 16  ;;  %v5075_v16 = vld [vmem:[%s6222_s1 + $0x150] sm:$0xff]  }
  0x22   : > { %v342_v29 = vshrl.u32 %v5320_v9, 16  ;;  %v322_v32 = vrot.slane %v321_v19, 4  ;;  %v350_v47 = vrot.slane %v348_v33, 5  ;;  %v358_v54 = vrot.slane %v356_v44, 5  ;;  %v5401_v33 = vld [vmem:[%s5234_s10 + $0x50] sm:$0x1] }
  0x23   : > { %4353 = vmatpush3.bf16.msra.mxu1 %v5065_v10  ;;  %v293_v10 = vsel %vm5279_vm2, %v288_v63, %v292_v46  ;;  %v335_v38 = vor.u32 %v334_v27, %v331_v23  ;;  %v340_v39 = vrot.slane %v338_v28, 5  ;;  %v5073_v46 = vld [vmem:[%s6222_s1 + $0x148] sm:$0xff]   ;;  %v372_v57 = vshll.u32 %v5346_v35, 16 }
  0x24   : > { %4545 = vmatpush3.bf16.msra.mxu0 %v5066_v11  ;;  %4354 = vmatprep.subr.bf16.mxu1 %v5067_v17  ;;  %v303_v11 = vsel %vm5279_vm2, %v298_v0, %v302_v50  ;;  %v344_v40 = vrot.slane %v342_v29, 4  ;;  %v327_v45 = vsel %vm5279_vm2, %v322_v32, %v326_v20  ;;  %v362_v50 = vshll.u32 %v5337_v30, 16  ;;  %v5375_v0 = vld [vmem:[%s5234_s10 + $0x40] sm:$0xf]  ;;  %v5392_v27 = vld [vmem:[%s5234_s10 + $0x48] sm:$0xf] }
  0x25   : > { %4546 = vmatprep.subr.bf16.mxu0 %v5068_v31  ;;  %v336_v52 = vrot.slane %v335_v38, 4  ;;  %v5368_v60 = vcombine.low %v5285_v41, %v5288_v42  ;;  %v368_v4 = vrot.slane %v366_v56, 4  ;;  %v374_v5 = vrot.slane %v372_v57, 5  ;;  %v5395_v28 = vld [vmem:[%s5234_s10 + $0x4c] sm:$0xf] }
  0x26   : > { %v364_v55 = vrot.slane %v362_v50, 5  ;;  %v380_v6 = vshll.u32 %v5361_v58, 16  ;;  %v410_v44 = vshll.u32 %v5395_v28, 16  ;;  %v414_v50 = vshrl.u32 %v5395_v28, 16 }
  0x27   : > { %4355 = vmatpush3.bf16.msra.mxu1 %v5067_v17  ;;  %v3709_v17 = vcombine.low %v293_v10, %v303_v11  ;;  %v341_v61 = vsel %vm5279_vm2, %v336_v52, %v340_v39  ;;  %v386_v10 = vshll.u32 %v5375_v0, 16 }
  0x28   : > { %4547 = vmatpush3.bf16.msra.mxu0 %v5068_v31  ;;  %4356 = vmatprep.subr.bf16.mxu1 %v5069_v36  ;;  %v317_v31 = vsel %vm5279_vm2, %v312_v18, %v316_v2  ;;  %v377_v2 = vshrl.u32 %v5361_v58, 16  ;;  %v369_v19 = vor.u32 %v368_v4, %v364_v55  ;;  %v382_v20 = vrot.slane %v380_v6, 5  ;;  %v5432_v6 = vld [vmem:[%s5234_s10 + $0x58] sm:$0xf] }
  0x29   : > { %4548 = vmatprep.subr.bf16.mxu0 %v5070_v53  ;;  %4550 = vmatprep.mubr.bf16.mxu0 %v3709_v17  ;;  %v5356_v51 = vcombine.low %v317_v31, %v327_v45  ;;  %v388_v23 = vrot.slane %v386_v10, 5  ;;  %v5076_v45 = vld [vmem:[%s6222_s1 + $0x158] sm:$0xff]  }
  0x2a   : > { %v370_v38 = vrot.slane %v369_v19, 4  ;;  %v5435_v10 = vld [vmem:[%s5234_s10 + $0x5c] sm:$0x1] }
  0x2b   : > { %4357 = vmatpush3.bf16.msra.mxu1 %v5069_v36  ;;  %v353_v36 = vshrl.u32 %v5332_v22, 16 }
  0x2c   : > { %4549 = vmatpush3.bf16.msra.mxu0 %v5070_v53  ;;  %4390 = vmatprep.subr.bf16.mxu1 %v5071_v1  ;;  %v345_v53 = vor.u32 %v344_v40, %v340_v39  ;;  %v404_v40 = vshll.u32 %v5392_v27, 16  ;;  %v375_v52 = vsel %vm5279_vm2, %v370_v38, %v374_v5  ;;  %v5429_v5 = vld [vmem:[%s5234_s10 + $0x54] sm:$0xf] }
  0x2d   : > { %4582 = vmatprep.subr.bf16.mxu0 %v5072_v8  ;;  %v355_v49 = vrot.slane %v353_v36, 4  ;;  %v5080_v36 = vld [vmem:[%s6222_s1 + $0x18] sm:$0xff]   ;;  %v425_v19 = vshrl.u32 %v5429_v5, 16 }
  0x2e   : > { %4359 = vmatmul.mubr.bf16.vlgmr.msra.gmra.mrb[0].mxu1 %v3709_v17  ;;  %v346_v62 = vrot.slane %v345_v53, 4  ;;  %v390_v17 = vshrl.u32 %v5375_v0, 16 }
  0x2f   : > { %4391 = vmatpush3.bf16.msra.mxu1 %v5071_v1  ;;  %4551 = vmatmul.mubr.bf16.vlgmr.msra.gmra.mrb[0].mxu0 %v5356_v51  ;;  %v359_v63 = vor.u32 %v358_v54, %v355_v49  ;;  %v5378_v1 = vld [vmem:[%s5234_s10 + $0x44] sm:$0x1]  ;;  %v406_v54 = vrot.slane %v404_v40, 5  ;;  %v438_v40 = vshrl.u32 %v5432_v6, 16 }
  0x30   : > { %4392 = vmatprep.subr.bf16.mxu1 %v5074_v34  ;;  %4362 = vmatprep.mubr.bf16.mxu1 %v5356_v51  ;;  %v351_v11 = vsel %vm5279_vm2, %v346_v62, %v350_v47  ;;  %v392_v31 = vrot.slane %v390_v17, 4  ;;  %v396_v32 = vshll.u32 %v5378_v1, 16  ;;  %v420_v62 = vshll.u32 %v5401_v33, 16 }
  0x31   : > { %4583 = vmatpush3.bf16.msra.mxu0 %v5072_v8  ;;  %v360_v15 = vrot.slane %v359_v63, 4  ;;  %v379_v8 = vrot.slane %v377_v2, 4  ;;  %v5389_v18 = vcombine.low %v341_v61, %v351_v11  ;;  %v416_v61 = vrot.slane %v414_v50, 4  ;;  %v5078_v63 = vld [vmem:[%s6222_s1 + $0x160] sm:$0xff]   ;;  %v5469_v50 = vld [vmem:[%s5234_s10 + $0x68] sm:$0x1] }
  0x32   : > { %4584 = vmatprep.subr.bf16.mxu0 %v5073_v46  ;;  %v393_v47 = vor.u32 %v392_v31, %v388_v23  ;;  %v398_v49 = vrot.slane %v396_v32, 5  ;;  %v5083_v2 = vld [vmem:[%s6222_s1 + $0x20] sm:$0xff]   ;;  %v5439_v11 = vcombine.low %v5312_v3, %v5320_v9  ;;  %v422_v17 = vrot.slane %v420_v62, 5 }
  0x33   : > { %4393 = vmatpush3.bf16.msra.mxu1 %v5074_v34  ;;  %6243 = vst [vmem:[#allocation2_spill] sm:$0xff] %v5389_v18  ;;  %v365_v29 = vsel %vm5279_vm2, %v360_v15, %v364_v55  ;;  %v401_v34 = vshrl.u32 %v5392_v27, 16  ;;  %4554 = vmatprep.mubr.bf16.mxu0 %v5389_v18  ;;  %v383_v39 = vor.u32 %v382_v20, %v379_v8  ;;  %v412_v55 = vrot.slane %v410_v44, 5  ;;  %v5455_v32 = vld [vmem:[%s5234_s10 + $0x60] sm:$0xf] }
  0x34   : > { %4394 = vmatprep.subr.bf16.mxu1 %v5077_v59  ;;  %v5417_v56 = vcombine.low %v365_v29, %v375_v52  ;;  %v394_v57 = vrot.slane %v393_v47, 4  ;;  %v5443_v15 = vcombine.low %v5332_v22, %v5337_v30  ;;  %v428_v29 = vshll.u32 %v5429_v5, 16  ;;  %v5463_v47 = vld [vmem:[%s5234_s10 + $0x64] sm:$0xf] }
  0x35   : > { %4585 = vmatpush3.bf16.msra.mxu0 %v5073_v46  ;;  %v403_v46 = vrot.slane %v401_v34, 4  ;;  %v384_v53 = vrot.slane %v383_v39, 4  ;;  %v417_v8 = vor.u32 %v416_v61, %v412_v55  ;;  %v434_v31 = vshll.u32 %v5432_v6, 16  ;;  %v5085_v34 = vld [vmem:[%s6222_s1 + $0x28] sm:$0xff]  }
  0x36   : > { %4363 = vmatmul.mubr.bf16.gmra.mrb[4].mxu1 %v5389_v18  ;;  %4586 = vmatprep.subr.bf16.mxu0 %v5075_v16  ;;  %6244 = vst [vmem:[#allocation3_spill] sm:$0xff] %v5417_v56  ;;  %v427_v39 = vrot.slane %v425_v19, 4  ;;  %v444_v44 = vshll.u32 %v5435_v10, 16  ;;  %v449_v52 = vshrl.u32 %v5455_v32, 16  ;;  %v468_v19 = vshll.u32 %v5469_v50, 16 }
  0x37   : > { %4395 = vmatpush3.bf16.msra.mxu1 %v5077_v59  ;;  %v389_v4 = vsel %vm5279_vm2, %v384_v53, %v388_v23  ;;  %v407_v59 = vor.u32 %v406_v54, %v403_v46  ;;  %4555 = vmatmul.mubr.bf16.gmra.mrb[4].mxu0 %v5417_v56  ;;  %v418_v38 = vrot.slane %v417_v8, 4  ;;  %v436_v46 = vrot.slane %v434_v31, 5 }
  0x38   : > { %4396 = vmatprep.subr.bf16.mxu1 %v5080_v36  ;;  %4366 = vmatprep.mubr.bf16.mxu1 %v5417_v56  ;;  %v440_v54 = vrot.slane %v438_v40, 4  ;;  %v5497_v40 = vld [vmem:[%s5234_s10 + $0x6c] sm:$0xf] }
  0x39   : > { %4587 = vmatpush3.bf16.msra.mxu0 %v5075_v16  ;;  %v399_v16 = vsel %vm5279_vm2, %v394_v57, %v398_v49  ;;  %v408_v23 = vrot.slane %v407_v59, 4  ;;  %v423_v53 = vsel %vm5279_vm2, %v418_v38, %v422_v17  ;;  %v446_v57 = vrot.slane %v444_v44, 5 }
  0x3a   : > { %4588 = vmatprep.subr.bf16.mxu0 %v5076_v45  ;;  %v5450_v20 = vcombine.low %v389_v4, %v399_v16  ;;  %v451_v4 = vrot.slane %v449_v52, 4  ;;  %v458_v59 = vshll.u32 %v5463_v47, 16  ;;  %v441_v16 = vor.u32 %v440_v54, %v436_v46 }
  0x3b   : > { %4397 = vmatpush3.bf16.msra.mxu1 %v5080_v36  ;;  %v413_v49 = vsel %vm5279_vm2, %v408_v23, %v412_v55  ;;  %v430_v36 = vrot.slane %v428_v29, 5  ;;  %v452_v55 = vshll.u32 %v5455_v32, 16  ;;  %v462_v17 = vshrl.u32 %v5463_v47, 16  ;;  %v5087_v29 = vld [vmem:[%s6222_s1 + $0x30] sm:$0xff]  }
  0x3c   : > { %6245 = vst [vmem:[#allocation4_spill] sm:$0xff] %v5450_v20  ;;  %4398 = vmatprep.subr.bf16.mxu1 %v5083_v2  ;;  %4558 = vmatprep.mubr.bf16.mxu0 %v5450_v20  ;;  %v5479_v61 = vcombine.low %v413_v49, %v423_v53  ;;  %v460_v31 = vrot.slane %v458_v59, 5  ;;  %v3757_v38 = vrot.slane %v5257_v21, 9  ;;  %v442_v44 = vrot.slane %v441_v16, 4  ;;  %v5504_v53 = vld [vmem:[%s5234_s10 + $0x70] sm:$0xf] }
  0x3d   : > { %4589 = vmatpush3.bf16.msra.mxu0 %v5076_v45  ;;  %v5079_v45 = vld [vmem:[%s6222_s1 + $0x168] sm:$0xff]   ;;  %v431_v62 = vor.u32 %v430_v36, %v427_v39  ;;  %v454_v8 = vrot.slane %v452_v55, 5  ;;  %v1263_v39 = vrot.slane %v5260_v24, 5  ;;  %v464_v36 = vrot.slane %v462_v17, 4 }
  0x3e   : > { %4367 = vmatmul.mubr.bf16.gmra.mrb[8].mxu1 %v5450_v20  ;;  %4590 = vmatprep.subr.bf16.mxu0 %v5078_v63  ;;  %6246 = vst [vmem:[#allocation5_spill] sm:$0xff] %v5479_v61  ;;  %v470_v52 = vrot.slane %v468_v19, 5  ;;  %v1266_v55 = vrot.slane %v5263_v25, 5  ;;  %v447_v59 = vsel %vm5279_vm2, %v442_v44, %v446_v57  ;;  %v482_v19 = vshll.u32 %v5504_v53, 16 }
  0x3f   : > { %4399 = vmatpush3.bf16.msra.mxu1 %v5083_v2  ;;  %4370 = vmatprep.mubr.bf16.mxu1 %v5479_v61  ;;  %v432_v2 = vrot.slane %v431_v62, 4  ;;  %v455_v49 = vor.u32 %v454_v8, %v451_v4  ;;  %v1264_v24 = vsel %vm5486_vm5, %v3757_v38, %v1263_v39  ;;  %v1265_v54 = vrot.slane %v1263_v39, 4  ;;  %v5512_v62 = vld [vmem:[%s5234_s10 + $0x74] sm:$0x1]  ;;  %v5089_v4 = vld [vmem:[%s6222_s1 + $0x38] sm:$0xff]  }
  0x40   : > { %4400 = vmatprep.subr.bf16.mxu1 %v5085_v34  ;;  %4559 = vmatmul.mubr.bf16.gmra.mrb[8].mxu0 %v5479_v61  ;;  %v465_v8 = vor.u32 %v464_v36, %v460_v31  ;;  %v484_v36 = vrot.slane %v482_v19, 5  ;;  %v1284_v20 = vrot.slane %v5337_v30, 5 }
  0x41   : > { %4591 = vmatpush3.bf16.msra.mxu0 %v5078_v63  ;;  %v5081_v63 = vld [vmem:[%s6222_s1 + $0x170] sm:$0xff]   ;;  %v437_v21 = vsel %vm5279_vm2, %v432_v2, %v436_v46  ;;  %v456_v16 = vrot.slane %v455_v49, 4  ;;  %v473_v46 = vshrl.u32 %v5497_v40, 16  ;;  %v1267_v25 = vsel %vm5486_vm5, %v1265_v54, %v1266_v55  ;;  %v5527_v2 = vld [vmem:[%s5234_s10 + $0x78] sm:$0xf] }
  0x42   : > { %4592 = vmatprep.subr.bf16.mxu0 %v5079_v45  ;;  %v5520_v17 = vcombine.low %v437_v21, %v447_v59  ;;  %v466_v38 = vrot.slane %v465_v8, 4  ;;  %v5534_v39 = vcombine.low %v1264_v24, %v1267_v25  ;;  %v486_v21 = vshrl.u32 %v5504_v53, 16  ;;  %v5541_v54 = vld [vmem:[%s5234_s10 + $0x7c] sm:$0xf] }
  0x43   : > { %4401 = vmatpush3.bf16.msra.mxu1 %v5085_v34  ;;  %v476_v34 = vshll.u32 %v5497_v40, 16  ;;  %v461_v57 = vsel %vm5279_vm2, %v456_v16, %v460_v31  ;;  %v475_v44 = vrot.slane %v473_v46, 4  ;;  %v492_v31 = vshll.u32 %v5512_v62, 16  ;;  %v5548_v16 = vld [vmem:[%s5234_s10 + $0x80] sm:$0x1] }
  0x44   : > { %4402 = vmatprep.subr.bf16.mxu1 %v5087_v29  ;;  %6249 = vst [vmem:[#allocation6_spill] sm:$0xff] %v5520_v17  ;;  %4562 = vmatprep.mubr.bf16.mxu0 %v5520_v17  ;;  %v471_v55 = vsel %vm5279_vm2, %v466_v38, %v470_v52  ;;  %v3758_v59 = vrot.slane %v5285_v41, 9  ;;  %v1270_v24 = vrot.slane %v5288_v42, 5  ;;  %v497_v8 = vshrl.u32 %v5527_v2, 16  ;;  %v5556_v52 = vld [vmem:[%s6222_s1 + $0x80] sm:$0xff]  }
  0x45   : > { %4593 = vmatpush3.bf16.msra.mxu0 %v5079_v45  ;;  %v5082_v45 = vld [vmem:[%s6222_s1 + $0x178] sm:$0xff]   ;;  %v478_v49 = vrot.slane %v476_v34, 5  ;;  %v5551_v46 = vcombine.low %v461_v57, %v471_v55  ;;  %v488_v34 = vrot.slane %v486_v21, 4  ;;  %v494_v19 = vrot.slane %v492_v31, 5  ;;  %v5565_v38 = vld [vmem:[%s5234_s10 + $0x84] sm:$0xf] }
  0x46   : > { %4594 = vmatprep.subr.bf16.mxu0 %v5081_v63  ;;  %4371 = vmatmul.mubr.bf16.gmra.mrb[12].mxu1 %v5520_v17  ;;  %v1271_v41 = vsel %vm5486_vm5, %v3758_v59, %v1270_v24  ;;  %v1272_v42 = vrot.slane %v1270_v24, 4  ;;  %v499_v57 = vrot.slane %v497_v8, 4  ;;  %v506_v21 = vshll.u32 %v5541_v54, 16 }
  0x47   : > { %4403 = vmatpush3.bf16.msra.mxu1 %v5087_v29  ;;  %6250 = vst [vmem:[#allocation7_spill] sm:$0xff] %v5551_v46  ;;  %v479_v25 = vor.u32 %v478_v49, %v475_v44  ;;  %v5084_v29 = vld [vmem:[%s6222_s1 + $0x180] sm:$0xff]   ;;  %4374 = vmatprep.mubr.bf16.mxu1 %v5551_v46  ;;  %v489_v49 = vor.u32 %v488_v34, %v484_v36  ;;  %v510_v31 = vshrl.u32 %v5541_v54, 16  ;;  %v516_v24 = vshll.u32 %v5548_v16, 16 }
  0x48   : > { %4404 = vmatprep.subr.bf16.mxu1 %v5089_v4  ;;  %4563 = vmatmul.mubr.bf16.gmra.mrb[12].mxu0 %v5551_v46  ;;  %v1274_v55 = vsel %vm5486_vm5, %v1272_v42, %v1273_v7  ;;  %v3759_v8 = vrot.slane %v5312_v3, 9  ;;  %v508_v46 = vrot.slane %v506_v21, 5  ;;  %v5585_v3 = vld [vmem:[%s5234_s10 + $0x88] sm:$0xf] }
  0x49   : > { %4595 = vmatpush3.bf16.msra.mxu0 %v5081_v63  ;;  %v500_v63 = vshll.u32 %v5527_v2, 16  ;;  %v480_v44 = vrot.slane %v479_v25, 4  ;;  %4598 = vmatprep.mubr.bf16.mxu0 %v5534_v39  ;;  %v490_v34 = vrot.slane %v489_v49, 4  ;;  %v5580_v26 = vcombine.low %v1271_v41, %v1274_v55 }
  0x4a   : > { %4596 = vmatprep.subr.bf16.mxu0 %v5082_v45  ;;  %v512_v7 = vrot.slane %v510_v31, 4  ;;  %v518_v42 = vrot.slane %v516_v24, 5  ;;  %v521_v41 = vshrl.u32 %v5565_v38, 16  ;;  %v5086_v31 = vld [vmem:[%s6222_s1 + $0x188] sm:$0xff]   ;;  %v5604_v24 = vld [vmem:[%s5234_s10 + $0x90] sm:$0xf] }
  0x4b   : > { %v502_v59 = vrot.slane %v500_v63, 5  ;;  %4405 = vmatpush3.bf16.msra.mxu1 %v5089_v4  ;;  %v485_v25 = vsel %vm5279_vm2, %v480_v44, %v484_v36  ;;  %v1277_v63 = vrot.slane %v5320_v9, 5  ;;  %v495_v4 = vsel %vm5279_vm2, %v490_v34, %v494_v19  ;;  %v5591_v36 = vld [vmem:[%s5234_s10 + $0x8c] sm:$0x1]  ;;  %v5607_v34 = vld [vmem:[%s5234_s10 + $0x94] sm:$0xf] }
  0x4c   : > { %4438 = vmatprep.subr.bf16.mxu1 %v5556_v52  ;;  %v524_v44 = vshll.u32 %v5565_v38, 16  ;;  %v513_v21 = vor.u32 %v512_v7, %v508_v46  ;;  %v523_v55 = vrot.slane %v521_v41, 4  ;;  %v540_v7 = vshll.u32 %v5591_v36, 16 }
  0x4d   : > { %4597 = vmatpush3.bf16.msra.mxu0 %v5082_v45  ;;  %v503_v48 = vor.u32 %v502_v59, %v499_v57  ;;  %v1280_v45 = vrot.slane %v5327_v14, 5  ;;  %v5595_v57 = vcombine.low %v485_v25, %v495_v4  ;;  %v1278_v9 = vsel %vm5486_vm5, %v3759_v8, %v1277_v63 }
  0x4e   : > { %4630 = vmatprep.subr.bf16.mxu0 %v5084_v29  ;;  %v1279_v19 = vrot.slane %v1277_v63, 4  ;;  %v526_v14 = vrot.slane %v524_v44, 5  ;;  %v530_v59 = vshll.u32 %v5585_v3, 16  ;;  %v534_v8 = vshrl.u32 %v5585_v3, 16 }
  0x4f   : > { %6251 = vst [vmem:[#allocation8_spill] sm:$0xff] %v5595_v57  ;;  %v504_v49 = vrot.slane %v503_v48, 4  ;;  %4375 = vmatmul.mubr.bf16.gmra.mrb[16].mxu1 %v5595_v57  ;;  %v514_v48 = vrot.slane %v513_v21, 4  ;;  %v3760_v44 = vrot.slane %v5332_v22, 9  ;;  %v542_v21 = vrot.slane %v540_v7, 5  ;;  %v5088_v22 = vld [vmem:[%s6222_s1 + $0x190] sm:$0xff]  }
  0x50   : > { %4599 = vmatmul.mubr.bf16.vlgmr.msra.gmra.mrb[0].mxu0 %v5580_v26  ;;  %v1281_v63 = vsel %vm5486_vm5, %v1279_v19, %v1280_v45  ;;  %v527_v4 = vor.u32 %v526_v14, %v523_v55  ;;  %v532_v41 = vrot.slane %v530_v59, 5  ;;  %v1287_v45 = vrot.slane %v5346_v35, 5  ;;  %v5643_v59 = vld [vmem:[%s5234_s10 + $0x9c] sm:$0xf] }
  0x51   : > { %v509_v25 = vsel %vm5279_vm2, %v504_v49, %v508_v46  ;;  %4631 = vmatpush3.bf16.msra.mxu0 %v5084_v29  ;;  %v519_v57 = vsel %vm5279_vm2, %v514_v48, %v518_v42  ;;  %v5620_v46 = vcombine.low %v1278_v9, %v1281_v63  ;;  %v536_v49 = vrot.slane %v534_v8, 4  ;;  %v5631_v42 = vld [vmem:[%s5234_s10 + $0x98] sm:$0x1]  ;;  %v5646_v63 = vld [vmem:[%s5234_s10 + $0xa0] sm:$0xf] }
  0x52   : > { %v5622_v17 = vcombine.low %v509_v25, %v519_v57  ;;  %v528_v61 = vrot.slane %v527_v4, 4  ;;  %4632 = vmatprep.subr.bf16.mxu0 %v5086_v31  ;;  %v545_v57 = vshrl.u32 %v5604_v24, 16  ;;  %v548_v9 = vshll.u32 %v5604_v24, 16 }
  0x53   : > { %4602 = vmatprep.mubr.bf16.mxu0 %v5620_v46  ;;  %v537_v29 = vor.u32 %v536_v49, %v532_v41  ;;  %v554_v19 = vshll.u32 %v5607_v34, 16  ;;  %v1285_v35 = vsel %vm5486_vm5, %v3760_v44, %v1284_v20  ;;  %v1286_v55 = vrot.slane %v1284_v20, 4  ;;  %v5653_v20 = vld [vmem:[%s5234_s10 + $0xa4] sm:$0x1] }
  0x54   : > { %6252 = vst [vmem:[#allocation9_spill] sm:$0xff] %v5622_v17  ;;  %4378 = vmatprep.mubr.bf16.mxu1 %v5622_v17  ;;  %v533_v30 = vsel %vm5279_vm2, %v528_v61, %v532_v41  ;;  %v558_v14 = vshrl.u32 %v5607_v34, 16  ;;  %v547_v48 = vrot.slane %v545_v57, 4  ;;  %v550_v8 = vrot.slane %v548_v9, 5 }
  0x55   : > { %v538_v25 = vrot.slane %v537_v29, 4  ;;  %4633 = vmatpush3.bf16.msra.mxu0 %v5086_v31  ;;  %v556_v7 = vrot.slane %v554_v19, 5  ;;  %v1288_v4 = vsel %vm5486_vm5, %v1286_v55, %v1287_v45  ;;  %v564_v61 = vshll.u32 %v5631_v42, 16  ;;  %v5090_v45 = vld [vmem:[%s6222_s1 + $0x198] sm:$0xff]  }
  0x56   : > { %v560_v49 = vrot.slane %v558_v14, 4  ;;  %v3761_v41 = vrot.slane %v5361_v58, 9  ;;  %4634 = vmatprep.subr.bf16.mxu0 %v5088_v22  ;;  %v5657_v44 = vcombine.low %v1285_v35, %v1288_v4  ;;  %v551_v29 = vor.u32 %v550_v8, %v547_v48 }
  0x57   : > { %v543_v31 = vsel %vm5279_vm2, %v538_v25, %v542_v21  ;;  %v1291_v57 = vrot.slane %v5375_v0, 5  ;;  %v566_v58 = vrot.slane %v564_v61, 5  ;;  %v1294_v55 = vrot.slane %v5378_v1, 5  ;;  %v5671_v25 = vld [vmem:[%s5234_s10 + $0xa8] sm:$0xf] }
  0x58   : > { %v5663_v9 = vcombine.low %v533_v30, %v543_v31  ;;  %v561_v19 = vor.u32 %v560_v49, %v556_v7  ;;  %4603 = vmatmul.mubr.bf16.gmra.mrb[4].mxu0 %v5657_v44  ;;  %v552_v14 = vrot.slane %v551_v29, 4  ;;  %v569_v0 = vshrl.u32 %v5643_v59, 16  ;;  %v5094_v30 = vld [vmem:[%s6222_s1 + $0x1a0] sm:$0xff]   ;;  %v5681_v49 = vld [vmem:[%s5234_s10 + $0xac] sm:$0xf] }
  0x59   : > { %v1292_v21 = vsel %vm5486_vm5, %v3761_v41, %v1291_v57  ;;  %v1293_v35 = vrot.slane %v1291_v57, 4  ;;  %v572_v1 = vshll.u32 %v5643_v59, 16  ;;  %v578_v8 = vshll.u32 %v5646_v63, 16  ;;  %4635 = vmatpush3.bf16.msra.mxu0 %v5088_v22 }
  0x5a   : > { %6253 = vst [vmem:[#allocation10_spill] sm:$0xff] %v5663_v9  ;;  %4379 = vmatmul.mubr.bf16.gmra.mrb[20].mxu1 %v5663_v9  ;;  %v562_v48 = vrot.slane %v561_v19, 4  ;;  %v582_v4 = vshrl.u32 %v5646_v63, 16  ;;  %v557_v61 = vsel %vm5279_vm2, %v552_v14, %v556_v7  ;;  %v571_v31 = vrot.slane %v569_v0, 4  ;;  %4636 = vmatprep.subr.bf16.mxu0 %v5090_v45  ;;  %v5696_v14 = vld [vmem:[%s5234_s10 + $0xb0] sm:$0x1] }
  0x5b   : > { %v1295_v41 = vsel %vm5486_vm5, %v1293_v35, %v1294_v55  ;;  %v588_v29 = vshll.u32 %v5653_v20, 16  ;;  %v574_v9 = vrot.slane %v572_v1, 5  ;;  %v580_v17 = vrot.slane %v578_v8, 5 }
  0x5c   : > { %v567_v57 = vsel %vm5279_vm2, %v562_v48, %v566_v58  ;;  %v5690_v19 = vcombine.low %v1292_v21, %v1295_v41  ;;  %v584_v56 = vrot.slane %v582_v4, 4  ;;  %v3762_v7 = vrot.slane %v5392_v27, 9 }
  0x5d   : > { %v5692_v22 = vcombine.low %v557_v61, %v567_v57  ;;  %v590_v18 = vrot.slane %v588_v29, 5  ;;  %v575_v55 = vor.u32 %v574_v9, %v571_v31  ;;  %v1298_v35 = vrot.slane %v5395_v28, 5  ;;  %4637 = vmatpush3.bf16.msra.mxu0 %v5090_v45  ;;  %v5098_v28 = vld [vmem:[%s6222_s1 + $0x1a8] sm:$0xff]  }
  0x5e   : > { %4606 = vmatprep.mubr.bf16.mxu0 %v5690_v19  ;;  %v1301_v0 = vrot.slane %v5401_v33, 5  ;;  %v593_v58 = vshrl.u32 %v5671_v25, 16  ;;  %v585_v21 = vor.u32 %v584_v56, %v580_v17  ;;  %v596_v48 = vshll.u32 %v5671_v25, 16  ;;  %4638 = vmatprep.subr.bf16.mxu0 %v5094_v30 }
  0x5f   : > { %6254 = vst [vmem:[#allocation11_spill] sm:$0xff] %v5692_v22  ;;  %4382 = vmatprep.mubr.bf16.mxu1 %v5692_v22  ;;  %v602_v1 = vshll.u32 %v5681_v49, 16  ;;  %v606_v27 = vshrl.u32 %v5681_v49, 16  ;;  %v576_v9 = vrot.slane %v575_v55, 4  ;;  %v1299_v33 = vsel %vm5486_vm5, %v3762_v7, %v1298_v35  ;;  %v5718_v22 = vld [vmem:[%s5234_s10 + $0xb4] sm:$0xf] }
  0x60   : > { %v1300_v45 = vrot.slane %v1298_v35, 4  ;;  %v595_v8 = vrot.slane %v593_v58, 4  ;;  %v586_v56 = vrot.slane %v585_v21, 4  ;;  %v598_v4 = vrot.slane %v596_v48, 5  ;;  %v5725_v48 = vld [vmem:[%s5234_s10 + $0xb8] sm:$0xf] }
  0x61   : > { %v604_v61 = vrot.slane %v602_v1, 5  ;;  %v608_v41 = vrot.slane %v606_v27, 4  ;;  %v581_v31 = vsel %vm5279_vm2, %v576_v9, %v580_v17  ;;  %v612_v57 = vshll.u32 %v5696_v14, 16  ;;  %4639 = vmatpush3.bf16.msra.mxu0 %v5094_v30  ;;  %v5102_v17 = vld [vmem:[%s6222_s1 + $0x1b0] sm:$0xff]   ;;  %v5735_v27 = vld [vmem:[%s5234_s10 + $0xbc] sm:$0x1] }
  0x62   : > { %v1302_v29 = vsel %vm5486_vm5, %v1300_v45, %v1301_v0  ;;  %v3763_v55 = vrot.slane %v5429_v5, 9  ;;  %v591_v7 = vsel %vm5279_vm2, %v586_v56, %v590_v18  ;;  %v599_v58 = vor.u32 %v598_v4, %v595_v8  ;;  %4640 = vmatprep.subr.bf16.mxu0 %v5098_v28  ;;  %v5106_v4 = vld [vmem:[%s6222_s1 + $0x1b8] sm:$0xff]  }
  0x63   : > { %v5722_v35 = vcombine.low %v1299_v33, %v1302_v29  ;;  %v609_v21 = vor.u32 %v608_v41, %v604_v61  ;;  %v5730_v0 = vcombine.low %v581_v31, %v591_v7  ;;  %v614_v5 = vrot.slane %v612_v57, 5 }
  0x64   : > { %v1305_v1 = vrot.slane %v5432_v6, 5  ;;  %v1308_v30 = vrot.slane %v5435_v10, 5  ;;  %v600_v18 = vrot.slane %v599_v58, 4  ;;  %v617_v33 = vshrl.u32 %v5718_v22, 16 }
  0x65   : > { %6255 = vst [vmem:[#allocation12_spill] sm:$0xff] %v5730_v0  ;;  %4607 = vmatmul.mubr.bf16.gmra.mrb[8].mxu0 %v5722_v35  ;;  %v610_v9 = vrot.slane %v609_v21, 4  ;;  %v620_v45 = vshll.u32 %v5718_v22, 16  ;;  %4383 = vmatmul.mubr.bf16.gmra.mrb[24].mxu1 %v5730_v0  ;;  %v626_v6 = vshll.u32 %v5725_v48, 16  ;;  %v630_v10 = vshrl.u32 %v5725_v48, 16 }
  0x66   : > { %v1306_v8 = vsel %vm5486_vm5, %v3763_v55, %v1305_v1  ;;  %v1307_v56 = vrot.slane %v1305_v1, 4  ;;  %4641 = vmatpush3.bf16.msra.mxu0 %v5098_v28  ;;  %v605_v41 = vsel %vm5279_vm2, %v600_v18, %v604_v61  ;;  %v619_v29 = vrot.slane %v617_v33, 4 }
  0x67   : > { %v615_v31 = vsel %vm5279_vm2, %v610_v9, %v614_v5  ;;  %v622_v57 = vrot.slane %v620_v45, 5  ;;  %4642 = vmatprep.subr.bf16.mxu0 %v5102_v17  ;;  %v628_v58 = vrot.slane %v626_v6, 5  ;;  %v632_v28 = vrot.slane %v630_v10, 4 }
  0x68   : > { %v5752_v55 = vcombine.low %v605_v41, %v615_v31  ;;  %v1309_v7 = vsel %vm5486_vm5, %v1307_v56, %v1308_v30  ;;  %v636_v0 = vshll.u32 %v5735_v27, 16  ;;  %v3764_v61 = vrot.slane %v5455_v32, 9  ;;  %v5767_v30 = vld [vmem:[%s6222_s1 + $0x1c0] sm:$0xff]  }
  0x69   : > { %v5756_v21 = vcombine.low %v1306_v8, %v1309_v7  ;;  %v623_v1 = vor.u32 %v622_v57, %v619_v29  ;;  %v633_v5 = vor.u32 %v632_v28, %v628_v58  ;;  %v1312_v18 = vrot.slane %v5463_v47, 5 }
  0x6a   : > { %4386 = vmatprep.mubr.bf16.mxu1 %v5752_v55  ;;  %v1315_v9 = vrot.slane %v5469_v50, 5  ;;  %v3765_v33 = vrot.slane %v5497_v40, 9  ;;  %4643 = vmatpush3.bf16.msra.mxu0 %v5102_v17  ;;  %v638_v8 = vrot.slane %v636_v0, 5  ;;  %v1319_v56 = vrot.slane %v5504_v53, 5 }
  0x6b   : > { %4610 = vmatprep.mubr.bf16.mxu0 %v5756_v21  ;;  %v624_v45 = vrot.slane %v623_v1, 4  ;;  %v1322_v6 = vrot.slane %v5512_v62, 5  ;;  %4644 = vmatprep.subr.bf16.mxu0 %v5106_v4  ;;  %v634_v10 = vrot.slane %v633_v5, 4  ;;  %v1313_v50 = vsel %vm5486_vm5, %v3764_v61, %v1312_v18 }
  0x6c   : > { %v1314_v41 = vrot.slane %v1312_v18, 4  ;;  %v3766_v17 = vrot.slane %v5527_v2, 9  ;;  %v1320_v29 = vsel %vm5486_vm5, %v3765_v33, %v1319_v56  ;;  %v1321_v57 = vrot.slane %v1319_v56, 4 }
  0x6d   : > { %v629_v31 = vsel %vm5279_vm2, %v624_v45, %v628_v58  ;;  %v1326_v0 = vrot.slane %v5541_v54, 5  ;;  %v639_v62 = vsel %vm5279_vm2, %v634_v10, %v638_v8  ;;  %v1329_v28 = vrot.slane %v5548_v16, 5 }
  0x6e   : > { %v1316_v7 = vsel %vm5486_vm5, %v1314_v41, %v1315_v9  ;;  %v3767_v1 = vrot.slane %v5565_v38, 9  ;;  %4645 = vmatpush3.bf16.msra.mxu0 %v5106_v4  ;;  %v5786_v61 = vcombine.low %v629_v31, %v639_v62  ;;  %v1323_v5 = vsel %vm5486_vm5, %v1321_v57, %v1322_v6  ;;  %v5097_v57 = vld [vmem:[%s6222_s1 + $0x88] sm:$0xff]  }
  0x6f   : > { %v5788_v58 = vcombine.low %v1313_v50, %v1316_v7  ;;  %4678 = vmatprep.subr.bf16.mxu0 %v5767_v30  ;;  %v5793_v18 = vcombine.low %v1320_v29, %v1323_v5  ;;  %v1328_v33 = vrot.slane %v1326_v0, 4  ;;  %v1333_v45 = vrot.slane %v5585_v3, 5 }
  0x70   : > { %v1336_v9 = vrot.slane %v5591_v36, 5  ;;  %4387 = vmatmul.mubr.bf16.gmra.mrb[28].mxu1 %v5786_v61  ;;  %v6256_v16 = vcombine.low %v5243_v12, %v5246_v13  ;;  %v1327_v4 = vsel %vm5486_vm5, %v3766_v17, %v1326_v0  ;;  %v1340_v6 = vrot.slane %v5607_v34, 5 }
  0x71   : > { %4611 = vmatmul.mubr.bf16.gmra.mrb[12].mxu0 %v5788_v58  ;;  %v1330_v8 = vsel %vm5486_vm5, %v1328_v33, %v1329_v28  ;;  %v1335_v56 = vrot.slane %v1333_v45, 4  ;;  %v1347_v36 = vrot.slane %v5646_v63, 5  ;;  %v1334_v10 = vsel %vm5486_vm5, %v3767_v1, %v1333_v45 }
  0x72   : > { %4406 = vmatprep.mubr.bf16.mxu1 %v6256_v16  ;;  %4614 = vmatprep.mubr.bf16.mxu0 %v5793_v18  ;;  %v5813_v13 = vcombine.low %v1327_v4, %v1330_v8  ;;  %v3768_v50 = vrot.slane %v5604_v24, 9  ;;  %v1343_v41 = vrot.slane %v5631_v42, 5  ;;  %v1342_v17 = vrot.slane %v1340_v6, 4 }
  0x73   : > { %v1337_v12 = vsel %vm5486_vm5, %v1335_v56, %v1336_v9  ;;  %v3769_v31 = vrot.slane %v5643_v59, 9  ;;  %v1349_v0 = vrot.slane %v1347_v36, 4  ;;  %v1350_v62 = vrot.slane %v5653_v20, 5 }
  0x74   : > { %v5818_v29 = vcombine.low %v1334_v10, %v1337_v12  ;;  %v1341_v7 = vsel %vm5486_vm5, %v3768_v50, %v1340_v6  ;;  %v1354_v42 = vrot.slane %v5681_v49, 5  ;;  %v5831_v28 = vcombine.low %v5455_v32, %v5463_v47  ;;  %v5101_v47 = vld [vmem:[%s6222_s1 + $0x90] sm:$0xff]   ;;  %v233_v6 = vld [vmem:[%s5234_s10 + $0xc8] sm:$0x1]  ;;  %v5146_v10 = vld [vmem:[%s5234_s10 + $0x40] sm:$0xf] }
  0x75   : > { %v1344_v20 = vsel %vm5486_vm5, %v1342_v17, %v1343_v41  ;;  %v1348_v1 = vsel %vm5486_vm5, %v3769_v31, %v1347_v36  ;;  %v3770_v5 = vrot.slane %v5671_v25, 9  ;;  %v5842_v33 = vcombine.low %v5497_v40, %v5504_v53  ;;  %v5145_v36 = vld [vmem:[%s5234_s10 + $0x3c] sm:$0xf]  ;;  %v5147_v41 = vld [vmem:[%s5234_s10 + $0x48] sm:$0xf] }
  0x76   : > { %v1351_v32 = vsel %vm5486_vm5, %v1349_v0, %v1350_v62  ;;  %v5853_v45 = vcombine.low %v5527_v2, %v5541_v54  ;;  %v5857_v40 = vcombine.low %v5565_v38, %v5585_v3  ;;  %v5861_v53 = vcombine.low %v5604_v24, %v5607_v34  ;;  %v5881_v24 = vld [vmem:[%s5234_s10 + $0xc4] sm:$0xf]  ;;  %v5148_v17 = vld [vmem:[%s5234_s10 + $0x4c] sm:$0xf] }
  0x77   : > { %v5865_v9 = vcombine.low %v5643_v59, %v5646_v63  ;;  %v5869_v16 = vcombine.low %v5671_v25, %v5681_v49  ;;  %v5871_v4 = vcombine.low %v1341_v7, %v1344_v20  ;;  %v1356_v2 = vrot.slane %v1354_v42, 4  ;;  %v5105_v25 = vld [vmem:[%s6222_s1 + $0x98] sm:$0xff]  }
  0x78   : > { %4407 = vmatmul.mubr.bf16.vlgmr.msra.gmra.mrb[0].mxu1 %v5292_v43  ;;  %v1357_v54 = vrot.slane %v5696_v14, 5  ;;  %v5876_v38 = vcombine.low %v5718_v22, %v5725_v48  ;;  %v5878_v3 = vcombine.low %v1348_v1, %v1351_v32  ;;  %v3771_v34 = vrot.slane %v5718_v22, 9  ;;  %v5895_v14 = vld [vmem:[%s5234_s10 + $0xc0] sm:$0xf] }
  0x79   : > { %4615 = vmatmul.mubr.bf16.gmra.mrb[16].mxu0 %v5813_v13  ;;  %4439 = vmatpush3.bf16.msra.mxu1 %v5556_v52  ;;  %v1361_v52 = vrot.slane %v5725_v48, 5  ;;  %v1364_v63 = vrot.slane %v5735_v27, 5  ;;  %v1355_v49 = vsel %vm5486_vm5, %v3770_v5, %v1354_v42  ;;  %v2241_v48 = vrot.slane %v5881_v24, 5  ;;  %v5109_v27 = vld [vmem:[%s6222_s1 + $0xa0] sm:$0xff]  }
  0x7a   : > { %4410 = vmatprep.mubr.bf16.mxu1 %v5368_v60  ;;  %4618 = vmatprep.mubr.bf16.mxu0 %v5818_v29  ;;  %v1358_v22 = vsel %vm5486_vm5, %v1356_v2, %v1357_v54  ;;  %v5910_v12 = vcombine.low %v5145_v36, %v5146_v10  ;;  %v5916_v31 = vcombine.low %v5147_v41, %v5148_v17  ;;  %v1956_v0 = vshll.u32 %v5895_v14, 16  ;;  %v5113_v54 = vld [vmem:[%s6222_s1 + $0xa8] sm:$0xff]   ;;  %v5117_v36 = vld [vmem:[%s6222_s1 + $0xb0] sm:$0xff]   ;;  %v5150_v10 = vld [vmem:[%s5234_s10 + $0x58] sm:$0xf] }
  0x7b   : > { %4440 = vmatprep.subr.bf16.mxu1 %v5097_v57  ;;  %v1363_v59 = vrot.slane %v1361_v52, 4  ;;  %v1362_v8 = vsel %vm5486_vm5, %v3771_v34, %v1361_v52  ;;  %v5912_v50 = vcombine.low %v1355_v49, %v1358_v22  ;;  %v1962_v62 = vshll.u32 %v5881_v24, 16 }
  0x7c   : > { %v1966_v7 = vshrl.u32 %v5881_v24, 16  ;;  %v3862_v20 = vrot.slane %v5895_v14, 9  ;;  %v2243_v1 = vrot.slane %v2241_v48, 4  ;;  %v2244_v5 = vrot.slane %v233_v6, 5 }
  0x7d   : > { %4441 = vmatpush3.bf16.msra.mxu1 %v5097_v57  ;;  %v1365_v56 = vsel %vm5486_vm5, %v1363_v59, %v1364_v63  ;;  %v1953_v57 = vshrl.u32 %v5895_v14, 16  ;;  %v1964_v52 = vrot.slane %v1962_v62, 5  ;;  %v1972_v63 = vshll.u32 %v233_v6, 16  ;;  %v5149_v6 = vld [vmem:[%s5234_s10 + $0x54] sm:$0xf]  ;;  %v5123_v62 = vld [vmem:[%s6222_s1 + $0xc0] sm:$0xff]  }
  0x7e   : > { %4442 = vmatprep.subr.bf16.mxu1 %v5101_v47  ;;  %v5922_v42 = vcombine.low %v1362_v8, %v1365_v56  ;;  %v1968_v2 = vrot.slane %v1966_v7, 4  ;;  %v2245_v49 = vsel %vm5486_vm5, %v2243_v1, %v2244_v5  ;;  %v5941_v41 = vcombine.low %v5149_v6, %v5150_v10  ;;  %v5114_v7 = vld [vmem:[%s6222_s1 + $0x1c8] sm:$0xff]   ;;  %v5122_v1 = vld [vmem:[%s6222_s1 + $0x1d8] sm:$0xff]   ;;  %v5127_v6 = vld [vmem:[%s6222_s1 + $0xd0] sm:$0xff]  }
  0x7f   : > { %v1955_v32 = vrot.slane %v1953_v57, 4  ;;  %v1974_v56 = vrot.slane %v1972_v63, 5  ;;  %v5130_v10 = vld [vmem:[%s6222_s1 + $0xd8] sm:$0xff]  }
  0x80   : > { %4411 = vmatmul.mubr.bf16.gmra.mrb[4].mxu1 %v5439_v11  ;;  %v1969_v59 = vor.u32 %v1968_v2, %v1964_v52  ;;  %v5153_v2 = vld [vmem:[%s5234_s10] sm:$0xf] }
  0x81   : > { %4619 = vmatmul.mubr.bf16.gmra.mrb[20].mxu0 %v5871_v4  ;;  %4414 = vmatprep.mubr.bf16.mxu1 %v5443_v15 }
  0x82   : > { %4622 = vmatprep.mubr.bf16.mxu0 %v5878_v3  ;;  %4443 = vmatpush3.bf16.msra.mxu1 %v5101_v47  ;;  %v1958_v47 = vrot.slane %v1956_v0, 5  ;;  %v1970_v8 = vrot.slane %v1969_v59, 4  ;;  %v5121_v0 = vld [vmem:[%s6222_s1 + $0xb8] sm:$0xff]   ;;  %v5126_v59 = vld [vmem:[%s6222_s1 + $0x1e8] sm:$0xff]  }
  0x83   : > { %4444 = vmatprep.subr.bf16.mxu1 %v5105_v25 }
  0x84   : > { %v1959_v34 = vor.u32 %v1958_v47, %v1955_v32  ;;  %v5124_v32 = vld [vmem:[%s6222_s1 + $0x1e0] sm:$0xff]   ;;  %v5152_v47 = vld [vmem:[%s5234_s10 + $0x8] sm:$0x1] }
  0x86   : > { %4445 = vmatpush3.bf16.msra.mxu1 %v5105_v25  ;;  %v2242_v25 = vsel %vm5486_vm5, %v3862_v20, %v2241_v48  ;;  %v1960_v22 = vrot.slane %v1959_v34, 4  ;;  %v5118_v20 = vld [vmem:[%s6222_s1 + $0x1d0] sm:$0xff]  }
  0x87   : > { %4446 = vmatprep.subr.bf16.mxu1 %v5109_v27  ;;  %v5943_v17 = vcombine.low %v2242_v25, %v2245_v49  ;;  %v5128_v49 = vld [vmem:[%s6222_s1 + $0x1f0] sm:$0xff]  }
  0x88   : > { %4415 = vmatmul.mubr.bf16.gmra.mrb[8].mxu1 %v5910_v12  ;;  %v1965_v48 = vsel %vm5279_vm2, %v1960_v22, %v1964_v52  ;;  %v1259_v52 = vrot.slane %v5152_v47, 5  ;;  %v6259_v47 = vld [vmem:[#allocation4_spill] sm:$0xff] }
  0x89   : > { %4623 = vmatmul.mubr.bf16.gmra.mrb[24].mxu0 %v5912_v50  ;;  %4418 = vmatprep.mubr.bf16.mxu1 %v5916_v31 }
  0x8a   : > { %4626 = vmatprep.mubr.bf16.mxu0 %v5922_v42  ;;  %4447 = vmatpush3.bf16.msra.mxu1 %v5109_v27  ;;  %v1975_v27 = vsel %vm5279_vm2, %v1970_v8, %v1974_v56  ;;  %v5132_v8 = vld [vmem:[%s6222_s1 + $0x1f8] sm:$0xff]   ;;  %v5134_v56 = vld [vmem:[%s6222_s1 + $0x200] sm:$0xff]  }
  0x8b   : > { %4448 = vmatprep.subr.bf16.mxu1 %v5113_v54  ;;  %v5949_v57 = vcombine.low %v1965_v48, %v1975_v27  ;;  %v6030_v48 = vcombine.low %v5895_v14, %v5881_v24  ;;  %v5135_v27 = vld [vmem:[%s6222_s1 + $0xe8] sm:$0xff]   ;;  %v5137_v24 = vld [vmem:[%s6222_s1 + $0xf0] sm:$0xff]  }
  0x8e   : > { %4449 = vmatpush3.bf16.msra.mxu1 %v5113_v54  ;;  %v3756_v54 = vrot.slane %v5153_v2, 9  ;;  %v5141_v2 = vld [vmem:[%s6222_s1 + $0x220] sm:$0xff]  }
  0x8f   : > { %4450 = vmatprep.subr.bf16.mxu1 %v5117_v36 }
  0x90   : > { %4419 = vmatmul.mubr.bf16.gmra.mrb[12].mxu1 %v5941_v41 }
  0x91   : > { %4627 = vmatmul.mubr.bf16.gmra.mrb[28].mxu0 %v5943_v17  ;;  %4422 = vmatprep.mubr.bf16.mxu1 %v5831_v28 }
  0x92   : > { %4646 = vmatprep.mubr.bf16.mxu0 %v5368_v60  ;;  %4451 = vmatpush3.bf16.msra.mxu1 %v5117_v36  ;;  %v5125_v36 = vld [vmem:[%s6222_s1 + $0xc8] sm:$0xff]  }
  0x93   : > { %4452 = vmatprep.subr.bf16.mxu1 %v5121_v0 }
  0x96   : > { %4453 = vmatpush3.bf16.msra.mxu1 %v5121_v0  ;;  %v6040_v0 = vld [vmem:[%s5234_s10 + $0xcc] sm:$0xf] }
  0x97   : > { %4486 = vmatprep.subr.bf16.mxu1 %v5123_v62 }
  0x98   : > { %4423 = vmatmul.mubr.bf16.gmra.mrb[16].mxu1 %v5842_v33 }
  0x99   : > { %4647 = vmatmul.mubr.bf16.vlgmr.msra.gmra.mrb[0].mxu0 %v5439_v11  ;;  %4426 = vmatprep.mubr.bf16.mxu1 %v5853_v45 }
  0x9a   : > { %4679 = vmatpush3.bf16.msra.mxu0 %v5767_v30  ;;  %4650 = vmatprep.mubr.bf16.mxu0 %v5443_v15  ;;  %v5151_v30 = vld [vmem:[%s5234_s10 + $0x4] sm:$0xf] }
  0x9b   : > { %4680 = vmatprep.subr.bf16.mxu0 %v5114_v7  ;;  %v1256_v5 = vrot.slane %v5151_v30, 5  ;;  %v6257_v30 = vld [vmem:[#allocation2_spill] sm:$0xff] }
  0x9d   : > { %v1258_v34 = vrot.slane %v1256_v5, 4  ;;  %v1257_v63 = vsel %vm5486_vm5, %v3756_v54, %v1256_v5  ;;  %v5138_v5 = vld [vmem:[%s6222_s1 + $0x210] sm:$0xff]   ;;  %v5142_v54 = vld [vmem:[%s6222_s1 + $0x228] sm:$0xff]  }
  0x9e   : > { %4681 = vmatpush3.bf16.msra.mxu0 %v5114_v7  ;;  %v5139_v7 = vld [vmem:[%s6222_s1 + $0xf8] sm:$0xff]  }
  0x9f   : > { %4682 = vmatprep.subr.bf16.mxu0 %v5118_v20  ;;  %v1260_v25 = vsel %vm5486_vm5, %v1258_v34, %v1259_v52  ;;  %v6260_v52 = vld [vmem:[#allocation5_spill] sm:$0xff]  ;;  %v6261_v34 = vld [vmem:[#allocation6_spill] sm:$0xff] }
  0xa0   : > { %4427 = vmatmul.mubr.bf16.gmra.mrb[20].mxu1 %v5857_v40  ;;  %v3788_v22 = vcombine.low %v1257_v63, %v1260_v25  ;;  %v5143_v63 = vld [vmem:[%s6222_s1 + $0x230] sm:$0xff]   ;;  %v5144_v25 = vld [vmem:[%s6222_s1 + $0x238] sm:$0xff]  }
  0xa1   : > { %4651 = vmatmul.mubr.bf16.gmra.mrb[4].mxu0 %v5910_v12  ;;  %4430 = vmatprep.mubr.bf16.mxu1 %v5861_v53 }
  0xa2   : > { %4654 = vmatprep.mubr.bf16.mxu0 %v5916_v31  ;;  %4683 = vmatpush3.bf16.msra.mxu0 %v5118_v20  ;;  %v5136_v20 = vld [vmem:[%s6222_s1 + $0x208] sm:$0xff]  }
  0xa3   : > { %4684 = vmatprep.subr.bf16.mxu0 %v5122_v1 }
  0xa6   : > { %4685 = vmatpush3.bf16.msra.mxu0 %v5122_v1  ;;  %v5154_v1 = vld [vmem:[%s6222_s1 + $0x100] sm:$0xff]  }
  0xa7   : > { %4686 = vmatprep.subr.bf16.mxu0 %v5124_v32 }
  0xa8   : > { %4431 = vmatmul.mubr.bf16.gmra.mrb[24].mxu1 %v5865_v9 }
  0xa9   : > { %4655 = vmatmul.mubr.bf16.gmra.mrb[8].mxu0 %v5941_v41  ;;  %4434 = vmatprep.mubr.bf16.mxu1 %v5869_v16 }
  0xaa   : > { %4658 = vmatprep.mubr.bf16.mxu0 %v5831_v28  ;;  %4687 = vmatpush3.bf16.msra.mxu0 %v5124_v32  ;;  %v5140_v32 = vld [vmem:[%s6222_s1 + $0x218] sm:$0xff]  }
  0xab   : > { %4688 = vmatprep.subr.bf16.mxu0 %v5126_v59 }
  0xae   : > { %4689 = vmatpush3.bf16.msra.mxu0 %v5126_v59  ;;  %v6262_v59 = vld [vmem:[#allocation7_spill] sm:$0xff] }
  0xaf   : > { %4690 = vmatprep.subr.bf16.mxu0 %v5128_v49 }
  0xb0   : > { %4435 = vmatmul.mubr.bf16.gmra.mrb[28].mxu1 %v5876_v38 }
  0xb1   : > { %4659 = vmatmul.mubr.bf16.gmra.mrb[12].mxu0 %v5842_v33  ;;  %4454 = vmatprep.mubr.bf16.mxu1 %v3788_v22  ;;  %v6264_v22 = vld [vmem:[#allocation9_spill] sm:$0xff] }
  0xb2   : > { %4662 = vmatprep.mubr.bf16.mxu0 %v5853_v45  ;;  %4691 = vmatpush3.bf16.msra.mxu0 %v5128_v49  ;;  %v6263_v49 = vld [vmem:[#allocation8_spill] sm:$0xff] }
  0xb3   : > { %4692 = vmatprep.subr.bf16.mxu0 %v5132_v8 }
  0xb6   : > { %4693 = vmatpush3.bf16.msra.mxu0 %v5132_v8  ;;  %v6265_v8 = vld [vmem:[#allocation10_spill] sm:$0xff] }
  0xb7   : > { %4726 = vmatprep.subr.bf16.mxu0 %v5134_v56 }
  0xb8   : > { %4455 = vmatmul.mubr.bf16.vlgmr.msra.gmra.mrb[0].mxu1 %v5534_v39  ;;  %v5133_v39 = vld [vmem:[%s6222_s1 + $0xe0] sm:$0xff]  }
  0xb9   : > { %4663 = vmatmul.mubr.bf16.gmra.mrb[16].mxu0 %v5857_v40  ;;  %4487 = vmatpush3.bf16.msra.mxu1 %v5123_v62  ;;  %v6043_v62 = vld [vmem:[%s5234_s10 + $0xd0] sm:$0xf] }
  0xba   : > { %4458 = vmatprep.mubr.bf16.mxu1 %v5580_v26  ;;  %4666 = vmatprep.mubr.bf16.mxu0 %v5861_v53  ;;  %v3904_v14 = vcombine.low %v6040_v0, %v6043_v62 }
  0xbb   : > { %4488 = vmatprep.subr.bf16.mxu1 %v5125_v36 }
  0xbd   : > { %4489 = vmatpush3.bf16.msra.mxu1 %v5125_v36  ;;  %v2776_v36 = vshll.u32 %v6040_v0, 16 }
  0xbe   : > { %4490 = vmatprep.subr.bf16.mxu1 %v5127_v6 }
  0xc0   : > { %4459 = vmatmul.mubr.bf16.gmra.mrb[4].mxu1 %v5620_v46 }
  0xc1   : > { %4667 = vmatmul.mubr.bf16.gmra.mrb[20].mxu0 %v5865_v9  ;;  %4462 = vmatprep.mubr.bf16.mxu1 %v5657_v44 }
  0xc2   : > { %4670 = vmatprep.mubr.bf16.mxu0 %v5869_v16  ;;  %4491 = vmatpush3.bf16.msra.mxu1 %v5127_v6  ;;  %v2786_v6 = vshrl.u32 %v6043_v62, 16 }
  0xc3   : > { %4492 = vmatprep.subr.bf16.mxu1 %v5130_v10 }
  0xc6   : > { %4493 = vmatpush3.bf16.msra.mxu1 %v5130_v10  ;;  %v6266_v10 = vld [vmem:[#allocation11_spill] sm:$0xff] }
  0xc7   : > { %4494 = vmatprep.subr.bf16.mxu1 %v5133_v39 }
  0xc8   : > { %4463 = vmatmul.mubr.bf16.gmra.mrb[8].mxu1 %v5690_v19 }
  0xc9   : > { %4671 = vmatmul.mubr.bf16.gmra.mrb[24].mxu0 %v5876_v38  ;;  %4466 = vmatprep.mubr.bf16.mxu1 %v5722_v35 }
  0xca   : > { %4674 = vmatprep.mubr.bf16.mxu0 %v6030_v48  ;;  %4495 = vmatpush3.bf16.msra.mxu1 %v5133_v39 }
  0xcb   : > { %4496 = vmatprep.subr.bf16.mxu1 %v5135_v27 }
  0xce   : > { %4497 = vmatpush3.bf16.msra.mxu1 %v5135_v27  ;;  %v2778_v27 = vrot.slane %v2776_v36, 5 }
  0xcf   : > { %4498 = vmatprep.subr.bf16.mxu1 %v5137_v24 }
  0xd0   : > { %4467 = vmatmul.mubr.bf16.gmra.mrb[12].mxu1 %v5756_v21 }
  0xd1   : > { %4675 = vmatmul.mubr.bf16.gmra.mrb[28].mxu0 %v3904_v14  ;;  %4470 = vmatprep.mubr.bf16.mxu1 %v5788_v58  ;;  %v2788_v14 = vrot.slane %v2786_v6, 4 }
  0xd2   : > { %4694 = vmatprep.mubr.bf16.mxu0 %v5356_v51  ;;  %4499 = vmatpush3.bf16.msra.mxu1 %v5137_v24  ;;  %v6258_v51 = vld [vmem:[#allocation3_spill] sm:$0xff] }
  0xd3   : > { %4500 = vmatprep.subr.bf16.mxu1 %v5139_v7 }
  0xd6   : > { %4501 = vmatpush3.bf16.msra.mxu1 %v5139_v7  ;;  %v5156_v7 = vld [vmem:[%s6222_s1 + $0x110] sm:$0xff]  }
  0xd7   : > { %4774 = vmatprep.subr.bf16.mxu1 %v5154_v1 }
  0xd8   : > { %4471 = vmatmul.mubr.bf16.gmra.mrb[16].mxu1 %v5793_v18 }
  0xd9   : > { %4695 = vmatmul.mubr.bf16.vlgmr.msra.gmra.mrb[0].mxu0 %v6257_v30  ;;  %4474 = vmatprep.mubr.bf16.mxu1 %v5813_v13 }
  0xda   : > { %4727 = vmatpush3.bf16.msra.mxu0 %v5134_v56  ;;  %4698 = vmatprep.mubr.bf16.mxu0 %v6258_v51  ;;  %v2773_v56 = vshrl.u32 %v6040_v0, 16 }
  0xdb   : > { %4728 = vmatprep.subr.bf16.mxu0 %v5136_v20 }
  0xdc   : > { %v2775_v39 = vrot.slane %v2773_v56, 4 }
  0xde   : > { %4729 = vmatpush3.bf16.msra.mxu0 %v5136_v20  ;;  %v6267_v20 = vld [vmem:[#allocation12_spill] sm:$0xff] }
  0xdf   : > { %4730 = vmatprep.subr.bf16.mxu0 %v5138_v5 }
  0xe0   : > { %4475 = vmatmul.mubr.bf16.gmra.mrb[20].mxu1 %v5818_v29 }
  0xe1   : > { %4699 = vmatmul.mubr.bf16.gmra.mrb[4].mxu0 %v6259_v47  ;;  %4478 = vmatprep.mubr.bf16.mxu1 %v5871_v4 }
  0xe2   : > { %4702 = vmatprep.mubr.bf16.mxu0 %v6260_v52  ;;  %4731 = vmatpush3.bf16.msra.mxu0 %v5138_v5  ;;  %v5157_v5 = vld [vmem:[%s6222_s1 + $0x118] sm:$0xff]  }
  0xe3   : > { %4732 = vmatprep.subr.bf16.mxu0 %v5140_v32 }
  0xe6   : > { %4733 = vmatpush3.bf16.msra.mxu0 %v5140_v32 }
  0xe7   : > { %4734 = vmatprep.subr.bf16.mxu0 %v5141_v2 }
  0xe8   : > { %4479 = vmatmul.mubr.bf16.gmra.mrb[24].mxu1 %v5878_v3 }
  0xe9   : > { %4703 = vmatmul.mubr.bf16.gmra.mrb[8].mxu0 %v6261_v34  ;;  %4482 = vmatprep.mubr.bf16.mxu1 %v5912_v50 }
  0xea   : > { %4706 = vmatprep.mubr.bf16.mxu0 %v6262_v59  ;;  %4735 = vmatpush3.bf16.msra.mxu0 %v5141_v2 }
  0xeb   : > { %4736 = vmatprep.subr.bf16.mxu0 %v5142_v54 }
  0xee   : > { %4737 = vmatpush3.bf16.msra.mxu0 %v5142_v54  ;;  %v5159_v54 = vld [vmem:[%s6222_s1 + $0x128] sm:$0xff]  }
  0xef   : > { %4738 = vmatprep.subr.bf16.mxu0 %v5143_v63 }
  0xf0   : > { %4483 = vmatmul.mubr.bf16.gmra.mrb[28].mxu1 %v5922_v42 }
  0xf1   : > { %4707 = vmatmul.mubr.bf16.gmra.mrb[12].mxu0 %v6263_v49  ;;  %4502 = vmatprep.mubr.bf16.mxu1 %v5292_v43  ;;  %v2782_v43 = vshll.u32 %v6043_v62, 16 }
  0xf2   : > { %4710 = vmatprep.mubr.bf16.mxu0 %v6264_v22  ;;  %4739 = vmatpush3.bf16.msra.mxu0 %v5143_v63 }
  0xf3   : > { %4740 = vmatprep.subr.bf16.mxu0 %v5144_v25  ;;  %v2784_v24 = vrot.slane %v2782_v43, 5 }
  0xf5   : > { %v2789_v30 = vor.u32 %v2788_v14, %v2784_v24 }
  0xf6   : > { %4741 = vmatpush3.bf16.msra.mxu0 %v5144_v25 }
  0xf7   : > { %v2790_v47 = vrot.slane %v2789_v30, 4 }
  0xf8   : > { %4503 = vmatmul.mubr.bf16.vlgmr.msra.gmra.mrb[0].mxu1 %v5368_v60  ;;  %v5155_v60 = vld [vmem:[%s6222_s1 + $0x108] sm:$0xff]  }
  0xf9   : > { %4711 = vmatmul.mubr.bf16.gmra.mrb[16].mxu0 %v6265_v8  ;;  %4782 = vmatpush3.bf16.msra.mxu1 %v5154_v1  ;;  %v2779_v1 = vor.u32 %v2778_v27, %v2775_v39 }
  0xfa   : > { %4506 = vmatprep.mubr.bf16.mxu1 %v5439_v11  ;;  %4714 = vmatprep.mubr.bf16.mxu0 %v6266_v10  ;;  %v6111_v11 = vld [vmem:[%s5234_s10 + $0xd4] sm:$0x1] }
  0xfb   : > { %4775 = vmatprep.subr.bf16.mxu1 %v5155_v60  ;;  %v2792_v51 = vshll.u32 %v6111_v11, 16  ;;  %v2780_v32 = vrot.slane %v2779_v1, 4 }
  0xfd   : > { %4783 = vmatpush3.bf16.msra.mxu1 %v5155_v60  ;;  %v2794_v52 = vrot.slane %v2792_v51, 5 }
  0xfe   : > { %4776 = vmatprep.subr.bf16.mxu1 %v5156_v7 }
  0xff   : > { %v2795_v2 = vsel %vm5279_vm2, %v2790_v47, %v2794_v52 }
 0x100   : > { %4507 = vmatmul.mubr.bf16.gmra.mrb[4].mxu1 %v5443_v15  ;;  %v5158_v15 = vld [vmem:[%s6222_s1 + $0x120] sm:$0xff]  }
 0x101   : > { %4715 = vmatmul.mubr.bf16.gmra.mrb[20].mxu0 %v6267_v20  ;;  %4510 = vmatprep.mubr.bf16.mxu1 %v5910_v12  ;;  %v2785_v12 = vsel %vm5279_vm2, %v2780_v32, %v2784_v24 }
 0x102   : > { %4718 = vmatprep.mubr.bf16.mxu0 %v5752_v55  ;;  %4784 = vmatpush3.bf16.msra.mxu1 %v5156_v7  ;;  %v3929_v34 = vcombine.low %v2785_v12, %v2795_v2 }
 0x103   : > { %4777 = vmatprep.subr.bf16.mxu1 %v5157_v5 }
 0x106   : > { %4785 = vmatpush3.bf16.msra.mxu1 %v5157_v5 }
 0x107   : > { %4778 = vmatprep.subr.bf16.mxu1 %v5158_v15 }
 0x108   : > { %4511 = vmatmul.mubr.bf16.gmra.mrb[8].mxu1 %v5916_v31  ;;  %v5160_v31 = vld [vmem:[%s6222_s1 + $0x130] sm:$0xff]  }
 0x109   : > { %4719 = vmatmul.mubr.bf16.gmra.mrb[24].mxu0 %v5786_v61  ;;  %4514 = vmatprep.mubr.bf16.mxu1 %v5941_v41 }
 0x10a   : > { %4722 = vmatprep.mubr.bf16.mxu0 %v5949_v57  ;;  %4786 = vmatpush3.bf16.msra.mxu1 %v5158_v15 }
 0x10b   : > { %4779 = vmatprep.subr.bf16.mxu1 %v5159_v54 }
 0x10e   : > { %4787 = vmatpush3.bf16.msra.mxu1 %v5159_v54 }
 0x10f   : > { %4780 = vmatprep.subr.bf16.mxu1 %v5160_v31 }
 0x110   : > { %4515 = vmatmul.mubr.bf16.gmra.mrb[12].mxu1 %v5831_v28 }
 0x111   : > { %4723 = vmatmul.mubr.bf16.gmra.mrb[28].mxu0 %v3929_v34  ;;  %4518 = vmatprep.mubr.bf16.mxu1 %v5842_v33 }
 0x112   : > { %4742 = vmatprep.mubr.bf16.mxu0 %v5580_v26  ;;  %4788 = vmatpush3.bf16.msra.mxu1 %v5160_v31  ;;  %v3061_v26 = vrot.slane %v6043_v62, 5 }
 0x113   : > { %4781 = vmatprep.subr.bf16.mxu1 %v5161_v37 }
 0x116   : > { %4789 = vmatpush3.bf16.msra.mxu1 %v5161_v37 }
 0x118   : > { %4519 = vmatmul.mubr.bf16.gmra.mrb[16].mxu1 %v5853_v45 }
 0x119   : > { %4743 = vmatmul.mubr.bf16.vlgmr.msra.gmra.mrb[0].mxu0 %v5620_v46  ;;  %4522 = vmatprep.mubr.bf16.mxu1 %v5857_v40  ;;  %v3938_v46 = vrot.slane %v6040_v0, 9 }
 0x11a   : > { %4746 = vmatprep.mubr.bf16.mxu0 %v5657_v44  ;;  %v3063_v44 = vrot.slane %v3061_v26, 4 }
 0x120   : > { %4523 = vmatmul.mubr.bf16.gmra.mrb[20].mxu1 %v5861_v53 }
 0x121   : > { %4747 = vmatmul.mubr.bf16.gmra.mrb[4].mxu0 %v5690_v19  ;;  %4526 = vmatprep.mubr.bf16.mxu1 %v5865_v9  ;;  %v3064_v19 = vrot.slane %v6111_v11, 5 }
 0x122   : > { %4750 = vmatprep.mubr.bf16.mxu0 %v5722_v35  ;;  %v3062_v35 = vsel %vm5486_vm5, %v3938_v46, %v3061_v26 }
 0x128   : > { %4527 = vmatmul.mubr.bf16.gmra.mrb[24].mxu1 %v5869_v16 }
 0x129   : > { %4751 = vmatmul.mubr.bf16.gmra.mrb[8].mxu0 %v5756_v21  ;;  %4530 = vmatprep.mubr.bf16.mxu1 %v5876_v38  ;;  %v3065_v21 = vsel %vm5486_vm5, %v3063_v44, %v3064_v19 }
 0x12a   : > { %4754 = vmatprep.mubr.bf16.mxu0 %v5788_v58  ;;  %v3955_v58 = vcombine.low %v3062_v35, %v3065_v21 }
 0x130   : > { %4531 = vmatmul.mubr.bf16.gmra.mrb[28].mxu1 %v6030_v48 }
 0x131   : > { %4755 = vmatmul.mubr.bf16.gmra.mrb[12].mxu0 %v5793_v18  ;;  %4566 = vmatprep.mubr.bf16.mxu1 %v6263_v49 }
 0x132   : > { %4758 = vmatprep.mubr.bf16.mxu0 %v5813_v13 }
 0x138   : > { %4567 = vmatmul.mubr.bf16.vlgmr.msra.gmra.mrb[16].mxu1 %v6264_v22 }
 0x139   : > { %4759 = vmatmul.mubr.bf16.gmra.mrb[16].mxu0 %v5818_v29  ;;  %4570 = vmatprep.mubr.bf16.mxu1 %v6265_v8 }
 0x13a   : > { %4762 = vmatprep.mubr.bf16.mxu0 %v5871_v4 }
 0x140   : > { %4571 = vmatmul.mubr.bf16.gmra.mrb[20].mxu1 %v6266_v10 }
 0x141   : > { %4763 = vmatmul.mubr.bf16.gmra.mrb[20].mxu0 %v5878_v3  ;;  %4574 = vmatprep.mubr.bf16.mxu1 %v6267_v20 }
 0x142   : > { %4766 = vmatprep.mubr.bf16.mxu0 %v5912_v50 }
 0x148   : > { %4575 = vmatmul.mubr.bf16.gmra.mrb[24].mxu1 %v5752_v55 }
 0x149   : > { %4767 = vmatmul.mubr.bf16.gmra.mrb[24].mxu0 %v5922_v42  ;;  %4578 = vmatprep.mubr.bf16.mxu1 %v5786_v61 }
 0x14a   : > { %4770 = vmatprep.mubr.bf16.mxu0 %v5943_v17 }
 0x150   : > { %4579 = vmatmul.mubr.bf16.gmra.mrb[28].mxu1 %v5949_v57 }
 0x151   : > { %4771 = vmatmul.mubr.bf16.gmra.mrb[28].mxu0 %v3955_v58 }
 0x1cb   : > { %v4504_v18 = vpop.f32.mrb[0].mxu1 }
 0x1cc   : > { %v1793_v13 = vpop.f32.mrb[1].mxu1 }
 0x1cd   : > { %v4505_v29 = vpop.f32.mrb[2].mxu1 }
 0x1ce   : > { %v1796_v55 = vpop.f32.mrb[3].mxu1 }
 0x1d3   : > { %v4508_v28 = vpop.f32.mrb[4].mxu1 }
 0x1d4   : > { %v1809_v33 = vpop.f32.mrb[5].mxu1 }
 0x1d5   : > { %v4509_v61 = vpop.f32.mrb[6].mxu1 }
 0x1d6   : > { %v1812_v45 = vpop.f32.mrb[7].mxu1 }
 0x1db   : > { %v4512_v40 = vpop.f32.mrb[8].mxu1 }
 0x1dc   : > { %v1825_v53 = vpop.f32.mrb[9].mxu1 }
 0x1dd   : > { %v4513_v9 = vpop.f32.mrb[10].mxu1 }
 0x1de   : > { %v1828_v16 = vpop.f32.mrb[11].mxu1 }
 0x1e3   : > { %v6180_v4 = vpop.f32.mrb[12].mxu1 }
 0x1e4   : > { %v6182_v23 = vpop.f32.mrb[13].mxu1 }
 0x1e5   : > { %v6184_v38 = vpop.f32.mrb[14].mxu1 }
 0x1e6   : > { %v6186_v3 = vpop.f32.mrb[15].mxu1 }
 0x1ec   : > { %v4744_v50 = vpop.f32.mrb[0].mxu0 }
 0x1ed   : > { %v4790_v42 = vadd.f32 %v4744_v50, %v4504_v18  ;;  %v3169_v41 = vpop.f32.mrb[1].mxu0 }
 0x1ee   : > { %v4791_v17 = vadd.f32 %v3169_v41, %v1793_v13  ;;  %v4745_v57 = vpop.f32.mrb[2].mxu0 }
 0x1ef   : > { %v4792_v48 = vadd.f32 %v4745_v57, %v4505_v29  ;;  %v3172_v0 = vpop.f32.mrb[3].mxu0  ;;  %v3527_v8 = vmul.f32 %v4790_v42, %v4790_v42 }
 0x1f0   : > { %v4793_v62 = vadd.f32 %v3172_v0, %v1796_v55  ;;  %v3525_v63 = vmul.f32 %v4791_v17, %v4791_v17 }
 0x1f1   : > { %v4039_v59 = vpack.c.bf16 %v4792_v48, %v4790_v42  ;;  %v3528_v60 = vmul.f32 %v4792_v48, %v4792_v48 }
 0x1f2   : > { %v4034_v25 = vpack.c.bf16 %v4793_v62, %v4791_v17  ;;  %v3488_v49 = vadd.f32 %v4793_v62, %v4791_v17  ;;  %v3526_v22 = vmul.f32 %v4793_v62, %v4793_v62 }
 0x1f3   : > { %4111 = vst [vmem:[%s6192_s8 + $0x8] sm:$0xff] %v4039_v59  }
 0x1f4   : > { %4035 = vst [vmem:[%s6192_s8] sm:$0xff] %v4034_v25   ;;  %v3489_v56 = vadd.f32 %v4790_v42, %v3488_v49  ;;  %v3557_v36 = vadd.f32 %v3526_v22, %v3525_v63  ;;  %v4748_v6 = vpop.f32.mrb[4].mxu0 }
 0x1f5   : > { %v4794_v43 = vadd.f32 %v4748_v6, %v4508_v28  ;;  %v3185_v10 = vpop.f32.mrb[5].mxu0 }
 0x1f6   : > { %v3558_v39 = vadd.f32 %v3557_v36, %v3527_v8  ;;  %v4795_v27 = vadd.f32 %v3185_v10, %v1809_v33  ;;  %v3490_v24 = vadd.f32 %v4792_v48, %v3489_v56  ;;  %v4749_v14 = vpop.f32.mrb[6].mxu0 }
 0x1f7   : > { %v4796_v7 = vadd.f32 %v4749_v14, %v4509_v61  ;;  %v3188_v11 = vpop.f32.mrb[7].mxu0  ;;  %v3531_v12 = vmul.f32 %v4794_v43, %v4794_v43 }
 0x1f8   : > { %v3491_v20 = vadd.f32 %v4795_v27, %v3490_v24  ;;  %v3529_v1 = vmul.f32 %v4795_v27, %v4795_v27  ;;  %v3559_v30 = vadd.f32 %v3558_v39, %v3528_v60  ;;  %v4797_v51 = vadd.f32 %v3188_v11, %v1812_v45 }
 0x1f9   : > { %v4049_v5 = vpack.c.bf16 %v4796_v7, %v4794_v43  ;;  %v3532_v26 = vmul.f32 %v4796_v7, %v4796_v7 }
 0x1fa   : > { %v3560_v32 = vadd.f32 %v3559_v30, %v3529_v1  ;;  %v4044_v47 = vpack.c.bf16 %v4797_v51, %v4795_v27  ;;  %v3492_v52 = vadd.f32 %v4797_v51, %v3491_v20  ;;  %v3530_v15 = vmul.f32 %v4797_v51, %v4797_v51 }
 0x1fb   : > { %4113 = vst [vmem:[%s6192_s8 + $0x18] sm:$0xff] %v4049_v5  }
 0x1fc   : > { %4112 = vst [vmem:[%s6192_s8 + $0x10] sm:$0xff] %v4044_v47   ;;  %v3493_v2 = vadd.f32 %v4794_v43, %v3492_v52  ;;  %v3561_v54 = vadd.f32 %v3560_v32, %v3530_v15  ;;  %v4752_v34 = vpop.f32.mrb[8].mxu0 }
 0x1fd   : > { %v4798_v31 = vadd.f32 %v4752_v34, %v4512_v40  ;;  %v3201_v37 = vpop.f32.mrb[9].mxu0 }
 0x1fe   : > { %v3562_v46 = vadd.f32 %v3561_v54, %v3531_v12  ;;  %v4799_v44 = vadd.f32 %v3201_v37, %v1825_v53  ;;  %v3494_v19 = vadd.f32 %v4796_v7, %v3493_v2  ;;  %v4753_v35 = vpop.f32.mrb[10].mxu0 }
 0x1ff   : > { %v4800_v21 = vadd.f32 %v4753_v35, %v4513_v9  ;;  %v3204_v58 = vpop.f32.mrb[11].mxu0  ;;  %v3535_v40 = vmul.f32 %v4798_v31, %v4798_v31 }
 0x200   : > { %v3495_v18 = vadd.f32 %v4799_v44, %v3494_v19  ;;  %v3533_v13 = vmul.f32 %v4799_v44, %v4799_v44  ;;  %v3563_v29 = vadd.f32 %v3562_v46, %v3532_v26  ;;  %v4801_v55 = vadd.f32 %v3204_v58, %v1828_v16 }
 0x201   : > { %v4059_v28 = vpack.c.bf16 %v4800_v21, %v4798_v31  ;;  %v3536_v9 = vmul.f32 %v4800_v21, %v4800_v21 }
 0x202   : > { %v3564_v33 = vadd.f32 %v3563_v29, %v3533_v13  ;;  %v4054_v61 = vpack.c.bf16 %v4801_v55, %v4799_v44  ;;  %v3496_v45 = vadd.f32 %v4801_v55, %v3495_v18  ;;  %v3534_v50 = vmul.f32 %v4801_v55, %v4801_v55 }
 0x203   : > { %4115 = vst [vmem:[%s6192_s8 + $0x28] sm:$0xff] %v4059_v28  }
 0x204   : > { %4114 = vst [vmem:[%s6192_s8 + $0x20] sm:$0xff] %v4054_v61   ;;  %v3497_v42 = vadd.f32 %v4798_v31, %v3496_v45  ;;  %v3565_v41 = vadd.f32 %v3564_v33, %v3534_v50  ;;  %v4756_v53 = vpop.f32.mrb[12].mxu0 }
 0x205   : > { %v4802_v17 = vadd.f32 %v4756_v53, %v6180_v4  ;;  %v3217_v57 = vpop.f32.mrb[13].mxu0 }
 0x206   : > { %v3566_v48 = vadd.f32 %v3565_v41, %v3535_v40  ;;  %v4803_v0 = vadd.f32 %v3217_v57, %v6182_v23  ;;  %v3498_v16 = vadd.f32 %v4800_v21, %v3497_v42  ;;  %v4757_v62 = vpop.f32.mrb[14].mxu0 }
 0x207   : > { %v4804_v59 = vadd.f32 %v4757_v62, %v6184_v38  ;;  %v3220_v63 = vpop.f32.mrb[15].mxu0  ;;  %v3539_v10 = vmul.f32 %v4802_v17, %v4802_v17 }
 0x208   : > { %v3499_v25 = vadd.f32 %v4803_v0, %v3498_v16  ;;  %v3537_v49 = vmul.f32 %v4803_v0, %v4803_v0  ;;  %v3567_v22 = vadd.f32 %v3566_v48, %v3536_v9  ;;  %v4805_v8 = vadd.f32 %v3220_v63, %v6186_v3 }
 0x209   : > { %v4069_v56 = vpack.c.bf16 %v4804_v59, %v4802_v17  ;;  %v3540_v7 = vmul.f32 %v4804_v59, %v4804_v59 }
 0x20a   : > { %v3568_v36 = vadd.f32 %v3567_v22, %v3537_v49  ;;  %v4064_v4 = vpack.c.bf16 %v4805_v8, %v4803_v0  ;;  %v3500_v6 = vadd.f32 %v4805_v8, %v3499_v25  ;;  %v3538_v43 = vmul.f32 %v4805_v8, %v4805_v8 }
 0x20b   : > { %4117 = vst [vmem:[%s6192_s8 + $0x38] sm:$0xff] %v4069_v56   ;;  %v4568_v39 = vpop.f32.mrb[16].mxu1 }
 0x20c   : > { %4116 = vst [vmem:[%s6192_s8 + $0x30] sm:$0xff] %v4064_v4   ;;  %v3501_v23 = vadd.f32 %v4802_v17, %v3500_v6  ;;  %v3569_v60 = vadd.f32 %v3568_v36, %v3538_v43  ;;  %v4760_v27 = vpop.f32.mrb[16].mxu0  ;;  %v2143_v38 = vpop.f32.mrb[17].mxu1 }
 0x20d   : > { %v4806_v24 = vadd.f32 %v4760_v27, %v4568_v39  ;;  %v3233_v14 = vpop.f32.mrb[17].mxu0  ;;  %v4569_v1 = vpop.f32.mrb[18].mxu1 }
 0x20e   : > { %v3570_v11 = vadd.f32 %v3569_v60, %v3539_v10  ;;  %v4807_v20 = vadd.f32 %v3233_v14, %v2143_v38  ;;  %v3502_v3 = vadd.f32 %v4804_v59, %v3501_v23  ;;  %v4761_v30 = vpop.f32.mrb[18].mxu0  ;;  %v2146_v5 = vpop.f32.mrb[19].mxu1 }
 0x20f   : > { %v4808_v51 = vadd.f32 %v4761_v30, %v4569_v1  ;;  %v3236_v32 = vpop.f32.mrb[19].mxu0  ;;  %v3543_v26 = vmul.f32 %v4806_v24, %v4806_v24 }
 0x210   : > { %v3503_v47 = vadd.f32 %v4807_v20, %v3502_v3  ;;  %v3541_v52 = vmul.f32 %v4807_v20, %v4807_v20  ;;  %v3571_v15 = vadd.f32 %v3570_v11, %v3540_v7  ;;  %v4809_v12 = vadd.f32 %v3236_v32, %v2146_v5 }
 0x211   : > { %v4079_v2 = vpack.c.bf16 %v4808_v51, %v4806_v24  ;;  %v3544_v13 = vmul.f32 %v4808_v51, %v4808_v51 }
 0x212   : > { %v3572_v54 = vadd.f32 %v3571_v15, %v3541_v52  ;;  %v4074_v34 = vpack.c.bf16 %v4809_v12, %v4807_v20  ;;  %v3504_v31 = vadd.f32 %v4809_v12, %v3503_v47  ;;  %v3542_v37 = vmul.f32 %v4809_v12, %v4809_v12 }
 0x213   : > { %4119 = vst [vmem:[%s6192_s8 + $0x48] sm:$0xff] %v4079_v2   ;;  %v4572_v19 = vpop.f32.mrb[20].mxu1 }
 0x214   : > { %4118 = vst [vmem:[%s6192_s8 + $0x40] sm:$0xff] %v4074_v34   ;;  %v3505_v46 = vadd.f32 %v4806_v24, %v3504_v31  ;;  %v3573_v44 = vadd.f32 %v3572_v54, %v3542_v37  ;;  %v4764_v35 = vpop.f32.mrb[20].mxu0  ;;  %v2159_v58 = vpop.f32.mrb[21].mxu1 }
 0x215   : > { %v4810_v21 = vadd.f32 %v4764_v35, %v4572_v19  ;;  %v3249_v18 = vpop.f32.mrb[21].mxu0  ;;  %v4573_v33 = vpop.f32.mrb[22].mxu1 }
 0x216   : > { %v3574_v29 = vadd.f32 %v3573_v44, %v3543_v26  ;;  %v4811_v55 = vadd.f32 %v3249_v18, %v2159_v58  ;;  %v3506_v28 = vadd.f32 %v4808_v51, %v3505_v46  ;;  %v4765_v61 = vpop.f32.mrb[22].mxu0  ;;  %v2162_v50 = vpop.f32.mrb[23].mxu1 }
 0x217   : > { %v4812_v45 = vadd.f32 %v4765_v61, %v4573_v33  ;;  %v3252_v40 = vpop.f32.mrb[23].mxu0  ;;  %v3547_v62 = vmul.f32 %v4810_v21, %v4810_v21 }
 0x218   : > { %v3507_v42 = vadd.f32 %v4811_v55, %v3506_v28  ;;  %v3545_v41 = vmul.f32 %v4811_v55, %v4811_v55  ;;  %v3575_v53 = vadd.f32 %v3574_v29, %v3544_v13  ;;  %v4813_v17 = vadd.f32 %v3252_v40, %v2162_v50 }
 0x219   : > { %v4089_v57 = vpack.c.bf16 %v4812_v45, %v4810_v21  ;;  %v3548_v36 = vmul.f32 %v4812_v45, %v4812_v45 }
 0x21a   : > { %v3576_v9 = vadd.f32 %v3575_v53, %v3545_v41  ;;  %v4084_v48 = vpack.c.bf16 %v4813_v17, %v4811_v55  ;;  %v3508_v0 = vadd.f32 %v4813_v17, %v3507_v42  ;;  %v3546_v16 = vmul.f32 %v4813_v17, %v4813_v17 }
 0x21b   : > { %4121 = vst [vmem:[%s6192_s8 + $0x58] sm:$0xff] %v4089_v57   ;;  %v4576_v25 = vpop.f32.mrb[24].mxu1 }
 0x21c   : > { %4120 = vst [vmem:[%s6192_s8 + $0x50] sm:$0xff] %v4084_v48   ;;  %v3509_v59 = vadd.f32 %v4810_v21, %v3508_v0  ;;  %v3577_v63 = vadd.f32 %v3576_v9, %v3546_v16  ;;  %v4768_v49 = vpop.f32.mrb[24].mxu0  ;;  %v2175_v8 = vpop.f32.mrb[25].mxu1 }
 0x21d   : > { %v4814_v22 = vadd.f32 %v4768_v49, %v4576_v25  ;;  %v3265_v56 = vpop.f32.mrb[25].mxu0  ;;  %v4577_v10 = vpop.f32.mrb[26].mxu1 }
 0x21e   : > { %v3578_v4 = vadd.f32 %v3577_v63, %v3547_v62  ;;  %v4815_v6 = vadd.f32 %v3265_v56, %v2175_v8  ;;  %v3510_v43 = vadd.f32 %v4812_v45, %v3509_v59  ;;  %v4769_v23 = vpop.f32.mrb[26].mxu0  ;;  %v2178_v39 = vpop.f32.mrb[27].mxu1 }
 0x21f   : > { %v4816_v60 = vadd.f32 %v4769_v23, %v4577_v10  ;;  %v3268_v27 = vpop.f32.mrb[27].mxu0  ;;  %v3551_v51 = vmul.f32 %v4814_v22, %v4814_v22 }
 0x220   : > { %v3511_v24 = vadd.f32 %v4815_v6, %v3510_v43  ;;  %v3549_v38 = vmul.f32 %v4815_v6, %v4815_v6  ;;  %v3579_v14 = vadd.f32 %v3578_v4, %v3548_v36  ;;  %v4817_v7 = vadd.f32 %v3268_v27, %v2178_v39 }
 0x221   : > { %v4099_v11 = vpack.c.bf16 %v4816_v60, %v4814_v22  ;;  %v3552_v54 = vmul.f32 %v4816_v60, %v4816_v60 }
 0x222   : > { %v3580_v20 = vadd.f32 %v3579_v14, %v3549_v38  ;;  %v4094_v3 = vpack.c.bf16 %v4817_v7, %v4815_v6  ;;  %v3512_v1 = vadd.f32 %v4817_v7, %v3511_v24  ;;  %v3550_v30 = vmul.f32 %v4817_v7, %v4817_v7 }
 0x223   : > { %4123 = vst [vmem:[%s6192_s8 + $0x68] sm:$0xff] %v4099_v11   ;;  %v4580_v47 = vpop.f32.mrb[28].mxu1 }
 0x224   : > { %4122 = vst [vmem:[%s6192_s8 + $0x60] sm:$0xff] %v4094_v3   ;;  %v3513_v5 = vadd.f32 %v4814_v22, %v3512_v1  ;;  %v3581_v32 = vadd.f32 %v3580_v20, %v3550_v30  ;;  %v4772_v52 = vpop.f32.mrb[28].mxu0  ;;  %v2191_v12 = vpop.f32.mrb[29].mxu1 }
 0x225   : > { %v4818_v15 = vadd.f32 %v4772_v52, %v4580_v47  ;;  %v3281_v2 = vpop.f32.mrb[29].mxu0  ;;  %v4581_v26 = vpop.f32.mrb[30].mxu1 }
 0x226   : > { %v3582_v34 = vadd.f32 %v3581_v32, %v3551_v51  ;;  %v4819_v31 = vadd.f32 %v3281_v2, %v2191_v12  ;;  %v3514_v37 = vadd.f32 %v4816_v60, %v3513_v5  ;;  %v4773_v46 = vpop.f32.mrb[30].mxu0  ;;  %v2194_v19 = vpop.f32.mrb[31].mxu1 }
 0x227   : > { %v4820_v44 = vadd.f32 %v4773_v46, %v4581_v26  ;;  %v3284_v35 = vpop.f32.mrb[31].mxu0  ;;  %v3555_v45 = vmul.f32 %v4818_v15, %v4818_v15 }
 0x228   : > { %v3515_v21 = vadd.f32 %v4819_v31, %v3514_v37  ;;  %v3553_v58 = vmul.f32 %v4819_v31, %v4819_v31  ;;  %v3583_v18 = vadd.f32 %v3582_v34, %v3552_v54  ;;  %v4821_v13 = vadd.f32 %v3284_v35, %v2194_v19 }
 0x229   : > { %v4109_v29 = vpack.c.bf16 %v4820_v44, %v4818_v15  ;;  %v3556_v42 = vmul.f32 %v4820_v44, %v4820_v44 }
 0x22a   : > { %v3584_v55 = vadd.f32 %v3583_v18, %v3553_v58  ;;  %v4104_v28 = vpack.c.bf16 %v4821_v13, %v4819_v31  ;;  %v3516_v33 = vadd.f32 %v4821_v13, %v3515_v21  ;;  %v3554_v61 = vmul.f32 %v4821_v13, %v4821_v13 }
 0x22b   : > { %4125 = vst [vmem:[%s6192_s8 + $0x78] sm:$0xff] %v4109_v29  }
 0x22c   : > { %4124 = vst [vmem:[%s6192_s8 + $0x70] sm:$0xff] %v4104_v28   ;;  %v3517_v50 = vadd.f32 %v4818_v15, %v3516_v33  ;;  %v3585_v40 = vadd.f32 %v3584_v55, %v3554_v61 }
 0x22e   : > { %v3518_v41 = vadd.f32 %v4820_v44, %v3517_v50  ;;  %v3586_v53 = vadd.f32 %v3585_v40, %v3555_v45 }
 0x230   : > { %v3519_v17 = vrot.slane %v3518_v41, 4  ;;  %v3587_v57 = vadd.f32 %v3586_v53, %v3556_v42 }
 0x232   : > { %v3520_v9 = vadd.f32 %v3519_v17, %v3518_v41  ;;  %v3588_v48 = vrot.slane %v3587_v57, 4 }
 0x234   : > { %v3521_v0 = vrot.slane %v3520_v9, 2  ;;  %v3589_v16 = vadd.f32 %v3588_v48, %v3587_v57 }
 0x236   : > { %v3522_v62 = vadd.f32 %v3521_v0, %v3520_v9  ;;  %v3590_v59 = vrot.slane %v3589_v16, 2 }
 0x238   : > { %v3523_v63 = vrot.slane %v3522_v62, 1  ;;  %v3591_v25 = vadd.f32 %v3590_v59, %v3589_v16 }
 0x23a   : > { %v3592_v49 = vrot.slane %v3591_v25, 1  ;;  %v3524_v22 = vadd.f32 %v3523_v63, %v3522_v62 }
 0x23c   : > { %v3593_v8 = vadd.f32 %v3592_v49, %v3591_v25 }
 0x23e   : > { %v3595_v56 = vsel %vm3594_vm6, %v3524_v22, %v3593_v8 }
 0x23f   : > { %3596 = vst [vmem:[%s181_s15] sm:$0x3] %v3595_v56 }
 0x240 PF: > { %s14_s12 = sadd.s32 1, %s5168_s12  }
 0x241   : > { %p11_p4 = scmp.ge.s32.totalorder %s14_s12, 4  }
 0x243   :  { %13 = sbr.rel (!%p11_p4) target bundleno = 1 (0x1), region = 78 }

</bundles_post_ra>
